<compile_context>
chip_gen: v5e
topology: v5e:2x2
jax: 0.10.0
libtpu: 0.0.40
codegen_flags: <defaults>
</compile_context>

<pallas_src>
import functools

import jax
import jax.numpy as jnp
import numpy as np
from jax.experimental import pallas as pl
from jax.experimental.pallas import tpu as pltpu


def _make_kernel_fn(B_tile, O, H, W, KH, KW, ph, pw, Hp, Wp):
    """Builds the Pallas kernel body (all loop bounds / offsets are static)."""

    def kernel_fn(ek_ref, x_ref, out_ref, xp_ref):
        # ek_ref : SMEM f32[O*KH*KW]       lambda-folded conv kernels (prefetched)
        # x_ref  : VMEM f32[B_tile, H, W]  unpadded input planes for this step
        # out_ref: VMEM f32[B_tile, O, H, W]
        # xp_ref : VMEM f32[B_tile, Hp, Wp] scratch: zero-padded planes
        #
        # Re-zero the scratch every step: scratch is per-core private, so a
        # program_id==0 gate would be unsafe when the parallel batch axis is
        # split across TensorCores.  <=2 grid steps total -> negligible cost.
        xp_ref[...] = jnp.zeros((B_tile, Hp, Wp), jnp.float32)

        for b in range(B_tile):
            xp_ref[b, ph:ph + H, pw:pw + W] = x_ref[b]

        for b in range(B_tile):
            xp = xp_ref[b]                         # (Hp, Wp), loaded once

            # Two partial accumulators per observer -> 4 independent add chains
            # for the 4 VALU slots (no f32 FMA on v5e/v6e).
            acc = [[jnp.zeros((H, W), jnp.float32) for _ in range(2)]
                   for _ in range(O)]

            t = 0
            for kw in range(KW):
                # Lane (minor-dim) shift hoisted out of the kh loop:
                # KW lane slices per plane instead of KH*KW.
                xs = xp[:, kw:kw + W]              # (Hp, W)
                for kh in range(KH):
                    tap = xs[kh:kh + H, :]         # sublane-offset slice only
                    for o in range(O):
                        w = ek_ref[o * KH * KW + kh * KW + kw]
                        s = t & 1
                        acc[o][s] = acc[o][s] + w * tap
                    t += 1

            for o in range(O):
                v = acc[o][0] + acc[o][1]
                out_ref[b, o] = jnp.maximum(jnp.tanh(v), 0.0)

    return kernel_fn


@functools.partial(jax.jit, static_argnames=("grid_splits",))
def geneo_layer_forward(x_nchw, kernels, lambdas, *, grid_splits=1):
    """GENEO_Layer.forward.

    x_nchw : f32[B, 1, H, W]   single-channel input grid (NCHW)
    kernels: f32[G, KH, KW]    one conv kernel per GENEO operator
    lambdas: f32[O, G]         convex coefficients (already softmax-ed)
    grid_splits: number of batch tiles (2 on multi-TensorCore chips, else 1)
    returns: f32[B, O, H, W]
    """
    B, C, H, W = x_nchw.shape
    assert C == 1, "GENEO_Layer operates on a single-channel grid"
    G, KH, KW = kernels.shape
    O = lambdas.shape[0]
    # SAME padding via KH//2 only matches F.conv2d for odd kernels, which
    # kernel_size = 2*kernel_reach + 1 guarantees.
    assert KH % 2 == 1 and KW % 2 == 1

    ph, pw = KH // 2, KW // 2
    Hp, Wp = H + 2 * ph, W + 2 * pw

    if grid_splits < 1 or B % grid_splits != 0:
        grid_splits = 1
    B_tile = B // grid_splits

    # Fold convex coefficients into the conv kernels (exact: pipeline is linear).
    eff_k = jnp.einsum("og,ghw->ohw",
                       lambdas.astype(jnp.float32),
                       kernels.astype(jnp.float32))           # (O, KH, KW)
    eff_flat = eff_k.reshape(-1)

    x = x_nchw[:, 0].astype(jnp.float32)                       # (B, H, W)

    kernel_fn = _make_kernel_fn(B_tile, O, H, W, KH, KW, ph, pw, Hp, Wp)

    cost = pl.CostEstimate(
        flops=2 * B * O * KH * KW * H * W,
        transcendentals=B * O * H * W,
        bytes_accessed=4 * (B * H * W + B * O * H * W + O * KH * KW),
    )

    out = pl.pallas_call(
        kernel_fn,
        out_shape=jax.ShapeDtypeStruct((B, O, H, W), jnp.float32),
        grid_spec=pltpu.PrefetchScalarGridSpec(
            num_scalar_prefetch=1,                              # eff_flat -> SMEM
            grid=(grid_splits,),
            in_specs=[pl.BlockSpec((B_tile, H, W), lambda i, ek: (i, 0, 0))],
            out_specs=pl.BlockSpec((B_tile, O, H, W),
                                   lambda i, ek: (i, 0, 0, 0)),
            scratch_shapes=[pltpu.VMEM((B_tile, Hp, Wp), jnp.float32)],
        ),
        compiler_params=pltpu.CompilerParams(
            dimension_semantics=("parallel",)),
        cost_estimate=cost,
    )(eff_flat, x)
    return out


def _default_grid_splits(batch):
    """2 batch tiles on multi-TensorCore chips (v7x/v4/v5p), else 1."""
    try:
        kind = jax.devices()[0].device_kind.lower()
    except Exception:
        return 1
    multi_tc = any(tag in kind for tag in ("v7", "v4", "v5p"))
    return 2 if (multi_tc and batch >= 2 and batch % 2 == 0) else 1


def _reference(x_nchw, kernels, lambdas):
    """Pure-JAX reference (unfolded) for correctness checking."""
    conv = jax.lax.conv_general_dilated(
        x_nchw, kernels[:, None, :, :],
        window_strides=(1, 1), padding="SAME",
        dimension_numbers=("NCHW", "OIHW", "NCHW"))
    pred = jnp.einsum("og,bghw->bohw", lambdas, conv)
    return jnp.maximum(jnp.tanh(pred), 0.0)


if __name__ == "__main__":
    # Small deterministic setup, consistent with GENEO_Layer.__init__:
    #   gib_dict = {'cy': 2, 'arrow': 1, 'cone': 1, 'neg': 1, 'disk': 1} -> G = 6
    #   kernel_reach = 2  ->  (2*2+1) x (2*2+1) = 5x5 kernels
    #   num_observers = 2
    B, H, W = 2, 16, 16
    G = 6
    kernel_reach = 2
    KH = KW = 2 * kernel_reach + 1
    O = 2

    key = jax.random.PRNGKey(0)
    kx, kk, kl = jax.random.split(key, 3)

    x = jax.random.normal(kx, (B, 1, H, W), dtype=jnp.float32)
    # Deterministic stand-in for GENEO_Operator.compute_kernel (see TODO above).
    kernels = 0.1 * jax.random.normal(kk, (G, KH, KW), dtype=jnp.float32)
    # lambdas = softmax(rand(O, G), dim=1), as in the PyTorch __init__.
    lambdas = jax.nn.softmax(
        jax.random.uniform(kl, (O, G), dtype=jnp.float32), axis=1)

    out = geneo_layer_forward(x, kernels, lambdas,
                              grid_splits=_default_grid_splits(B))
    out = jax.block_until_ready(out)

    ref = jax.block_until_ready(_reference(x, kernels, lambdas))
    np.testing.assert_allclose(np.asarray(out), np.asarray(ref),
                               rtol=1e-5, atol=1e-5)

    print("KERNEL_OK")
</pallas_src>

<mosaic_0001>
module attributes {stable_mosaic.version = 11 : i64} {
  func.func @kernel_fn(%arg0: i32, %arg1: memref<50xf32, #tpu.memory_space<smem>>, %arg2: memref<2x16x16xf32, #tpu.memory_space<vmem>>, %arg3: memref<2x2x16x16xf32, #tpu.memory_space<vmem>>, %arg4: memref<2x20x20xf32, #tpu.memory_space<vmem>>) attributes {dimension_semantics = [#tpu.dimension_semantics<parallel>], iteration_bounds = array<i64: 1>, scalar_prefetch = 1 : i64, scratch_operands = 1 : i64, tpu.core_type = #tpu.core_type<tc>, window_params = [{transform_indices = @transform_0, window_bounds = array<i64: 2, 16, 16>}, {transform_indices = @transform_1, window_bounds = array<i64: 2, 2, 16, 16>}]} {
    %cst = arith.constant 0.000000e+00 : f32
    %0 = vector.broadcast %cst : f32 to vector<2x20x20xf32>
    %c0 = arith.constant 0 : index
    %c0_0 = arith.constant 0 : index
    %c0_1 = arith.constant 0 : index
    %1 = vector.load %arg4[%c0, %c0_0, %c0_1] : memref<2x20x20xf32, #tpu.memory_space<vmem>>, vector<2x20x20xf32>
    tpu.vector_store %arg4[%c0, %c0_0, %c0_1], %0 {strides = array<i32>} : memref<2x20x20xf32, #tpu.memory_space<vmem>>, vector<2x20x20xf32>,
    %c0_2 = arith.constant 0 : index
    %c0_3 = arith.constant 0 : index
    %c0_4 = arith.constant 0 : index
    %2 = vector.load %arg2[%c0_2, %c0_3, %c0_4] : memref<2x16x16xf32, #tpu.memory_space<vmem>>, vector<1x16x16xf32>
    %3 = vector.shape_cast %2 : vector<1x16x16xf32> to vector<16x16xf32>
    %c0_5 = arith.constant 0 : index
    %c2 = arith.constant 2 : index
    %c2_6 = arith.constant 2 : index
    %4 = vector.load %arg4[%c0_5, %c2, %c2_6] : memref<2x20x20xf32, #tpu.memory_space<vmem>>, vector<1x16x16xf32>
    %5 = vector.shape_cast %4 : vector<1x16x16xf32> to vector<16x16xf32>
    %6 = vector.shape_cast %3 : vector<16x16xf32> to vector<1x16x16xf32>
    tpu.vector_store %arg4[%c0_5, %c2, %c2_6], %6 {strides = array<i32>} : memref<2x20x20xf32, #tpu.memory_space<vmem>>, vector<1x16x16xf32>,
    %c1 = arith.constant 1 : index
    %c0_7 = arith.constant 0 : index
    %c0_8 = arith.constant 0 : index
    %7 = vector.load %arg2[%c1, %c0_7, %c0_8] : memref<2x16x16xf32, #tpu.memory_space<vmem>>, vector<1x16x16xf32>
    %8 = vector.shape_cast %7 : vector<1x16x16xf32> to vector<16x16xf32>
    %c1_9 = arith.constant 1 : index
    %c2_10 = arith.constant 2 : index
    %c2_11 = arith.constant 2 : index
    %9 = vector.load %arg4[%c1_9, %c2_10, %c2_11] : memref<2x20x20xf32, #tpu.memory_space<vmem>>, vector<1x16x16xf32>
    %10 = vector.shape_cast %9 : vector<1x16x16xf32> to vector<16x16xf32>
    %11 = vector.shape_cast %8 : vector<16x16xf32> to vector<1x16x16xf32>
    tpu.vector_store %arg4[%c1_9, %c2_10, %c2_11], %11 {strides = array<i32>} : memref<2x20x20xf32, #tpu.memory_space<vmem>>, vector<1x16x16xf32>,
    %c0_12 = arith.constant 0 : index
    %c0_13 = arith.constant 0 : index
    %c0_14 = arith.constant 0 : index
    %12 = vector.load %arg4[%c0_12, %c0_13, %c0_14] : memref<2x20x20xf32, #tpu.memory_space<vmem>>, vector<1x20x20xf32>
    %13 = vector.shape_cast %12 : vector<1x20x20xf32> to vector<20x20xf32>
    %cst_15 = arith.constant 0.000000e+00 : f32
    %14 = vector.broadcast %cst_15 : f32 to vector<16x16xf32>
    %cst_16 = arith.constant 0.000000e+00 : f32
    %15 = vector.broadcast %cst_16 : f32 to vector<16x16xf32>
    %cst_17 = arith.constant 0.000000e+00 : f32
    %16 = vector.broadcast %cst_17 : f32 to vector<16x16xf32>
    %cst_18 = arith.constant 0.000000e+00 : f32
    %17 = vector.broadcast %cst_18 : f32 to vector<16x16xf32>
    %18 = vector.extract_strided_slice %13 {offsets = [0, 0], sizes = [20, 16], strides = [1, 1]} : vector<20x20xf32> to vector<20x16xf32>
    %19 = vector.extract_strided_slice %18 {offsets = [0, 0], sizes = [16, 16], strides = [1, 1]} : vector<20x16xf32> to vector<16x16xf32>
    %c0_19 = arith.constant 0 : index
    %20 = memref.load %arg1[%c0_19] : memref<50xf32, #tpu.memory_space<smem>>
    %21 = vector.broadcast %20 : f32 to vector<16x16xf32>
    %22 = arith.mulf %21, %19 : vector<16x16xf32>
    %23 = arith.addf %14, %22 : vector<16x16xf32>
    %c25 = arith.constant 25 : index
    %24 = memref.load %arg1[%c25] : memref<50xf32, #tpu.memory_space<smem>>
    %25 = vector.broadcast %24 : f32 to vector<16x16xf32>
    %26 = arith.mulf %25, %19 : vector<16x16xf32>
    %27 = arith.addf %16, %26 : vector<16x16xf32>
    %28 = vector.extract_strided_slice %18 {offsets = [1, 0], sizes = [16, 16], strides = [1, 1]} : vector<20x16xf32> to vector<16x16xf32>
    %c5 = arith.constant 5 : index
    %29 = memref.load %arg1[%c5] : memref<50xf32, #tpu.memory_space<smem>>
    %30 = vector.broadcast %29 : f32 to vector<16x16xf32>
    %31 = arith.mulf %30, %28 : vector<16x16xf32>
    %32 = arith.addf %15, %31 : vector<16x16xf32>
    %c30 = arith.constant 30 : index
    %33 = memref.load %arg1[%c30] : memref<50xf32, #tpu.memory_space<smem>>
    %34 = vector.broadcast %33 : f32 to vector<16x16xf32>
    %35 = arith.mulf %34, %28 : vector<16x16xf32>
    %36 = arith.addf %17, %35 : vector<16x16xf32>
    %37 = vector.extract_strided_slice %18 {offsets = [2, 0], sizes = [16, 16], strides = [1, 1]} : vector<20x16xf32> to vector<16x16xf32>
    %c10 = arith.constant 10 : index
    %38 = memref.load %arg1[%c10] : memref<50xf32, #tpu.memory_space<smem>>
    %39 = vector.broadcast %38 : f32 to vector<16x16xf32>
    %40 = arith.mulf %39, %37 : vector<16x16xf32>
    %41 = arith.addf %23, %40 : vector<16x16xf32>
    %c35 = arith.constant 35 : index
    %42 = memref.load %arg1[%c35] : memref<50xf32, #tpu.memory_space<smem>>
    %43 = vector.broadcast %42 : f32 to vector<16x16xf32>
    %44 = arith.mulf %43, %37 : vector<16x16xf32>
    %45 = arith.addf %27, %44 : vector<16x16xf32>
    %46 = vector.extract_strided_slice %18 {offsets = [3, 0], sizes = [16, 16], strides = [1, 1]} : vector<20x16xf32> to vector<16x16xf32>
    %c15 = arith.constant 15 : index
    %47 = memref.load %arg1[%c15] : memref<50xf32, #tpu.memory_space<smem>>
    %48 = vector.broadcast %47 : f32 to vector<16x16xf32>
    %49 = arith.mulf %48, %46 : vector<16x16xf32>
    %50 = arith.addf %32, %49 : vector<16x16xf32>
    %c40 = arith.constant 40 : index
    %51 = memref.load %arg1[%c40] : memref<50xf32, #tpu.memory_space<smem>>
    %52 = vector.broadcast %51 : f32 to vector<16x16xf32>
    %53 = arith.mulf %52, %46 : vector<16x16xf32>
    %54 = arith.addf %36, %53 : vector<16x16xf32>
    %55 = vector.extract_strided_slice %18 {offsets = [4, 0], sizes = [16, 16], strides = [1, 1]} : vector<20x16xf32> to vector<16x16xf32>
    %c20 = arith.constant 20 : index
    %56 = memref.load %arg1[%c20] : memref<50xf32, #tpu.memory_space<smem>>
    %57 = vector.broadcast %56 : f32 to vector<16x16xf32>
    %58 = arith.mulf %57, %55 : vector<16x16xf32>
    %59 = arith.addf %41, %58 : vector<16x16xf32>
    %c45 = arith.constant 45 : index
    %60 = memref.load %arg1[%c45] : memref<50xf32, #tpu.memory_space<smem>>
    %61 = vector.broadcast %60 : f32 to vector<16x16xf32>
    %62 = arith.mulf %61, %55 : vector<16x16xf32>
    %63 = arith.addf %45, %62 : vector<16x16xf32>
    %64 = vector.extract_strided_slice %13 {offsets = [0, 1], sizes = [20, 16], strides = [1, 1]} : vector<20x20xf32> to vector<20x16xf32>
    %65 = vector.extract_strided_slice %64 {offsets = [0, 0], sizes = [16, 16], strides = [1, 1]} : vector<20x16xf32> to vector<16x16xf32>
    %c1_20 = arith.constant 1 : index
    %66 = memref.load %arg1[%c1_20] : memref<50xf32, #tpu.memory_space<smem>>
    %67 = vector.broadcast %66 : f32 to vector<16x16xf32>
    %68 = arith.mulf %67, %65 : vector<16x16xf32>
    %69 = arith.addf %50, %68 : vector<16x16xf32>
    %c26 = arith.constant 26 : index
    %70 = memref.load %arg1[%c26] : memref<50xf32, #tpu.memory_space<smem>>
    %71 = vector.broadcast %70 : f32 to vector<16x16xf32>
    %72 = arith.mulf %71, %65 : vector<16x16xf32>
    %73 = arith.addf %54, %72 : vector<16x16xf32>
    %74 = vector.extract_strided_slice %64 {offsets = [1, 0], sizes = [16, 16], strides = [1, 1]} : vector<20x16xf32> to vector<16x16xf32>
    %c6 = arith.constant 6 : index
    %75 = memref.load %arg1[%c6] : memref<50xf32, #tpu.memory_space<smem>>
    %76 = vector.broadcast %75 : f32 to vector<16x16xf32>
    %77 = arith.mulf %76, %74 : vector<16x16xf32>
    %78 = arith.addf %59, %77 : vector<16x16xf32>
    %c31 = arith.constant 31 : index
    %79 = memref.load %arg1[%c31] : memref<50xf32, #tpu.memory_space<smem>>
    %80 = vector.broadcast %79 : f32 to vector<16x16xf32>
    %81 = arith.mulf %80, %74 : vector<16x16xf32>
    %82 = arith.addf %63, %81 : vector<16x16xf32>
    %83 = vector.extract_strided_slice %64 {offsets = [2, 0], sizes = [16, 16], strides = [1, 1]} : vector<20x16xf32> to vector<16x16xf32>
    %c11 = arith.constant 11 : index
    %84 = memref.load %arg1[%c11] : memref<50xf32, #tpu.memory_space<smem>>
    %85 = vector.broadcast %84 : f32 to vector<16x16xf32>
    %86 = arith.mulf %85, %83 : vector<16x16xf32>
    %87 = arith.addf %69, %86 : vector<16x16xf32>
    %c36 = arith.constant 36 : index
    %88 = memref.load %arg1[%c36] : memref<50xf32, #tpu.memory_space<smem>>
    %89 = vector.broadcast %88 : f32 to vector<16x16xf32>
    %90 = arith.mulf %89, %83 : vector<16x16xf32>
    %91 = arith.addf %73, %90 : vector<16x16xf32>
    %92 = vector.extract_strided_slice %64 {offsets = [3, 0], sizes = [16, 16], strides = [1, 1]} : vector<20x16xf32> to vector<16x16xf32>
    %c16 = arith.constant 16 : index
    %93 = memref.load %arg1[%c16] : memref<50xf32, #tpu.memory_space<smem>>
    %94 = vector.broadcast %93 : f32 to vector<16x16xf32>
    %95 = arith.mulf %94, %92 : vector<16x16xf32>
    %96 = arith.addf %78, %95 : vector<16x16xf32>
    %c41 = arith.constant 41 : index
    %97 = memref.load %arg1[%c41] : memref<50xf32, #tpu.memory_space<smem>>
    %98 = vector.broadcast %97 : f32 to vector<16x16xf32>
    %99 = arith.mulf %98, %92 : vector<16x16xf32>
    %100 = arith.addf %82, %99 : vector<16x16xf32>
    %101 = vector.extract_strided_slice %64 {offsets = [4, 0], sizes = [16, 16], strides = [1, 1]} : vector<20x16xf32> to vector<16x16xf32>
    %c21 = arith.constant 21 : index
    %102 = memref.load %arg1[%c21] : memref<50xf32, #tpu.memory_space<smem>>
    %103 = vector.broadcast %102 : f32 to vector<16x16xf32>
    %104 = arith.mulf %103, %101 : vector<16x16xf32>
    %105 = arith.addf %87, %104 : vector<16x16xf32>
    %c46 = arith.constant 46 : index
    %106 = memref.load %arg1[%c46] : memref<50xf32, #tpu.memory_space<smem>>
    %107 = vector.broadcast %106 : f32 to vector<16x16xf32>
    %108 = arith.mulf %107, %101 : vector<16x16xf32>
    %109 = arith.addf %91, %108 : vector<16x16xf32>
    %110 = vector.extract_strided_slice %13 {offsets = [0, 2], sizes = [20, 16], strides = [1, 1]} : vector<20x20xf32> to vector<20x16xf32>
    %111 = vector.extract_strided_slice %110 {offsets = [0, 0], sizes = [16, 16], strides = [1, 1]} : vector<20x16xf32> to vector<16x16xf32>
    %c2_21 = arith.constant 2 : index
    %112 = memref.load %arg1[%c2_21] : memref<50xf32, #tpu.memory_space<smem>>
    %113 = vector.broadcast %112 : f32 to vector<16x16xf32>
    %114 = arith.mulf %113, %111 : vector<16x16xf32>
    %115 = arith.addf %96, %114 : vector<16x16xf32>
    %c27 = arith.constant 27 : index
    %116 = memref.load %arg1[%c27] : memref<50xf32, #tpu.memory_space<smem>>
    %117 = vector.broadcast %116 : f32 to vector<16x16xf32>
    %118 = arith.mulf %117, %111 : vector<16x16xf32>
    %119 = arith.addf %100, %118 : vector<16x16xf32>
    %120 = vector.extract_strided_slice %110 {offsets = [1, 0], sizes = [16, 16], strides = [1, 1]} : vector<20x16xf32> to vector<16x16xf32>
    %c7 = arith.constant 7 : index
    %121 = memref.load %arg1[%c7] : memref<50xf32, #tpu.memory_space<smem>>
    %122 = vector.broadcast %121 : f32 to vector<16x16xf32>
    %123 = arith.mulf %122, %120 : vector<16x16xf32>
    %124 = arith.addf %105, %123 : vector<16x16xf32>
    %c32 = arith.constant 32 : index
    %125 = memref.load %arg1[%c32] : memref<50xf32, #tpu.memory_space<smem>>
    %126 = vector.broadcast %125 : f32 to vector<16x16xf32>
    %127 = arith.mulf %126, %120 : vector<16x16xf32>
    %128 = arith.addf %109, %127 : vector<16x16xf32>
    %129 = vector.extract_strided_slice %110 {offsets = [2, 0], sizes = [16, 16], strides = [1, 1]} : vector<20x16xf32> to vector<16x16xf32>
    %c12 = arith.constant 12 : index
    %130 = memref.load %arg1[%c12] : memref<50xf32, #tpu.memory_space<smem>>
    %131 = vector.broadcast %130 : f32 to vector<16x16xf32>
    %132 = arith.mulf %131, %129 : vector<16x16xf32>
    %133 = arith.addf %115, %132 : vector<16x16xf32>
    %c37 = arith.constant 37 : index
    %134 = memref.load %arg1[%c37] : memref<50xf32, #tpu.memory_space<smem>>
    %135 = vector.broadcast %134 : f32 to vector<16x16xf32>
    %136 = arith.mulf %135, %129 : vector<16x16xf32>
    %137 = arith.addf %119, %136 : vector<16x16xf32>
    %138 = vector.extract_strided_slice %110 {offsets = [3, 0], sizes = [16, 16], strides = [1, 1]} : vector<20x16xf32> to vector<16x16xf32>
    %c17 = arith.constant 17 : index
    %139 = memref.load %arg1[%c17] : memref<50xf32, #tpu.memory_space<smem>>
    %140 = vector.broadcast %139 : f32 to vector<16x16xf32>
    %141 = arith.mulf %140, %138 : vector<16x16xf32>
    %142 = arith.addf %124, %141 : vector<16x16xf32>
    %c42 = arith.constant 42 : index
    %143 = memref.load %arg1[%c42] : memref<50xf32, #tpu.memory_space<smem>>
    %144 = vector.broadcast %143 : f32 to vector<16x16xf32>
    %145 = arith.mulf %144, %138 : vector<16x16xf32>
    %146 = arith.addf %128, %145 : vector<16x16xf32>
    %147 = vector.extract_strided_slice %110 {offsets = [4, 0], sizes = [16, 16], strides = [1, 1]} : vector<20x16xf32> to vector<16x16xf32>
    %c22 = arith.constant 22 : index
    %148 = memref.load %arg1[%c22] : memref<50xf32, #tpu.memory_space<smem>>
    %149 = vector.broadcast %148 : f32 to vector<16x16xf32>
    %150 = arith.mulf %149, %147 : vector<16x16xf32>
    %151 = arith.addf %133, %150 : vector<16x16xf32>
    %c47 = arith.constant 47 : index
    %152 = memref.load %arg1[%c47] : memref<50xf32, #tpu.memory_space<smem>>
    %153 = vector.broadcast %152 : f32 to vector<16x16xf32>
    %154 = arith.mulf %153, %147 : vector<16x16xf32>
    %155 = arith.addf %137, %154 : vector<16x16xf32>
    %156 = vector.extract_strided_slice %13 {offsets = [0, 3], sizes = [20, 16], strides = [1, 1]} : vector<20x20xf32> to vector<20x16xf32>
    %157 = vector.extract_strided_slice %156 {offsets = [0, 0], sizes = [16, 16], strides = [1, 1]} : vector<20x16xf32> to vector<16x16xf32>
    %c3 = arith.constant 3 : index
    %158 = memref.load %arg1[%c3] : memref<50xf32, #tpu.memory_space<smem>>
    %159 = vector.broadcast %158 : f32 to vector<16x16xf32>
    %160 = arith.mulf %159, %157 : vector<16x16xf32>
    %161 = arith.addf %142, %160 : vector<16x16xf32>
    %c28 = arith.constant 28 : index
    %162 = memref.load %arg1[%c28] : memref<50xf32, #tpu.memory_space<smem>>
    %163 = vector.broadcast %162 : f32 to vector<16x16xf32>
    %164 = arith.mulf %163, %157 : vector<16x16xf32>
    %165 = arith.addf %146, %164 : vector<16x16xf32>
    %166 = vector.extract_strided_slice %156 {offsets = [1, 0], sizes = [16, 16], strides = [1, 1]} : vector<20x16xf32> to vector<16x16xf32>
    %c8 = arith.constant 8 : index
    %167 = memref.load %arg1[%c8] : memref<50xf32, #tpu.memory_space<smem>>
    %168 = vector.broadcast %167 : f32 to vector<16x16xf32>
    %169 = arith.mulf %168, %166 : vector<16x16xf32>
    %170 = arith.addf %151, %169 : vector<16x16xf32>
    %c33 = arith.constant 33 : index
    %171 = memref.load %arg1[%c33] : memref<50xf32, #tpu.memory_space<smem>>
    %172 = vector.broadcast %171 : f32 to vector<16x16xf32>
    %173 = arith.mulf %172, %166 : vector<16x16xf32>
    %174 = arith.addf %155, %173 : vector<16x16xf32>
    %175 = vector.extract_strided_slice %156 {offsets = [2, 0], sizes = [16, 16], strides = [1, 1]} : vector<20x16xf32> to vector<16x16xf32>
    %c13 = arith.constant 13 : index
    %176 = memref.load %arg1[%c13] : memref<50xf32, #tpu.memory_space<smem>>
    %177 = vector.broadcast %176 : f32 to vector<16x16xf32>
    %178 = arith.mulf %177, %175 : vector<16x16xf32>
    %179 = arith.addf %161, %178 : vector<16x16xf32>
    %c38 = arith.constant 38 : index
    %180 = memref.load %arg1[%c38] : memref<50xf32, #tpu.memory_space<smem>>
    %181 = vector.broadcast %180 : f32 to vector<16x16xf32>
    %182 = arith.mulf %181, %175 : vector<16x16xf32>
    %183 = arith.addf %165, %182 : vector<16x16xf32>
    %184 = vector.extract_strided_slice %156 {offsets = [3, 0], sizes = [16, 16], strides = [1, 1]} : vector<20x16xf32> to vector<16x16xf32>
    %c18 = arith.constant 18 : index
    %185 = memref.load %arg1[%c18] : memref<50xf32, #tpu.memory_space<smem>>
    %186 = vector.broadcast %185 : f32 to vector<16x16xf32>
    %187 = arith.mulf %186, %184 : vector<16x16xf32>
    %188 = arith.addf %170, %187 : vector<16x16xf32>
    %c43 = arith.constant 43 : index
    %189 = memref.load %arg1[%c43] : memref<50xf32, #tpu.memory_space<smem>>
    %190 = vector.broadcast %189 : f32 to vector<16x16xf32>
    %191 = arith.mulf %190, %184 : vector<16x16xf32>
    %192 = arith.addf %174, %191 : vector<16x16xf32>
    %193 = vector.extract_strided_slice %156 {offsets = [4, 0], sizes = [16, 16], strides = [1, 1]} : vector<20x16xf32> to vector<16x16xf32>
    %c23 = arith.constant 23 : index
    %194 = memref.load %arg1[%c23] : memref<50xf32, #tpu.memory_space<smem>>
    %195 = vector.broadcast %194 : f32 to vector<16x16xf32>
    %196 = arith.mulf %195, %193 : vector<16x16xf32>
    %197 = arith.addf %179, %196 : vector<16x16xf32>
    %c48 = arith.constant 48 : index
    %198 = memref.load %arg1[%c48] : memref<50xf32, #tpu.memory_space<smem>>
    %199 = vector.broadcast %198 : f32 to vector<16x16xf32>
    %200 = arith.mulf %199, %193 : vector<16x16xf32>
    %201 = arith.addf %183, %200 : vector<16x16xf32>
    %202 = vector.extract_strided_slice %13 {offsets = [0, 4], sizes = [20, 16], strides = [1, 1]} : vector<20x20xf32> to vector<20x16xf32>
    %203 = vector.extract_strided_slice %202 {offsets = [0, 0], sizes = [16, 16], strides = [1, 1]} : vector<20x16xf32> to vector<16x16xf32>
    %c4 = arith.constant 4 : index
    %204 = memref.load %arg1[%c4] : memref<50xf32, #tpu.memory_space<smem>>
    %205 = vector.broadcast %204 : f32 to vector<16x16xf32>
    %206 = arith.mulf %205, %203 : vector<16x16xf32>
    %207 = arith.addf %188, %206 : vector<16x16xf32>
    %c29 = arith.constant 29 : index
    %208 = memref.load %arg1[%c29] : memref<50xf32, #tpu.memory_space<smem>>
    %209 = vector.broadcast %208 : f32 to vector<16x16xf32>
    %210 = arith.mulf %209, %203 : vector<16x16xf32>
    %211 = arith.addf %192, %210 : vector<16x16xf32>
    %212 = vector.extract_strided_slice %202 {offsets = [1, 0], sizes = [16, 16], strides = [1, 1]} : vector<20x16xf32> to vector<16x16xf32>
    %c9 = arith.constant 9 : index
    %213 = memref.load %arg1[%c9] : memref<50xf32, #tpu.memory_space<smem>>
    %214 = vector.broadcast %213 : f32 to vector<16x16xf32>
    %215 = arith.mulf %214, %212 : vector<16x16xf32>
    %216 = arith.addf %197, %215 : vector<16x16xf32>
    %c34 = arith.constant 34 : index
    %217 = memref.load %arg1[%c34] : memref<50xf32, #tpu.memory_space<smem>>
    %218 = vector.broadcast %217 : f32 to vector<16x16xf32>
    %219 = arith.mulf %218, %212 : vector<16x16xf32>
    %220 = arith.addf %201, %219 : vector<16x16xf32>
    %221 = vector.extract_strided_slice %202 {offsets = [2, 0], sizes = [16, 16], strides = [1, 1]} : vector<20x16xf32> to vector<16x16xf32>
    %c14 = arith.constant 14 : index
    %222 = memref.load %arg1[%c14] : memref<50xf32, #tpu.memory_space<smem>>
    %223 = vector.broadcast %222 : f32 to vector<16x16xf32>
    %224 = arith.mulf %223, %221 : vector<16x16xf32>
    %225 = arith.addf %207, %224 : vector<16x16xf32>
    %c39 = arith.constant 39 : index
    %226 = memref.load %arg1[%c39] : memref<50xf32, #tpu.memory_space<smem>>
    %227 = vector.broadcast %226 : f32 to vector<16x16xf32>
    %228 = arith.mulf %227, %221 : vector<16x16xf32>
    %229 = arith.addf %211, %228 : vector<16x16xf32>
    %230 = vector.extract_strided_slice %202 {offsets = [3, 0], sizes = [16, 16], strides = [1, 1]} : vector<20x16xf32> to vector<16x16xf32>
    %c19 = arith.constant 19 : index
    %231 = memref.load %arg1[%c19] : memref<50xf32, #tpu.memory_space<smem>>
    %232 = vector.broadcast %231 : f32 to vector<16x16xf32>
    %233 = arith.mulf %232, %230 : vector<16x16xf32>
    %234 = arith.addf %216, %233 : vector<16x16xf32>
    %c44 = arith.constant 44 : index
    %235 = memref.load %arg1[%c44] : memref<50xf32, #tpu.memory_space<smem>>
    %236 = vector.broadcast %235 : f32 to vector<16x16xf32>
    %237 = arith.mulf %236, %230 : vector<16x16xf32>
    %238 = arith.addf %220, %237 : vector<16x16xf32>
    %239 = vector.extract_strided_slice %202 {offsets = [4, 0], sizes = [16, 16], strides = [1, 1]} : vector<20x16xf32> to vector<16x16xf32>
    %c24 = arith.constant 24 : index
    %240 = memref.load %arg1[%c24] : memref<50xf32, #tpu.memory_space<smem>>
    %241 = vector.broadcast %240 : f32 to vector<16x16xf32>
    %242 = arith.mulf %241, %239 : vector<16x16xf32>
    %243 = arith.addf %225, %242 : vector<16x16xf32>
    %c49 = arith.constant 49 : index
    %244 = memref.load %arg1[%c49] : memref<50xf32, #tpu.memory_space<smem>>
    %245 = vector.broadcast %244 : f32 to vector<16x16xf32>
    %246 = arith.mulf %245, %239 : vector<16x16xf32>
    %247 = arith.addf %229, %246 : vector<16x16xf32>
    %248 = arith.addf %243, %234 : vector<16x16xf32>
    %249 = math.tanh %248 : vector<16x16xf32>
    %cst_22 = arith.constant 0.000000e+00 : f32
    %250 = vector.broadcast %cst_22 : f32 to vector<16x16xf32>
    %251 = arith.maximumf %249, %250 : vector<16x16xf32>
    %c0_23 = arith.constant 0 : index
    %c0_24 = arith.constant 0 : index
    %c0_25 = arith.constant 0 : index
    %c0_26 = arith.constant 0 : index
    %252 = vector.load %arg3[%c0_23, %c0_24, %c0_25, %c0_26] : memref<2x2x16x16xf32, #tpu.memory_space<vmem>>, vector<1x1x16x16xf32>
    %253 = vector.shape_cast %252 : vector<1x1x16x16xf32> to vector<16x16xf32>
    %254 = vector.shape_cast %251 : vector<16x16xf32> to vector<1x1x16x16xf32>
    tpu.vector_store %arg3[%c0_23, %c0_24, %c0_25, %c0_26], %254 {strides = array<i32>} : memref<2x2x16x16xf32, #tpu.memory_space<vmem>>, vector<1x1x16x16xf32>,
    %255 = arith.addf %247, %238 : vector<16x16xf32>
    %256 = math.tanh %255 : vector<16x16xf32>
    %cst_27 = arith.constant 0.000000e+00 : f32
    %257 = vector.broadcast %cst_27 : f32 to vector<16x16xf32>
    %258 = arith.maximumf %256, %257 : vector<16x16xf32>
    %c0_28 = arith.constant 0 : index
    %c1_29 = arith.constant 1 : index
    %c0_30 = arith.constant 0 : index
    %c0_31 = arith.constant 0 : index
    %259 = vector.load %arg3[%c0_28, %c1_29, %c0_30, %c0_31] : memref<2x2x16x16xf32, #tpu.memory_space<vmem>>, vector<1x1x16x16xf32>
    %260 = vector.shape_cast %259 : vector<1x1x16x16xf32> to vector<16x16xf32>
    %261 = vector.shape_cast %258 : vector<16x16xf32> to vector<1x1x16x16xf32>
    tpu.vector_store %arg3[%c0_28, %c1_29, %c0_30, %c0_31], %261 {strides = array<i32>} : memref<2x2x16x16xf32, #tpu.memory_space<vmem>>, vector<1x1x16x16xf32>,
    %c1_32 = arith.constant 1 : index
    %c0_33 = arith.constant 0 : index
    %c0_34 = arith.constant 0 : index
    %262 = vector.load %arg4[%c1_32, %c0_33, %c0_34] : memref<2x20x20xf32, #tpu.memory_space<vmem>>, vector<1x20x20xf32>
    %263 = vector.shape_cast %262 : vector<1x20x20xf32> to vector<20x20xf32>
    %cst_35 = arith.constant 0.000000e+00 : f32
    %264 = vector.broadcast %cst_35 : f32 to vector<16x16xf32>
    %cst_36 = arith.constant 0.000000e+00 : f32
    %265 = vector.broadcast %cst_36 : f32 to vector<16x16xf32>
    %cst_37 = arith.constant 0.000000e+00 : f32
    %266 = vector.broadcast %cst_37 : f32 to vector<16x16xf32>
    %cst_38 = arith.constant 0.000000e+00 : f32
    %267 = vector.broadcast %cst_38 : f32 to vector<16x16xf32>
    %268 = vector.extract_strided_slice %263 {offsets = [0, 0], sizes = [20, 16], strides = [1, 1]} : vector<20x20xf32> to vector<20x16xf32>
    %269 = vector.extract_strided_slice %268 {offsets = [0, 0], sizes = [16, 16], strides = [1, 1]} : vector<20x16xf32> to vector<16x16xf32>
    %c0_39 = arith.constant 0 : index
    %270 = memref.load %arg1[%c0_39] : memref<50xf32, #tpu.memory_space<smem>>
    %271 = vector.broadcast %270 : f32 to vector<16x16xf32>
    %272 = arith.mulf %271, %269 : vector<16x16xf32>
    %273 = arith.addf %264, %272 : vector<16x16xf32>
    %c25_40 = arith.constant 25 : index
    %274 = memref.load %arg1[%c25_40] : memref<50xf32, #tpu.memory_space<smem>>
    %275 = vector.broadcast %274 : f32 to vector<16x16xf32>
    %276 = arith.mulf %275, %269 : vector<16x16xf32>
    %277 = arith.addf %266, %276 : vector<16x16xf32>
    %278 = vector.extract_strided_slice %268 {offsets = [1, 0], sizes = [16, 16], strides = [1, 1]} : vector<20x16xf32> to vector<16x16xf32>
    %c5_41 = arith.constant 5 : index
    %279 = memref.load %arg1[%c5_41] : memref<50xf32, #tpu.memory_space<smem>>
    %280 = vector.broadcast %279 : f32 to vector<16x16xf32>
    %281 = arith.mulf %280, %278 : vector<16x16xf32>
    %282 = arith.addf %265, %281 : vector<16x16xf32>
    %c30_42 = arith.constant 30 : index
    %283 = memref.load %arg1[%c30_42] : memref<50xf32, #tpu.memory_space<smem>>
    %284 = vector.broadcast %283 : f32 to vector<16x16xf32>
    %285 = arith.mulf %284, %278 : vector<16x16xf32>
    %286 = arith.addf %267, %285 : vector<16x16xf32>
    %287 = vector.extract_strided_slice %268 {offsets = [2, 0], sizes = [16, 16], strides = [1, 1]} : vector<20x16xf32> to vector<16x16xf32>
    %c10_43 = arith.constant 10 : index
    %288 = memref.load %arg1[%c10_43] : memref<50xf32, #tpu.memory_space<smem>>
    %289 = vector.broadcast %288 : f32 to vector<16x16xf32>
    %290 = arith.mulf %289, %287 : vector<16x16xf32>
    %291 = arith.addf %273, %290 : vector<16x16xf32>
    %c35_44 = arith.constant 35 : index
    %292 = memref.load %arg1[%c35_44] : memref<50xf32, #tpu.memory_space<smem>>
    %293 = vector.broadcast %292 : f32 to vector<16x16xf32>
    %294 = arith.mulf %293, %287 : vector<16x16xf32>
    %295 = arith.addf %277, %294 : vector<16x16xf32>
    %296 = vector.extract_strided_slice %268 {offsets = [3, 0], sizes = [16, 16], strides = [1, 1]} : vector<20x16xf32> to vector<16x16xf32>
    %c15_45 = arith.constant 15 : index
    %297 = memref.load %arg1[%c15_45] : memref<50xf32, #tpu.memory_space<smem>>
    %298 = vector.broadcast %297 : f32 to vector<16x16xf32>
    %299 = arith.mulf %298, %296 : vector<16x16xf32>
    %300 = arith.addf %282, %299 : vector<16x16xf32>
    %c40_46 = arith.constant 40 : index
    %301 = memref.load %arg1[%c40_46] : memref<50xf32, #tpu.memory_space<smem>>
    %302 = vector.broadcast %301 : f32 to vector<16x16xf32>
    %303 = arith.mulf %302, %296 : vector<16x16xf32>
    %304 = arith.addf %286, %303 : vector<16x16xf32>
    %305 = vector.extract_strided_slice %268 {offsets = [4, 0], sizes = [16, 16], strides = [1, 1]} : vector<20x16xf32> to vector<16x16xf32>
    %c20_47 = arith.constant 20 : index
    %306 = memref.load %arg1[%c20_47] : memref<50xf32, #tpu.memory_space<smem>>
    %307 = vector.broadcast %306 : f32 to vector<16x16xf32>
    %308 = arith.mulf %307, %305 : vector<16x16xf32>
    %309 = arith.addf %291, %308 : vector<16x16xf32>
    %c45_48 = arith.constant 45 : index
    %310 = memref.load %arg1[%c45_48] : memref<50xf32, #tpu.memory_space<smem>>
    %311 = vector.broadcast %310 : f32 to vector<16x16xf32>
    %312 = arith.mulf %311, %305 : vector<16x16xf32>
    %313 = arith.addf %295, %312 : vector<16x16xf32>
    %314 = vector.extract_strided_slice %263 {offsets = [0, 1], sizes = [20, 16], strides = [1, 1]} : vector<20x20xf32> to vector<20x16xf32>
    %315 = vector.extract_strided_slice %314 {offsets = [0, 0], sizes = [16, 16], strides = [1, 1]} : vector<20x16xf32> to vector<16x16xf32>
    %c1_49 = arith.constant 1 : index
    %316 = memref.load %arg1[%c1_49] : memref<50xf32, #tpu.memory_space<smem>>
    %317 = vector.broadcast %316 : f32 to vector<16x16xf32>
    %318 = arith.mulf %317, %315 : vector<16x16xf32>
    %319 = arith.addf %300, %318 : vector<16x16xf32>
    %c26_50 = arith.constant 26 : index
    %320 = memref.load %arg1[%c26_50] : memref<50xf32, #tpu.memory_space<smem>>
    %321 = vector.broadcast %320 : f32 to vector<16x16xf32>
    %322 = arith.mulf %321, %315 : vector<16x16xf32>
    %323 = arith.addf %304, %322 : vector<16x16xf32>
    %324 = vector.extract_strided_slice %314 {offsets = [1, 0], sizes = [16, 16], strides = [1, 1]} : vector<20x16xf32> to vector<16x16xf32>
    %c6_51 = arith.constant 6 : index
    %325 = memref.load %arg1[%c6_51] : memref<50xf32, #tpu.memory_space<smem>>
    %326 = vector.broadcast %325 : f32 to vector<16x16xf32>
    %327 = arith.mulf %326, %324 : vector<16x16xf32>
    %328 = arith.addf %309, %327 : vector<16x16xf32>
    %c31_52 = arith.constant 31 : index
    %329 = memref.load %arg1[%c31_52] : memref<50xf32, #tpu.memory_space<smem>>
    %330 = vector.broadcast %329 : f32 to vector<16x16xf32>
    %331 = arith.mulf %330, %324 : vector<16x16xf32>
    %332 = arith.addf %313, %331 : vector<16x16xf32>
    %333 = vector.extract_strided_slice %314 {offsets = [2, 0], sizes = [16, 16], strides = [1, 1]} : vector<20x16xf32> to vector<16x16xf32>
    %c11_53 = arith.constant 11 : index
    %334 = memref.load %arg1[%c11_53] : memref<50xf32, #tpu.memory_space<smem>>
    %335 = vector.broadcast %334 : f32 to vector<16x16xf32>
    %336 = arith.mulf %335, %333 : vector<16x16xf32>
    %337 = arith.addf %319, %336 : vector<16x16xf32>
    %c36_54 = arith.constant 36 : index
    %338 = memref.load %arg1[%c36_54] : memref<50xf32, #tpu.memory_space<smem>>
    %339 = vector.broadcast %338 : f32 to vector<16x16xf32>
    %340 = arith.mulf %339, %333 : vector<16x16xf32>
    %341 = arith.addf %323, %340 : vector<16x16xf32>
    %342 = vector.extract_strided_slice %314 {offsets = [3, 0], sizes = [16, 16], strides = [1, 1]} : vector<20x16xf32> to vector<16x16xf32>
    %c16_55 = arith.constant 16 : index
    %343 = memref.load %arg1[%c16_55] : memref<50xf32, #tpu.memory_space<smem>>
    %344 = vector.broadcast %343 : f32 to vector<16x16xf32>
    %345 = arith.mulf %344, %342 : vector<16x16xf32>
    %346 = arith.addf %328, %345 : vector<16x16xf32>
    %c41_56 = arith.constant 41 : index
    %347 = memref.load %arg1[%c41_56] : memref<50xf32, #tpu.memory_space<smem>>
    %348 = vector.broadcast %347 : f32 to vector<16x16xf32>
    %349 = arith.mulf %348, %342 : vector<16x16xf32>
    %350 = arith.addf %332, %349 : vector<16x16xf32>
    %351 = vector.extract_strided_slice %314 {offsets = [4, 0], sizes = [16, 16], strides = [1, 1]} : vector<20x16xf32> to vector<16x16xf32>
    %c21_57 = arith.constant 21 : index
    %352 = memref.load %arg1[%c21_57] : memref<50xf32, #tpu.memory_space<smem>>
    %353 = vector.broadcast %352 : f32 to vector<16x16xf32>
    %354 = arith.mulf %353, %351 : vector<16x16xf32>
    %355 = arith.addf %337, %354 : vector<16x16xf32>
    %c46_58 = arith.constant 46 : index
    %356 = memref.load %arg1[%c46_58] : memref<50xf32, #tpu.memory_space<smem>>
    %357 = vector.broadcast %356 : f32 to vector<16x16xf32>
    %358 = arith.mulf %357, %351 : vector<16x16xf32>
    %359 = arith.addf %341, %358 : vector<16x16xf32>
    %360 = vector.extract_strided_slice %263 {offsets = [0, 2], sizes = [20, 16], strides = [1, 1]} : vector<20x20xf32> to vector<20x16xf32>
    %361 = vector.extract_strided_slice %360 {offsets = [0, 0], sizes = [16, 16], strides = [1, 1]} : vector<20x16xf32> to vector<16x16xf32>
    %c2_59 = arith.constant 2 : index
    %362 = memref.load %arg1[%c2_59] : memref<50xf32, #tpu.memory_space<smem>>
    %363 = vector.broadcast %362 : f32 to vector<16x16xf32>
    %364 = arith.mulf %363, %361 : vector<16x16xf32>
    %365 = arith.addf %346, %364 : vector<16x16xf32>
    %c27_60 = arith.constant 27 : index
    %366 = memref.load %arg1[%c27_60] : memref<50xf32, #tpu.memory_space<smem>>
    %367 = vector.broadcast %366 : f32 to vector<16x16xf32>
    %368 = arith.mulf %367, %361 : vector<16x16xf32>
    %369 = arith.addf %350, %368 : vector<16x16xf32>
    %370 = vector.extract_strided_slice %360 {offsets = [1, 0], sizes = [16, 16], strides = [1, 1]} : vector<20x16xf32> to vector<16x16xf32>
    %c7_61 = arith.constant 7 : index
    %371 = memref.load %arg1[%c7_61] : memref<50xf32, #tpu.memory_space<smem>>
    %372 = vector.broadcast %371 : f32 to vector<16x16xf32>
    %373 = arith.mulf %372, %370 : vector<16x16xf32>
    %374 = arith.addf %355, %373 : vector<16x16xf32>
    %c32_62 = arith.constant 32 : index
    %375 = memref.load %arg1[%c32_62] : memref<50xf32, #tpu.memory_space<smem>>
    %376 = vector.broadcast %375 : f32 to vector<16x16xf32>
    %377 = arith.mulf %376, %370 : vector<16x16xf32>
    %378 = arith.addf %359, %377 : vector<16x16xf32>
    %379 = vector.extract_strided_slice %360 {offsets = [2, 0], sizes = [16, 16], strides = [1, 1]} : vector<20x16xf32> to vector<16x16xf32>
    %c12_63 = arith.constant 12 : index
    %380 = memref.load %arg1[%c12_63] : memref<50xf32, #tpu.memory_space<smem>>
    %381 = vector.broadcast %380 : f32 to vector<16x16xf32>
    %382 = arith.mulf %381, %379 : vector<16x16xf32>
    %383 = arith.addf %365, %382 : vector<16x16xf32>
    %c37_64 = arith.constant 37 : index
    %384 = memref.load %arg1[%c37_64] : memref<50xf32, #tpu.memory_space<smem>>
    %385 = vector.broadcast %384 : f32 to vector<16x16xf32>
    %386 = arith.mulf %385, %379 : vector<16x16xf32>
    %387 = arith.addf %369, %386 : vector<16x16xf32>
    %388 = vector.extract_strided_slice %360 {offsets = [3, 0], sizes = [16, 16], strides = [1, 1]} : vector<20x16xf32> to vector<16x16xf32>
    %c17_65 = arith.constant 17 : index
    %389 = memref.load %arg1[%c17_65] : memref<50xf32, #tpu.memory_space<smem>>
    %390 = vector.broadcast %389 : f32 to vector<16x16xf32>
    %391 = arith.mulf %390, %388 : vector<16x16xf32>
    %392 = arith.addf %374, %391 : vector<16x16xf32>
    %c42_66 = arith.constant 42 : index
    %393 = memref.load %arg1[%c42_66] : memref<50xf32, #tpu.memory_space<smem>>
    %394 = vector.broadcast %393 : f32 to vector<16x16xf32>
    %395 = arith.mulf %394, %388 : vector<16x16xf32>
    %396 = arith.addf %378, %395 : vector<16x16xf32>
    %397 = vector.extract_strided_slice %360 {offsets = [4, 0], sizes = [16, 16], strides = [1, 1]} : vector<20x16xf32> to vector<16x16xf32>
    %c22_67 = arith.constant 22 : index
    %398 = memref.load %arg1[%c22_67] : memref<50xf32, #tpu.memory_space<smem>>
    %399 = vector.broadcast %398 : f32 to vector<16x16xf32>
    %400 = arith.mulf %399, %397 : vector<16x16xf32>
    %401 = arith.addf %383, %400 : vector<16x16xf32>
    %c47_68 = arith.constant 47 : index
    %402 = memref.load %arg1[%c47_68] : memref<50xf32, #tpu.memory_space<smem>>
    %403 = vector.broadcast %402 : f32 to vector<16x16xf32>
    %404 = arith.mulf %403, %397 : vector<16x16xf32>
    %405 = arith.addf %387, %404 : vector<16x16xf32>
    %406 = vector.extract_strided_slice %263 {offsets = [0, 3], sizes = [20, 16], strides = [1, 1]} : vector<20x20xf32> to vector<20x16xf32>
    %407 = vector.extract_strided_slice %406 {offsets = [0, 0], sizes = [16, 16], strides = [1, 1]} : vector<20x16xf32> to vector<16x16xf32>
    %c3_69 = arith.constant 3 : index
    %408 = memref.load %arg1[%c3_69] : memref<50xf32, #tpu.memory_space<smem>>
    %409 = vector.broadcast %408 : f32 to vector<16x16xf32>
    %410 = arith.mulf %409, %407 : vector<16x16xf32>
    %411 = arith.addf %392, %410 : vector<16x16xf32>
    %c28_70 = arith.constant 28 : index
    %412 = memref.load %arg1[%c28_70] : memref<50xf32, #tpu.memory_space<smem>>
    %413 = vector.broadcast %412 : f32 to vector<16x16xf32>
    %414 = arith.mulf %413, %407 : vector<16x16xf32>
    %415 = arith.addf %396, %414 : vector<16x16xf32>
    %416 = vector.extract_strided_slice %406 {offsets = [1, 0], sizes = [16, 16], strides = [1, 1]} : vector<20x16xf32> to vector<16x16xf32>
    %c8_71 = arith.constant 8 : index
    %417 = memref.load %arg1[%c8_71] : memref<50xf32, #tpu.memory_space<smem>>
    %418 = vector.broadcast %417 : f32 to vector<16x16xf32>
    %419 = arith.mulf %418, %416 : vector<16x16xf32>
    %420 = arith.addf %401, %419 : vector<16x16xf32>
    %c33_72 = arith.constant 33 : index
    %421 = memref.load %arg1[%c33_72] : memref<50xf32, #tpu.memory_space<smem>>
    %422 = vector.broadcast %421 : f32 to vector<16x16xf32>
    %423 = arith.mulf %422, %416 : vector<16x16xf32>
    %424 = arith.addf %405, %423 : vector<16x16xf32>
    %425 = vector.extract_strided_slice %406 {offsets = [2, 0], sizes = [16, 16], strides = [1, 1]} : vector<20x16xf32> to vector<16x16xf32>
    %c13_73 = arith.constant 13 : index
    %426 = memref.load %arg1[%c13_73] : memref<50xf32, #tpu.memory_space<smem>>
    %427 = vector.broadcast %426 : f32 to vector<16x16xf32>
    %428 = arith.mulf %427, %425 : vector<16x16xf32>
    %429 = arith.addf %411, %428 : vector<16x16xf32>
    %c38_74 = arith.constant 38 : index
    %430 = memref.load %arg1[%c38_74] : memref<50xf32, #tpu.memory_space<smem>>
    %431 = vector.broadcast %430 : f32 to vector<16x16xf32>
    %432 = arith.mulf %431, %425 : vector<16x16xf32>
    %433 = arith.addf %415, %432 : vector<16x16xf32>
    %434 = vector.extract_strided_slice %406 {offsets = [3, 0], sizes = [16, 16], strides = [1, 1]} : vector<20x16xf32> to vector<16x16xf32>
    %c18_75 = arith.constant 18 : index
    %435 = memref.load %arg1[%c18_75] : memref<50xf32, #tpu.memory_space<smem>>
    %436 = vector.broadcast %435 : f32 to vector<16x16xf32>
    %437 = arith.mulf %436, %434 : vector<16x16xf32>
    %438 = arith.addf %420, %437 : vector<16x16xf32>
    %c43_76 = arith.constant 43 : index
    %439 = memref.load %arg1[%c43_76] : memref<50xf32, #tpu.memory_space<smem>>
    %440 = vector.broadcast %439 : f32 to vector<16x16xf32>
    %441 = arith.mulf %440, %434 : vector<16x16xf32>
    %442 = arith.addf %424, %441 : vector<16x16xf32>
    %443 = vector.extract_strided_slice %406 {offsets = [4, 0], sizes = [16, 16], strides = [1, 1]} : vector<20x16xf32> to vector<16x16xf32>
    %c23_77 = arith.constant 23 : index
    %444 = memref.load %arg1[%c23_77] : memref<50xf32, #tpu.memory_space<smem>>
    %445 = vector.broadcast %444 : f32 to vector<16x16xf32>
    %446 = arith.mulf %445, %443 : vector<16x16xf32>
    %447 = arith.addf %429, %446 : vector<16x16xf32>
    %c48_78 = arith.constant 48 : index
    %448 = memref.load %arg1[%c48_78] : memref<50xf32, #tpu.memory_space<smem>>
    %449 = vector.broadcast %448 : f32 to vector<16x16xf32>
    %450 = arith.mulf %449, %443 : vector<16x16xf32>
    %451 = arith.addf %433, %450 : vector<16x16xf32>
    %452 = vector.extract_strided_slice %263 {offsets = [0, 4], sizes = [20, 16], strides = [1, 1]} : vector<20x20xf32> to vector<20x16xf32>
    %453 = vector.extract_strided_slice %452 {offsets = [0, 0], sizes = [16, 16], strides = [1, 1]} : vector<20x16xf32> to vector<16x16xf32>
    %c4_79 = arith.constant 4 : index
    %454 = memref.load %arg1[%c4_79] : memref<50xf32, #tpu.memory_space<smem>>
    %455 = vector.broadcast %454 : f32 to vector<16x16xf32>
    %456 = arith.mulf %455, %453 : vector<16x16xf32>
    %457 = arith.addf %438, %456 : vector<16x16xf32>
    %c29_80 = arith.constant 29 : index
    %458 = memref.load %arg1[%c29_80] : memref<50xf32, #tpu.memory_space<smem>>
    %459 = vector.broadcast %458 : f32 to vector<16x16xf32>
    %460 = arith.mulf %459, %453 : vector<16x16xf32>
    %461 = arith.addf %442, %460 : vector<16x16xf32>
    %462 = vector.extract_strided_slice %452 {offsets = [1, 0], sizes = [16, 16], strides = [1, 1]} : vector<20x16xf32> to vector<16x16xf32>
    %c9_81 = arith.constant 9 : index
    %463 = memref.load %arg1[%c9_81] : memref<50xf32, #tpu.memory_space<smem>>
    %464 = vector.broadcast %463 : f32 to vector<16x16xf32>
    %465 = arith.mulf %464, %462 : vector<16x16xf32>
    %466 = arith.addf %447, %465 : vector<16x16xf32>
    %c34_82 = arith.constant 34 : index
    %467 = memref.load %arg1[%c34_82] : memref<50xf32, #tpu.memory_space<smem>>
    %468 = vector.broadcast %467 : f32 to vector<16x16xf32>
    %469 = arith.mulf %468, %462 : vector<16x16xf32>
    %470 = arith.addf %451, %469 : vector<16x16xf32>
    %471 = vector.extract_strided_slice %452 {offsets = [2, 0], sizes = [16, 16], strides = [1, 1]} : vector<20x16xf32> to vector<16x16xf32>
    %c14_83 = arith.constant 14 : index
    %472 = memref.load %arg1[%c14_83] : memref<50xf32, #tpu.memory_space<smem>>
    %473 = vector.broadcast %472 : f32 to vector<16x16xf32>
    %474 = arith.mulf %473, %471 : vector<16x16xf32>
    %475 = arith.addf %457, %474 : vector<16x16xf32>
    %c39_84 = arith.constant 39 : index
    %476 = memref.load %arg1[%c39_84] : memref<50xf32, #tpu.memory_space<smem>>
    %477 = vector.broadcast %476 : f32 to vector<16x16xf32>
    %478 = arith.mulf %477, %471 : vector<16x16xf32>
    %479 = arith.addf %461, %478 : vector<16x16xf32>
    %480 = vector.extract_strided_slice %452 {offsets = [3, 0], sizes = [16, 16], strides = [1, 1]} : vector<20x16xf32> to vector<16x16xf32>
    %c19_85 = arith.constant 19 : index
    %481 = memref.load %arg1[%c19_85] : memref<50xf32, #tpu.memory_space<smem>>
    %482 = vector.broadcast %481 : f32 to vector<16x16xf32>
    %483 = arith.mulf %482, %480 : vector<16x16xf32>
    %484 = arith.addf %466, %483 : vector<16x16xf32>
    %c44_86 = arith.constant 44 : index
    %485 = memref.load %arg1[%c44_86] : memref<50xf32, #tpu.memory_space<smem>>
    %486 = vector.broadcast %485 : f32 to vector<16x16xf32>
    %487 = arith.mulf %486, %480 : vector<16x16xf32>
    %488 = arith.addf %470, %487 : vector<16x16xf32>
    %489 = vector.extract_strided_slice %452 {offsets = [4, 0], sizes = [16, 16], strides = [1, 1]} : vector<20x16xf32> to vector<16x16xf32>
    %c24_87 = arith.constant 24 : index
    %490 = memref.load %arg1[%c24_87] : memref<50xf32, #tpu.memory_space<smem>>
    %491 = vector.broadcast %490 : f32 to vector<16x16xf32>
    %492 = arith.mulf %491, %489 : vector<16x16xf32>
    %493 = arith.addf %475, %492 : vector<16x16xf32>
    %c49_88 = arith.constant 49 : index
    %494 = memref.load %arg1[%c49_88] : memref<50xf32, #tpu.memory_space<smem>>
    %495 = vector.broadcast %494 : f32 to vector<16x16xf32>
    %496 = arith.mulf %495, %489 : vector<16x16xf32>
    %497 = arith.addf %479, %496 : vector<16x16xf32>
    %498 = arith.addf %493, %484 : vector<16x16xf32>
    %499 = math.tanh %498 : vector<16x16xf32>
    %cst_89 = arith.constant 0.000000e+00 : f32
    %500 = vector.broadcast %cst_89 : f32 to vector<16x16xf32>
    %501 = arith.maximumf %499, %500 : vector<16x16xf32>
    %c1_90 = arith.constant 1 : index
    %c0_91 = arith.constant 0 : index
    %c0_92 = arith.constant 0 : index
    %c0_93 = arith.constant 0 : index
    %502 = vector.load %arg3[%c1_90, %c0_91, %c0_92, %c0_93] : memref<2x2x16x16xf32, #tpu.memory_space<vmem>>, vector<1x1x16x16xf32>
    %503 = vector.shape_cast %502 : vector<1x1x16x16xf32> to vector<16x16xf32>
    %504 = vector.shape_cast %501 : vector<16x16xf32> to vector<1x1x16x16xf32>
    tpu.vector_store %arg3[%c1_90, %c0_91, %c0_92, %c0_93], %504 {strides = array<i32>} : memref<2x2x16x16xf32, #tpu.memory_space<vmem>>, vector<1x1x16x16xf32>,
    %505 = arith.addf %497, %488 : vector<16x16xf32>
    %506 = math.tanh %505 : vector<16x16xf32>
    %cst_94 = arith.constant 0.000000e+00 : f32
    %507 = vector.broadcast %cst_94 : f32 to vector<16x16xf32>
    %508 = arith.maximumf %506, %507 : vector<16x16xf32>
    %c1_95 = arith.constant 1 : index
    %c1_96 = arith.constant 1 : index
    %c0_97 = arith.constant 0 : index
    %c0_98 = arith.constant 0 : index
    %509 = vector.load %arg3[%c1_95, %c1_96, %c0_97, %c0_98] : memref<2x2x16x16xf32, #tpu.memory_space<vmem>>, vector<1x1x16x16xf32>
    %510 = vector.shape_cast %509 : vector<1x1x16x16xf32> to vector<16x16xf32>
    %511 = vector.shape_cast %508 : vector<16x16xf32> to vector<1x1x16x16xf32>
    tpu.vector_store %arg3[%c1_95, %c1_96, %c0_97, %c0_98], %511 {strides = array<i32>} : memref<2x2x16x16xf32, #tpu.memory_space<vmem>>, vector<1x1x16x16xf32>,
    return
  }
  func.func @transform_0(%arg0: i32, %arg1: memref<50xf32, #tpu.memory_space<smem>>) -> (i32, i32, i32) {
    %c0_i32 = arith.constant 0 : i32
    %c0_i32_0 = arith.constant 0 : i32
    %c0_i32_1 = arith.constant 0 : i32
    return %arg0, %c0_i32, %c0_i32_0 : i32, i32, i32
  }
  func.func @transform_1(%arg0: i32, %arg1: memref<50xf32, #tpu.memory_space<smem>>) -> (i32, i32, i32, i32) {
    %c0_i32 = arith.constant 0 : i32
    %c0_i32_0 = arith.constant 0 : i32
    %c0_i32_1 = arith.constant 0 : i32
    %c0_i32_2 = arith.constant 0 : i32
    return %arg0, %c0_i32, %c0_i32_0, %c0_i32_1 : i32, i32, i32, i32
  }
}

</mosaic_0001>

<bundles_post_ra>
// kernel: geneo_layer_forward.1
= control target key start
LH: loop header
LB: loop body
LE: loop exit
PB: predicated region body
PF: predicated region fallthrough
CT: control target
= control target key end

     0   :  { %s2310_s12 = smov [#allocation4]   ;;  %s3771_s0 = inlined_call_operand.vmem [shape: f32[50], index: 0, kind: input, shape index: {}]   ;;  %s3772_s1 = inlined_call_operand.vmem [shape: f32[2,16,16], index: 1, kind: input, shape index: {}]   ;;  %s3773_s2 = inlined_call_operand.hbm [shape: f32[2,2,16,16], index: 2, kind: output, shape index: {}]  }
   0x1   :  { %s8_s11 = sshll.u32 %s3771_s0, 4  ;;  %s9_s11 = int_to_ptr.vmem [resolvable:$true] %s8_s11 }
   0x2   :  { %11 = dma.vmem_to_smem %s9_s11, 16, %s2310_s12, [#allocation3] }
   0x3   :  { %2306 = dma.done.wait [#allocation3], 16 }
   0x4   :  { %2307 = vsyncadd [#allocation3], 4294967280 }
   0x5   :  { %14 = sfence }
   0x6   :  { %v26_v0 = vld [vmem:[%s3772_s1] sm:$0xff]  ;;  %v2138_v1 = vld [vmem:[%s3772_s1 + $0x10] sm:$0xff]  ;;  %s2311_s17 = smov 2  }
   0x7   :  { %30 = vrot.lane.b32.xlu0 %v26_v0, %s2311_s17  ;;  %44 = vrot.lane.b32.xlu1 %v2138_v1, %s2311_s17 }
   0x8   :  { %15 = vsyncpa [#allocation6], 0  ;;  %v27_v2 = vld [vmem:[%s3772_s1 + $0x8] sm:$0xff]  ;;  %v2139_v3 = vld [vmem:[%s3772_s1 + $0x18] sm:$0xff]  ;;  %vm18_vm0 = vcmask 162816   ;;  %v2312_v4 = vmov 0.0  }
   0x9   :  { %19 = vst.msk [vmem:[#allocation2] sm:$0xff] %vm18_vm0, %v2312_v4  ;;  %vm21_vm1 = vcmask 158720   ;;  %s2160_s21 = sld [smem:[#allocation4 + $0x1b]]  ;;  %vm36_vm2 = vcmask 146448   ;;  %s2313_s23 = smov 126   ;;  %vm198_vm3 = vcmask 1040384  }
   0xa   :  { %20 = vst.msk [vmem:[#allocation2 + $0x8] sm:$0xff] %vm18_vm0, %v2312_v4  ;;  %s2159_s22 = sld [smem:[#allocation4 + $0x2]]  ;;  %s2314_s28 = smov 127   ;;  %vm243_vm4 = vcmask 1046528   ;;  %vm336_vm5 = vcmask 1044480   ;;  %vm92_vm6 = vcmask 1045504  }
   0xb   :  { %23 = vst.msk [vmem:[#allocation2 + $0x18] sm:$0xff] %vm18_vm0, %v2312_v4  ;;  %s2161_s1 = sld [smem:[#allocation4 + $0x7]]  ;;  %vm165_vm7 = vcmask 1043456   ;;  %vm1067_vm8 = vcmask 130048  }
   0xc   :  { %24 = vst.msk [vmem:[#allocation2 + $0x20] sm:$0xff] %vm18_vm0, %v2312_v4  ;;  %s2162_s24 = sld [smem:[#allocation4 + $0x20]] }
   0xd   :  { %22 = vst.msk [vmem:[#allocation2 + $0x10] sm:$0xf] %vm21_vm1, %v2312_v4  ;;  %s2149_s25 = sld [smem:[#allocation4 + $0x1]] }
   0xe   :  { %25 = vst.msk [vmem:[#allocation2 + $0x28] sm:$0xf] %vm21_vm1, %v2312_v4  ;;  %s2371_s26 = sld [smem:[#allocation4 + $0x1a]] }
   0xf   :  { %32 = vrot.lane.b32.xlu0 %v27_v2, %s2311_s17  ;;  %46 = vrot.lane.b32.xlu1 %v2139_v3, %s2311_s17  ;;  %v436_v6 = vstv %s2160_s21  ;;  %s2157_s27 = sld [smem:[#allocation4 + $0x15]]  ;;  %s2315_s17 = smov 125  }
  0x10   :  { %v422_v7 = vstv %s2159_s22  ;;  %s2153_s29 = sld [smem:[#allocation4 + $0xb]] }
  0x11   :  { %v450_v13 = vstv %s2161_s1  ;;  %s2158_s30 = sld [smem:[#allocation4 + $0x2e]] }
  0x12   :  { %v470_v18 = vstv %s2162_s24  ;;  %s2152_s3 = sld [smem:[#allocation4 + $0x1f]] }
  0x13   :  { %v193_v22 = vstv %s2149_s25  ;;  %s2154_s4 = sld [smem:[#allocation4 + $0x24]] }
  0x14   :  { %v215_v27 = vstv %s2371_s26  ;;  %s2165_s5 = sld [smem:[#allocation4 + $0x11]] }
  0x15   :  { %v2383_v28 = vstv %s2157_s27  ;;  %s2151_s6 = sld [smem:[#allocation4 + $0x6]]  ;;  %s2316_s27 = smov 124  }
  0x16   :  { %v279_v35 = vstv %s2153_s29  ;;  %s2166_s7 = sld [smem:[#allocation4 + $0x2a]] }
  0x17   :  { %v2397_v36 = vstv %s2158_s30  ;;  %s2155_s8 = sld [smem:[#allocation4 + $0x10]] }
  0x18   :  { %v2406_v43 = vstv %s2152_s3  ;;  %s2156_s9 = sld [smem:[#allocation4 + $0x29]] }
  0x19   :  { %v2417_v45 = vstv %s2154_s4  ;;  %s2164_s10 = sld [smem:[#allocation4 + $0x25]] }
  0x1a   :  { %v2432_v54 = vstv %s2165_s5  ;;  %s2163_s11 = sld [smem:[#allocation4 + $0xc]] }
  0x1b   :  { %v236_v58 = vstv %s2151_s6  ;;  %s2167_s12 = sld [smem:[#allocation4 + $0x16]] }
  0x1c   :  { %v2450_v0 = vstv %s2166_s7  ;;  %s2168_s13 = sld [smem:[#allocation4 + $0x2f]] }
  0x1d   :  { %s2169_s14 = sld [smem:[#allocation4 + $0x3]] }
  0x1e   :  { %s2170_s15 = sld [smem:[#allocation4 + $0x1c]] }
  0x1f   :  { %s2171_s16 = sld [smem:[#allocation4 + $0x8]] }
  0x20   :  { %s2172_s18 = sld [smem:[#allocation4 + $0x21]] }
  0x21   :  { %s2173_s0 = sld [smem:[#allocation4 + $0xd]] }
  0x22   :  { %s2174_s19 = sld [smem:[#allocation4 + $0x26]] }
  0x23   :  { %s2175_s20 = sld [smem:[#allocation4 + $0x12]] }
  0x24   :  { %s2176_s21 = sld [smem:[#allocation4 + $0x2b]] }
  0x25   :  { %s2177_s22 = sld [smem:[#allocation4 + $0x17]] }
  0x26   :  { %s2178_s1 = sld [smem:[#allocation4 + $0x30]] }
  0x27   :  { %s2179_s24 = sld [smem:[#allocation4 + $0x4]] }
  0x28   :  { %s2180_s25 = sld [smem:[#allocation4 + $0x1d]] }
  0x29   :  { %s2181_s26 = sld [smem:[#allocation4 + $0x9]] }
  0x2a   :  { %s2182_s29 = sld [smem:[#allocation4 + $0x22]] }
  0x2b   :  { %s2183_s30 = sld [smem:[#allocation4 + $0xe]] }
  0x2c   :  { %s2184_s3 = sld [smem:[#allocation4 + $0x27]] }
  0x2d   :  { %s2185_s4 = sld [smem:[#allocation4 + $0x13]] }
  0x2e   :  { %s2145_s5 = sld [smem:[#allocation4 + $0xf]] }
  0x2f   :  { %s2146_s6 = sld [smem:[#allocation4 + $0x28]] }
  0x30   :  { %s2186_s7 = sld [smem:[#allocation4 + $0x2c]] }
  0x79   :  { %v31_v5 = vpop.permute.xlu0 %30  ;;  %v45_v2 = vpop.permute.xlu1 %44 }
  0x7a   :  { %37 = vst.msk [vmem:[#allocation2 + $0x2] sm:$0xff] %vm36_vm2, %v31_v5 }
  0x7b   :  { %51 = vst.msk [vmem:[#allocation2 + $0x1a] sm:$0xff] %vm36_vm2, %v45_v2 }
  0x81   :  { %v2351_v8 = vld [vmem:[#allocation2] sm:$0xff]  ;;  %v33_v9 = vpop.permute.xlu0 %32 }
  0x82   :  { %38 = vst.msk [vmem:[#allocation2 + $0xa] sm:$0xff] %vm36_vm2, %v33_v9  ;;  %v437_v10 = vmul.f32 %v436_v6, %v2351_v8  ;;  %v423_v11 = vmul.f32 %v422_v7, %v2351_v8  ;;  %v451_v19 = vmul.f32 %v450_v13, %v2351_v8  ;;  %v194_v23 = vmul.f32 %v193_v22, %v2351_v8 }
  0x83   :  { %v471_v24 = vmul.f32 %v470_v18, %v2351_v8  ;;  %v216_v29 = vmul.f32 %v215_v27, %v2351_v8  ;;  %v259_v46 = vmul.f32 %v2406_v43, %v2351_v8  ;;  %v329_v9 = vstv %s2155_s8  ;;  %s2141_s8 = sld [smem:[#allocation4 + $0x5]] }
  0x84   :  { %441 = vrot.lane.b32.xlu2 %v437_v10, %s2313_s23  ;;  %427 = vrot.lane.b32.xlu0 %v423_v11, %s2313_s23  ;;  %v199_v25 = vrot.slane %v194_v23, 7 }
  0x85   :  { %v220_v32 = vrot.slane %v216_v29, 7  ;;  %v265_v49 = vrot.slane %v259_v46, 1  ;;  %v373_v29 = vmul.f32 %v2383_v28, %v2351_v8  ;;  %v398_v46 = vmul.f32 %v2397_v36, %v2351_v8 }
  0x89   :  { %v2358_v12 = vld [vmem:[#allocation2 + $0x8] sm:$0xff]  ;;  %v2366_v17 = vld [vmem:[#allocation2 + $0x10] sm:$0xf] }
  0x8a   :  { %v438_v14 = vmul.f32 %v436_v6, %v2358_v12  ;;  %v424_v15 = vmul.f32 %v422_v7, %v2358_v12  ;;  %v452_v16 = vmul.f32 %v450_v13, %v2358_v12  ;;  %v472_v20 = vmul.f32 %v470_v18, %v2358_v12 }
  0x8b   :  { %v453_v21 = vmul.f32 %v450_v13, %v2366_v17  ;;  %v473_v26 = vmul.f32 %v470_v18, %v2366_v17  ;;  %v2388_v30 = vmul.f32 %v2383_v28, %v2366_v17  ;;  %v195_v31 = vmul.f32 %v193_v22, %v2358_v12 }
  0x8c   :  { %429 = vrot.lane.b32.xlu1 %v424_v15, %s2313_s23  ;;  %459 = vrot.lane.b32.xlu2 %v452_v16, %s2313_s23  ;;  %v282_v37 = vmul.f32 %v279_v35, %v2366_v17  ;;  %v2402_v38 = vmul.f32 %v2397_v36, %v2366_v17  ;;  %v217_v39 = vmul.f32 %v215_v27, %v2358_v12  ;;  %v47_v16 = vpop.permute.xlu1 %46 }
  0x8d   :  { %443 = vrot.lane.b32.xlu0 %v438_v14, %s2313_s23  ;;  %v382_v33 = vrot.slane %v2388_v30, 3  ;;  %v200_v34 = vrot.slane %v195_v31, 7  ;;  %v2414_v44 = vmul.f32 %v2406_v43, %v2358_v12  ;;  %v307_v47 = vmul.f32 %v2417_v45, %v2366_v17  ;;  %52 = vst.msk [vmem:[#allocation2 + $0x22] sm:$0xff] %vm36_vm2, %v47_v16 }
  0x8e   :  { %v289_v40 = vrot.slane %v282_v37, 1  ;;  %v407_v41 = vrot.slane %v2402_v38, 3  ;;  %v221_v42 = vrot.slane %v217_v39, 7  ;;  %v281_v53 = vmul.f32 %v279_v35, %v2358_v12 }
  0x8f   :  { %v266_v48 = vrot.slane %v2414_v44, 1  ;;  %v314_v50 = vrot.slane %v307_v47, 1  ;;  %v201_v51 = vsel %vm198_vm3, %v199_v25, %v200_v34  ;;  %v2436_v55 = vmul.f32 %v2432_v54, %v2366_v17 }
  0x90   :  { %v287_v56 = vrot.slane %v281_v53, 1  ;;  %v222_v59 = vsel %vm198_vm3, %v220_v32, %v221_v42  ;;  %v238_v60 = vmul.f32 %v236_v58, %v2358_v12  ;;  %v239_v61 = vmul.f32 %v236_v58, %v2366_v17 }
  0x91   :  { %v267_v52 = vsel %vm243_vm4, %v265_v49, %v266_v48  ;;  %v542_v57 = vrot.slane %v2436_v55, 2  ;;  %v306_v63 = vmul.f32 %v2417_v45, %v2358_v12  ;;  %v2454_v1 = vmul.f32 %v2450_v0, %v2366_v17 }
  0x92   :  { %v290_v62 = vsel %vm243_vm4, %v287_v56, %v289_v40  ;;  %v245_v3 = vrot.slane %v238_v60, 1  ;;  %v247_v4 = vrot.slane %v239_v61, 1  ;;  %v331_v11 = vmul.f32 %v329_v9, %v2358_v12 }
  0x93   :  { %v312_v5 = vrot.slane %v306_v63, 1  ;;  %v567_v6 = vrot.slane %v2454_v1, 2  ;;  %v332_v13 = vmul.f32 %v329_v9, %v2366_v17  ;;  %v237_v14 = vmul.f32 %v236_v58, %v2351_v8 }
  0x94   :  { %457 = vrot.lane.b32.xlu1 %v451_v19, %s2313_s23  ;;  %479 = vrot.lane.b32.xlu2 %v472_v20, %s2313_s23  ;;  %v248_v7 = vsel %vm243_vm4, %v245_v3, %v247_v4  ;;  %v280_v15 = vmul.f32 %v279_v35, %v2351_v8  ;;  %v338_v18 = vrot.slane %v331_v11, 3  ;;  %v305_v27 = vmul.f32 %v2417_v45, %v2351_v8 }
  0x95   :  { %461 = vrot.lane.b32.xlu0 %v453_v21, %s2313_s23  ;;  %v315_v10 = vsel %vm243_vm4, %v312_v5, %v314_v50  ;;  %v340_v19 = vrot.slane %v332_v13, 3  ;;  %v244_v20 = vrot.slane %v237_v14, 1  ;;  %v379_v35 = vrot.slane %v373_v29, 3 }
  0x96   :  { %v286_v21 = vrot.slane %v280_v15, 1  ;;  %v351_v37 = vstv %s2156_s9  ;;  %v330_v45 = vmul.f32 %v329_v9, %v2351_v8  ;;  %v534_v11 = vmul.f32 %v2432_v54, %v2358_v12  ;;  %s2763_s9 = sld [smem:[#allocation4 + $0xa]] }
  0x97   :  { %v246_v22 = vsel %vm243_vm4, %v244_v20, %v245_v3  ;;  %v352_v44 = vmul.f32 %v351_v37, %v2351_v8  ;;  %v354_v58 = vmul.f32 %v351_v37, %v2366_v17  ;;  %v490_v3 = vstv %s2163_s11  ;;  %s2784_s11 = sld [smem:[#allocation4 + $0x14]] }
  0x98   :  { %v288_v23 = vsel %vm243_vm4, %v286_v21, %v287_v56  ;;  %v511_v56 = vstv %s2164_s10  ;;  %v493_v9 = vmul.f32 %v490_v3, %v2366_v17  ;;  %v540_v14 = vrot.slane %v534_v11, 2  ;;  %s2774_s10 = sld [smem:[#allocation4 + $0x1e]] }
  0x99   :  { %v358_v49 = vrot.slane %v352_v44, 3  ;;  %v512_v61 = vmul.f32 %v511_v56, %v2351_v8  ;;  %v491_v38 = vmul.f32 %v490_v3, %v2351_v8  ;;  %v558_v29 = vmul.f32 %v2450_v0, %v2351_v8 }
  0x9a   :  { %v500_v13 = vrot.slane %v493_v9, 2  ;;  %v666_v11 = vstv %s2171_s16  ;;  %s2839_s16 = sld [smem:[#allocation4 + $0x23]] }
  0x9b   :  { %v518_v2 = vrot.slane %v512_v61, 2  ;;  %v497_v55 = vrot.slane %v491_v38, 2 }
  0x9c   :  { %477 = vrot.lane.b32.xlu1 %v471_v24, %s2313_s23  ;;  %202 = vrot.lane.b32.xlu2 %v199_v25, %s2314_s28  ;;  %v261_v24 = vmul.f32 %v2406_v43, %v2366_v17  ;;  %v341_v25 = vsel %vm336_vm5, %v338_v18, %v340_v19  ;;  %v559_v19 = vmul.f32 %v2450_v0, %v2358_v12  ;;  %v624_v0 = vstv %s2169_s14  ;;  %s2815_s14 = sld [smem:[#allocation4]] }
  0x9d   :  { %481 = vrot.lane.b32.xlu0 %v473_v26, %s2313_s23  ;;  %v374_v26 = vmul.f32 %v2383_v28, %v2358_v12  ;;  %v399_v28 = vmul.f32 %v2397_v36, %v2358_v12  ;;  %v513_v36 = vmul.f32 %v511_v56, %v2358_v12 }
  0x9e   :  { %v268_v31 = vrot.slane %v261_v24, 1  ;;  %v565_v21 = vrot.slane %v559_v19, 2  ;;  %v582_v24 = vstv %s2167_s12  ;;  %s2792_s12 = sld [smem:[#allocation4 + $0x31]] }
  0x9f   :  { %v519_v63 = vrot.slane %v513_v36, 2  ;;  %v583_v44 = vmul.f32 %v582_v24, %v2351_v8  ;;  %v645_v36 = vstv %s2170_s15  ;;  %s2827_s15 = sld [smem:[#allocation4 + $0x19]] }
  0xa0   :  { %v269_v39 = vsel %vm243_vm4, %v266_v48, %v268_v31  ;;  %v405_v48 = vrot.slane %v399_v28, 3 }
  0xa2   :  { %v408_v15 = vsel %vm336_vm5, %v405_v48, %v407_v41 }
  0xa4   :  { %223 = vrot.lane.b32.xlu1 %v220_v32, %s2314_s28  ;;  %388 = vrot.lane.b32.xlu2 %v382_v33, %s2314_s28  ;;  %v380_v32 = vrot.slane %v374_v26, 3  ;;  %v568_v26 = vsel %vm92_vm6, %v565_v21, %v567_v6 }
  0xa5   :  { %206 = vrot.lane.b32.xlu0 %v200_v34, %s2314_s28  ;;  %v311_v34 = vrot.slane %v305_v27, 1  ;;  %v585_v27 = vmul.f32 %v582_v24, %v2366_v17 }
  0xa6   :  { %v381_v43 = vsel %vm336_vm5, %v379_v35, %v380_v32  ;;  %v383_v4 = vsel %vm336_vm5, %v380_v32, %v382_v33  ;;  %v564_v35 = vrot.slane %v558_v29, 2 }
  0xac   :  { %295 = vrot.lane.b32.xlu1 %v289_v40, %s2314_s28  ;;  %413 = vrot.lane.b32.xlu2 %v407_v41, %s2314_s28  ;;  %v313_v40 = vsel %vm243_vm4, %v311_v34, %v312_v5  ;;  %v533_v41 = vmul.f32 %v2432_v54, %v2351_v8  ;;  %v584_v54 = vmul.f32 %v582_v24, %v2358_v12  ;;  %v592_v34 = vrot.slane %v585_v27, 4 }
  0xad   :  { %227 = vrot.lane.b32.xlu0 %v221_v42, %s2314_s28  ;;  %v353_v42 = vmul.f32 %v351_v37, %v2358_v12  ;;  %v603_v37 = vstv %s2168_s13  ;;  %s2796_s13 = sld [smem:[#allocation4 + $0x18]] }
  0xae   :  { %v604_v28 = vmul.f32 %v603_v37, %v2351_v8 }
  0xaf   :  { %v359_v47 = vrot.slane %v353_v42, 3  ;;  %v605_v42 = vmul.f32 %v603_v37, %v2358_v12 }
  0xb4   :  { %320 = vrot.lane.b32.xlu1 %v314_v50, %s2314_s28  ;;  %204 = vrot.lane.b32.xlu2 %v201_v51, %s2314_s28  ;;  %v337_v50 = vrot.slane %v330_v45, 3  ;;  %v404_v51 = vrot.slane %v398_v46, 3 }
  0xb5   :  { %270 = vrot.lane.b32.xlu0 %v267_v52, %s2314_s28  ;;  %v360_v52 = vsel %vm336_vm5, %v358_v49, %v359_v47  ;;  %v611_v49 = vrot.slane %v605_v42, 4 }
  0xb6   :  { %v339_v53 = vsel %vm336_vm5, %v337_v50, %v338_v18  ;;  %v543_v18 = vsel %vm92_vm6, %v540_v14, %v542_v57  ;;  %v610_v50 = vrot.slane %v604_v28, 4 }
  0xbc   :  { %548 = vrot.lane.b32.xlu1 %v542_v57, %s2313_s23  ;;  %225 = vrot.lane.b32.xlu2 %v222_v59, %s2314_s28  ;;  %v406_v59 = vsel %vm336_vm5, %v404_v51, %v405_v48  ;;  %v625_v48 = vmul.f32 %v624_v0, %v2351_v8  ;;  %v589_v51 = vrot.slane %v583_v44, 4 }
  0xbd   :  { %293 = vrot.lane.b32.xlu0 %v290_v62, %s2314_s28  ;;  %v361_v62 = vrot.slane %v354_v58, 3 }
  0xbf   :  { %v362_v5 = vsel %vm336_vm5, %v359_v47, %v361_v62 }
  0xc4   :  { %573 = vrot.lane.b32.xlu1 %v567_v6, %s2313_s23  ;;  %251 = vrot.lane.b32.xlu2 %v248_v7, %s2314_s28  ;;  %v492_v7 = vmul.f32 %v490_v3, %v2358_v12  ;;  %v590_v6 = vrot.slane %v584_v54, 4 }
  0xc5   :  { %318 = vrot.lane.b32.xlu0 %v315_v10, %s2314_s28  ;;  %v520_v10 = vsel %vm92_vm6, %v518_v2, %v519_v63  ;;  %v646_v2 = vmul.f32 %v645_v36, %v2351_v8 }
  0xc6   :  { %v498_v33 = vrot.slane %v492_v7, 2  ;;  %v591_v58 = vsel %vm165_vm7, %v589_v51, %v590_v6 }
  0xc7   :  { %v650_v7 = vrot.slane %v646_v2, 7 }
  0xc8   :  { %v501_v16 = vsel %vm92_vm6, %v498_v33, %v500_v13  ;;  %v499_v57 = vsel %vm92_vm6, %v497_v55, %v498_v33  ;;  %v668_v33 = vmul.f32 %v666_v11, %v2358_v12  ;;  %v669_v55 = vmul.f32 %v666_v11, %v2366_v17 }
  0xca   :  { %v674_v19 = vrot.slane %v668_v33, 1  ;;  %v676_v54 = vrot.slane %v669_v55, 1 }
  0xcc   :  { %249 = vrot.lane.b32.xlu1 %v246_v22, %s2314_s28  ;;  %291 = vrot.lane.b32.xlu2 %v288_v23, %s2314_s28  ;;  %v539_v22 = vrot.slane %v533_v41, 2 }
  0xcd   :  { %344 = vrot.lane.b32.xlu0 %v341_v25, %s2314_s28  ;;  %v514_v25 = vmul.f32 %v511_v56, %v2366_v17  ;;  %v612_v56 = vsel %vm165_vm7, %v610_v50, %v611_v49 }
  0xce   :  { %v541_v23 = vsel %vm92_vm6, %v539_v22, %v540_v14 }
  0xcf   :  { %v521_v1 = vrot.slane %v514_v25, 2 }
  0xd4   :  { %272 = vrot.lane.b32.xlu1 %v269_v39, %s2314_s28  ;;  %316 = vrot.lane.b32.xlu2 %v313_v40, %s2314_s28  ;;  %v522_v39 = vsel %vm92_vm6, %v519_v63, %v521_v1  ;;  %v566_v40 = vsel %vm92_vm6, %v564_v35, %v565_v21  ;;  %v687_v21 = vstv %s2172_s18  ;;  %v708_v1 = vstv %s2173_s0  ;;  %s2848_s18 = sld [smem:[#allocation4 + $0x1]] }
  0xd5   :  { %384 = vrot.lane.b32.xlu0 %v381_v43, %s2314_s28  ;;  %v593_v43 = vsel %vm165_vm7, %v590_v6, %v592_v34  ;;  %v677_v6 = vsel %vm243_vm4, %v674_v19, %v676_v54  ;;  %v710_v34 = vmul.f32 %v708_v1, %v2358_v12  ;;  %v800_v54 = vstv %s2177_s22  ;;  %s2864_s0 = sld [smem:[#allocation4 + $0x2d]] }
  0xd6   :  { %s2996_s22 = sld [smem:[#allocation4 + $0x1f]] }
  0xd7   :  { %v716_v28 = vrot.slane %v710_v34, 1 }
  0xdc   :  { %363 = vrot.lane.b32.xlu1 %v360_v52, %s2314_s28  ;;  %342 = vrot.lane.b32.xlu2 %v339_v53, %s2314_s28  ;;  %v626_v52 = vmul.f32 %v624_v0, %v2358_v12  ;;  %v629_v53 = vrot.slane %v625_v48, 7  ;;  %v711_v0 = vmul.f32 %v708_v1, %v2366_v17 }
  0xdd   :  { %409 = vrot.lane.b32.xlu0 %v406_v59, %s2314_s28  ;;  %v606_v59 = vmul.f32 %v603_v37, %v2366_v17  ;;  %v709_v37 = vmul.f32 %v708_v1, %v2351_v8 }
  0xde   :  { %v2507_v60 = vpop.permute.xlu2 %441  ;;  %v630_v3 = vrot.slane %v626_v52, 7  ;;  %v718_v50 = vrot.slane %v711_v0, 1 }
  0xdf   :  { %3779 = vst [vmem:[#allocation9_spill] sm:$0xff] %v2507_v60  ;;  %v715_v44 = vrot.slane %v709_v37, 1  ;;  %v803_v37 = vmul.f32 %v800_v54, %v2366_v17 }
  0xe0   :  { %v631_v9 = vsel %vm198_vm3, %v629_v53, %v630_v3 }
  0xe1   :  { %v717_v51 = vsel %vm243_vm4, %v715_v44, %v716_v28 }
  0xe4   :  { %386 = vrot.lane.b32.xlu1 %v383_v4, %s2314_s28  ;;  %365 = vrot.lane.b32.xlu2 %v362_v5, %s2314_s28  ;;  %v613_v4 = vrot.slane %v606_v59, 4  ;;  %v647_v5 = vmul.f32 %v645_v36, %v2358_v12 }
  0xe5   :  { %523 = vrot.lane.b32.xlu0 %v520_v10, %s2313_s23 }
  0xe6   :  { %v2522_v30 = vpop.permute.xlu2 %459  ;;  %v614_v10 = vsel %vm165_vm7, %v611_v49, %v613_v4  ;;  %v733_v49 = vstv %s2174_s19  ;;  %s2904_s19 = sld [smem:[#allocation4 + $0x1a]] }
  0xe7   :  { %3780 = vst [vmem:[#allocation10_spill] sm:$0xff] %v2522_v30  ;;  %v736_v2 = vmul.f32 %v733_v49, %v2366_v17 }
  0xec   :  { %411 = vrot.lane.b32.xlu1 %v408_v15, %s2314_s28  ;;  %504 = vrot.lane.b32.xlu2 %v501_v16, %s2313_s23  ;;  %v667_v15 = vmul.f32 %v666_v11, %v2351_v8  ;;  %v779_v11 = vstv %s2176_s21  ;;  %s2984_s21 = sld [smem:[#allocation4 + $0xb]] }
  0xed   :  { %546 = vrot.lane.b32.xlu0 %v543_v18, %s2313_s23  ;;  %v651_v18 = vrot.slane %v647_v5, 7  ;;  %v719_v5 = vsel %vm243_vm4, %v716_v28, %v718_v50  ;;  %v782_v1 = vmul.f32 %v779_v11, %v2366_v17 }
  0xee   :  { %v2539_v20 = vpop.permute.xlu2 %479  ;;  %v673_v38 = vrot.slane %v667_v15, 1  ;;  %v781_v15 = vmul.f32 %v779_v11, %v2358_v12 }
  0xef   :  { %v652_v41 = vsel %vm198_vm3, %v650_v7, %v651_v18  ;;  %v789_v44 = vrot.slane %v782_v1, 3 }
  0xf0   :  { %v675_v22 = vsel %vm243_vm4, %v673_v38, %v674_v19 }
  0xf4   :  { %502 = vrot.lane.b32.xlu1 %v499_v57, %s2313_s23  ;;  %544 = vrot.lane.b32.xlu2 %v541_v23, %s2313_s23  ;;  %v689_v57 = vmul.f32 %v687_v21, %v2358_v12  ;;  %v690_v23 = vmul.f32 %v687_v21, %v2366_v17 }
  0xf5   :  { %571 = vrot.lane.b32.xlu0 %v568_v26, %s2313_s23 }
  0xf6   :  { %v2554_v31 = vpop.permute.xlu0 %427  ;;  %v2556_v32 = vpop.permute.xlu2 %202  ;;  %v695_v27 = vrot.slane %v689_v57, 1  ;;  %v697_v29 = vrot.slane %v690_v23, 1 }
  0xf7   :  { %3781 = vst [vmem:[#allocation11_spill] sm:$0xff] %v2554_v31 }
  0xf8   :  { %v698_v35 = vsel %vm243_vm4, %v695_v27, %v697_v29 }
  0xfc   :  { %525 = vrot.lane.b32.xlu1 %v522_v39, %s2313_s23  ;;  %569 = vrot.lane.b32.xlu2 %v566_v40, %s2313_s23  ;;  %v688_v39 = vmul.f32 %v687_v21, %v2351_v8 }
  0xfd   :  { %596 = vrot.lane.b32.xlu0 %v593_v43, %s2313_s23 }
  0xfe   :  { %v2567_v45 = vpop.permute.xlu1 %429  ;;  %v2569_v46 = vpop.permute.xlu2 %388  ;;  %v694_v48 = vrot.slane %v688_v39, 1 }
  0xff   :  { %3782 = vst [vmem:[#allocation12_spill] sm:$0xff] %v2569_v46  ;;  %v2571_v47 = vpop.permute.xlu0 %443 }
 0x100   :  { %3783 = vst [vmem:[#allocation13_spill] sm:$0xff] %v2571_v47  ;;  %v696_v52 = vsel %vm243_vm4, %v694_v48, %v695_v27 }
 0x104   :  { %615 = vrot.lane.b32.xlu1 %v612_v56, %s2313_s23  ;;  %594 = vrot.lane.b32.xlu2 %v591_v58, %s2313_s23  ;;  %v734_v56 = vmul.f32 %v733_v49, %v2351_v8 }
 0x105   :  { %632 = vrot.lane.b32.xlu0 %v629_v53, %s2315_s17  ;;  %v735_v53 = vmul.f32 %v733_v49, %v2358_v12 }
 0x106   :  { %v2581_v61 = vpop.permute.xlu1 %457  ;;  %v2583_v62 = vpop.permute.xlu2 %413  ;;  %v740_v4 = vrot.slane %v734_v56, 1 }
 0x107   :  { %v2585_v63 = vpop.permute.xlu0 %461 }
 0x108   :  { %3784 = vst [vmem:[#allocation14_spill] sm:$0xff] %v2585_v63 }
 0x10c   :  { %634 = vrot.lane.b32.xlu1 %v631_v9, %s2315_s17  ;;  %617 = vrot.lane.b32.xlu2 %v614_v10, %s2313_s23  ;;  %v743_v9 = vrot.slane %v736_v2, 1 }
 0x10d   :  { %653 = vrot.lane.b32.xlu0 %v650_v7, %s2315_s17  ;;  %v758_v7 = vstv %s2175_s20  ;;  %s2957_s20 = sld [smem:[#allocation4 + $0x6]] }
 0x10e   :  { %v2595_v13 = vpop.permute.xlu1 %477  ;;  %v2597_v14 = vpop.permute.xlu2 %204  ;;  %v760_v33 = vmul.f32 %v758_v7, %v2358_v12 }
 0x10f   :  { %3785 = vst [vmem:[#allocation15_spill] sm:$0xff] %v2597_v14  ;;  %v2600_v16 = vpop.permute.xlu0 %481 }
 0x110   :  { %v766_v55 = vrot.slane %v760_v33, 3 }
 0x114   :  { %655 = vrot.lane.b32.xlu1 %v652_v41, %s2315_s17  ;;  %636 = vrot.lane.b32.xlu2 %v630_v3, %s2315_s17  ;;  %v741_v3 = vrot.slane %v735_v53, 1  ;;  %v780_v41 = vmul.f32 %v779_v11, %v2351_v8  ;;  %v825_v53 = vstv %s2178_s1  ;;  %s3025_s1 = sld [smem:[#allocation4 + $0x24]] }
 0x115   :  { %678 = vrot.lane.b32.xlu0 %v675_v22, %s2315_s17  ;;  %v787_v22 = vrot.slane %v781_v15, 3  ;;  %v827_v2 = vmul.f32 %v825_v53, %v2358_v12 }
 0x116   :  { %v2610_v24 = vpop.permute.xlu1 %223  ;;  %v2612_v25 = vpop.permute.xlu2 %225  ;;  %v742_v10 = vsel %vm243_vm4, %v740_v4, %v741_v3  ;;  %v786_v23 = vrot.slane %v780_v41, 3  ;;  %v744_v29 = vsel %vm243_vm4, %v741_v3, %v743_v9  ;;  %v828_v3 = vmul.f32 %v825_v53, %v2366_v17 }
 0x117   :  { %v2614_v26 = vpop.permute.xlu0 %206  ;;  %v801_v4 = vmul.f32 %v800_v54, %v2351_v8  ;;  %v826_v41 = vmul.f32 %v825_v53, %v2351_v8  ;;  %v898_v53 = vstv %s2182_s29  ;;  %s2207_s29 = sld [smem:[#allocation4 + $0x2e]] }
 0x118   :  { %3786 = vst [vmem:[#allocation16_spill] sm:$0xff] %v2614_v26  ;;  %v788_v34 = vsel %vm336_vm5, %v786_v23, %v787_v22  ;;  %v835_v11 = vrot.slane %v828_v3, 3  ;;  %v899_v3 = vmul.f32 %v898_v53, %v2351_v8 }
 0x119   :  { %v807_v33 = vrot.slane %v801_v4, 3  ;;  %v832_v23 = vrot.slane %v826_v41, 3  ;;  %v918_v4 = vstv %s2183_s30  ;;  %s3149_s30 = sld [smem:[#allocation4 + $0x2]] }
 0x11c   :  { %680 = vrot.lane.b32.xlu1 %v677_v6, %s2315_s17  ;;  %657 = vrot.lane.b32.xlu2 %v651_v18, %s2315_s17  ;;  %v759_v18 = vmul.f32 %v758_v7, %v2351_v8  ;;  %v761_v6 = vmul.f32 %v758_v7, %v2366_v17 }
 0x11d   :  { %701 = vrot.lane.b32.xlu0 %v698_v35, %s2315_s17  ;;  %v802_v35 = vmul.f32 %v800_v54, %v2358_v12  ;;  %v850_v54 = vstv %s2179_s24  ;;  %s2204_s24 = sld [smem:[#allocation4 + $0x10]] }
 0x11e   :  { %v2624_v40 = vpop.permute.xlu1 %295  ;;  %v2626_v42 = vpop.permute.xlu2 %251  ;;  %v765_v57 = vrot.slane %v759_v18, 3  ;;  %v768_v48 = vrot.slane %v761_v6, 3 }
 0x11f   :  { %3787 = vst [vmem:[#allocation17_spill] sm:$0xff] %v2624_v40  ;;  %v2628_v43 = vpop.permute.xlu0 %227  ;;  %v808_v49 = vrot.slane %v802_v35, 3  ;;  %v864_v35 = vstv %s2180_s25  ;;  %v2803_v40 = vstv %s2141_s8  ;;  %s2205_s25 = sld [smem:[#allocation4 + $0x29]] }
 0x120   :  { %v767_v27 = vsel %vm336_vm5, %v765_v57, %v766_v55  ;;  %3805 = vst [vmem:[#allocation35_spill] sm:$0xff] %v2803_v40  ;;  %v70_v26 = vmul.f32 %v2803_v40, %v2351_v8  ;;  %s3227_s8 = sld [smem:[#allocation4 + $0x2a]] }
 0x121   :  { %v809_v15 = vsel %vm336_vm5, %v807_v33, %v808_v49 }
 0x124   :  { %720 = vrot.lane.b32.xlu1 %v717_v51, %s2315_s17  ;;  %699 = vrot.lane.b32.xlu2 %v696_v52, %s2315_s17  ;;  %v790_v51 = vsel %vm336_vm5, %v787_v22, %v789_v44  ;;  %v769_v52 = vsel %vm336_vm5, %v766_v55, %v768_v48  ;;  %v865_v44 = vmul.f32 %v864_v35, %v2351_v8 }
 0x125   :  { %724 = vrot.lane.b32.xlu0 %v718_v50, %s2315_s17  ;;  %v810_v50 = vrot.slane %v803_v37, 3  ;;  %v878_v37 = vstv %s2181_s26  ;;  %v851_v48 = vmul.f32 %v850_v54, %v2351_v8  ;;  %s2206_s26 = sld [smem:[#allocation4 + $0x15]] }
 0x126   :  { %v2638_v58 = vpop.permute.xlu1 %320  ;;  %v2640_v59 = vpop.permute.xlu2 %291 }
 0x127   :  { %v2642_v36 = vpop.permute.xlu0 %270  ;;  %v811_v56 = vsel %vm336_vm5, %v808_v49, %v810_v50  ;;  %v879_v49 = vmul.f32 %v878_v37, %v2351_v8 }
 0x12c   :  { %745 = vrot.lane.b32.xlu1 %v742_v10, %s2315_s17  ;;  %722 = vrot.lane.b32.xlu2 %v719_v5, %s2315_s17  ;;  %v833_v10 = vrot.slane %v827_v2, 3  ;;  %v866_v2 = vmul.f32 %v864_v35, %v2358_v12  ;;  %v921_v35 = vmul.f32 %v918_v4, %v2366_v17 }
 0x12d   :  { %749 = vrot.lane.b32.xlu0 %v743_v9, %s2315_s17 }
 0x12e   :  { %v2653_v19 = vpop.permute.xlu1 %548  ;;  %v2655_v38 = vpop.permute.xlu2 %316  ;;  %v836_v18 = vsel %vm336_vm5, %v833_v10, %v835_v11 }
 0x12f   :  { %3788 = vst [vmem:[#allocation18_spill] sm:$0xff] %v2653_v19  ;;  %v2658_v21 = vpop.permute.xlu0 %293 }
 0x130   :  { %3789 = vst [vmem:[#allocation19_spill] sm:$0xff] %v2658_v21 }
 0x134   :  { %770 = vrot.lane.b32.xlu1 %v767_v27, %s2315_s17  ;;  %747 = vrot.lane.b32.xlu2 %v744_v29, %s2315_s17  ;;  %v852_v27 = vmul.f32 %v850_v54, %v2358_v12  ;;  %v834_v29 = vsel %vm336_vm5, %v832_v23, %v833_v10  ;;  %v920_v10 = vmul.f32 %v918_v4, %v2358_v12 }
 0x135   :  { %791 = vrot.lane.b32.xlu0 %v788_v34, %s2315_s17  ;;  %v900_v54 = vmul.f32 %v898_v53, %v2358_v12 }
 0x136   :  { %v2670_v39 = vpop.permute.xlu1 %573  ;;  %v2672_v0 = vpop.permute.xlu2 %342  ;;  %v926_v41 = vrot.slane %v920_v10, 2 }
 0x137   :  { %3790 = vst [vmem:[#allocation20_spill] sm:$0xff] %v2670_v39  ;;  %v2674_v28 = vpop.permute.xlu0 %318  ;;  %v3778_v39 = vstv %s2827_s15 }
 0x13c   :  { %793 = vrot.lane.b32.xlu1 %v790_v51, %s2315_s17  ;;  %772 = vrot.lane.b32.xlu2 %v769_v52, %s2315_s17 }
 0x13d   :  { %814 = vrot.lane.b32.xlu0 %v811_v56, %s2315_s17  ;;  %v880_v56 = vmul.f32 %v878_v37, %v2358_v12 }
 0x13e   :  { %v2685_v5 = vpop.permute.xlu1 %249  ;;  %v2687_v7 = vpop.permute.xlu2 %365 }
 0x13f   :  { %3791 = vst [vmem:[#allocation21_spill] sm:$0xff] %v2687_v7  ;;  %v2689_v9 = vpop.permute.xlu0 %344 }
 0x144   :  { %816 = vrot.lane.b32.xlu1 %v810_v50, %s2315_s17  ;;  %812 = vrot.lane.b32.xlu2 %v809_v15, %s2315_s17  ;;  %v919_v15 = vmul.f32 %v918_v4, %v2351_v8 }
 0x145   :  { %839 = vrot.lane.b32.xlu0 %v836_v18, %s2315_s17 }
 0x146   :  { %v2697_v55 = vpop.permute.xlu1 %272  ;;  %v2699_v22 = vpop.permute.xlu2 %504  ;;  %v925_v23 = vrot.slane %v919_v15, 2  ;;  %v901_v15 = vmul.f32 %v898_v53, %v2366_v17 }
 0x147   :  { %3792 = vst [vmem:[#allocation22_spill] sm:$0xff] %v2697_v55  ;;  %v2701_v57 = vpop.permute.xlu0 %384 }
 0x14c   :  { %841 = vrot.lane.b32.xlu1 %v835_v11, %s2315_s17  ;;  %837 = vrot.lane.b32.xlu2 %v834_v29, %s2315_s17  ;;  %v939_v29 = vstv %s2184_s3  ;;  %s3151_s3 = sld [smem:[#allocation4 + $0x1b]] }
 0x14d   :  { %857 = vrot.lane.b32.xlu0 %v852_v27, %s2316_s27  ;;  %v881_v27 = vmul.f32 %v878_v37, %v2366_v17 }
 0x14e   :  { %v2708_v1 = vpop.permute.xlu1 %363  ;;  %v2710_v6 = vpop.permute.xlu2 %544 }
 0x14f   :  { %3793 = vst [vmem:[#allocation23_spill] sm:$0xff] %v2708_v1  ;;  %v2712_v34 = vpop.permute.xlu0 %409 }
 0x154   :  { %869 = vrot.lane.b32.xlu1 %v865_v44, %s2316_s27  ;;  %855 = vrot.lane.b32.xlu2 %v851_v48, %s2316_s27  ;;  %v927_v44 = vsel %vm92_vm6, %v925_v23, %v926_v41  ;;  %v941_v48 = vmul.f32 %v939_v29, %v2358_v12  ;;  %v960_v23 = vstv %s2185_s4  ;;  %s2210_s4 = sld [smem:[#allocation4 + $0x7]] }
 0x155   :  { %885 = vrot.lane.b32.xlu0 %v879_v49, %s2316_s27  ;;  %v942_v49 = vmul.f32 %v939_v29, %v2366_v17  ;;  %v961_v53 = vmul.f32 %v960_v23, %v2351_v8 }
 0x156   :  { %v2720_v50 = vpop.permute.xlu1 %386  ;;  %v2722_v51 = vpop.permute.xlu2 %569  ;;  %v947_v4 = vrot.slane %v941_v48, 2 }
 0x157   :  { %3794 = vst [vmem:[#allocation24_spill] sm:$0xff] %v2720_v50  ;;  %v2724_v52 = vpop.permute.xlu0 %523  ;;  %v949_v10 = vrot.slane %v942_v49, 2  ;;  %v2772_v49 = vstv %s2145_s5  ;;  %v967_v19 = vrot.slane %v961_v53, 2  ;;  %s2211_s5 = sld [smem:[#allocation4 + $0x20]] }
 0x158   :  { %3795 = vst [vmem:[#allocation25_spill] sm:$0xff] %v2722_v51 }
 0x159   :  { %3796 = vst [vmem:[#allocation26_spill] sm:$0xff] %v2724_v52  ;;  %v1010_v52 = vstv %s2796_s13  ;;  %s3298_s13 = sld [smem:[#allocation4 + $0x28]] }
 0x15a   :  { %3803 = vst [vmem:[#allocation33_spill] sm:$0xff] %v2772_v49 }
 0x15c   :  { %887 = vrot.lane.b32.xlu1 %v880_v56, %s2316_s27  ;;  %871 = vrot.lane.b32.xlu2 %v866_v2, %s2316_s27 }
 0x15d   :  { %905 = vrot.lane.b32.xlu0 %v899_v3, %s2316_s27  ;;  %v928_v3 = vrot.slane %v921_v35, 2  ;;  %v940_v35 = vmul.f32 %v939_v29, %v2351_v8 }
 0x15e   :  { %v2733_v11 = vpop.permute.xlu1 %411  ;;  %v2735_v33 = vpop.permute.xlu2 %594 }
 0x15f   :  { %3797 = vst [vmem:[#allocation27_spill] sm:$0xff] %v2735_v33  ;;  %v2738_v18 = vpop.permute.xlu0 %546  ;;  %v946_v63 = vrot.slane %v940_v35, 2  ;;  %v2846_v33 = vstv %s2784_s11  ;;  %s2217_s11 = sld [smem:[#allocation4 + $0x2f]] }
 0x160   :  { %3798 = vst [vmem:[#allocation28_spill] sm:$0xff] %v2738_v18 }
 0x161   :  { %v948_v46 = vsel %vm92_vm6, %v946_v63, %v947_v4 }
 0x164   :  { %907 = vrot.lane.b32.xlu1 %v900_v54, %s2316_s27  ;;  %889 = vrot.lane.b32.xlu2 %v881_v27, %s2316_s27  ;;  %v929_v54 = vsel %vm92_vm6, %v926_v41, %v928_v3  ;;  %v2758_v27 = vmul.f32 %v960_v23, %v2358_v12 }
 0x165   :  { %930 = vrot.lane.b32.xlu0 %v927_v44, %s2316_s27  ;;  %v950_v44 = vsel %vm92_vm6, %v947_v4, %v949_v10  ;;  %v963_v10 = vmul.f32 %v960_v23, %v2366_v17  ;;  %v121_v23 = vmul.f32 %v2772_v49, %v2351_v8 }
 0x166   :  { %v2749_v56 = vpop.permute.xlu1 %502  ;;  %v2751_v2 = vpop.permute.xlu2 %617 }
 0x167   :  { %3799 = vst [vmem:[#allocation29_spill] sm:$0xff] %v2749_v56  ;;  %v2753_v37 = vpop.permute.xlu0 %571  ;;  %v970_v18 = vrot.slane %v963_v10, 2  ;;  %v2811_v10 = vstv %s2763_s9  ;;  %s3253_s9 = sld [smem:[#allocation4 + $0x16]] }
 0x168   :  { %3800 = vst [vmem:[#allocation30_spill] sm:$0xff] %v2751_v2 }
 0x16c   :  { %932 = vrot.lane.b32.xlu1 %v929_v54, %s2316_s27  ;;  %909 = vrot.lane.b32.xlu2 %v901_v15, %s2316_s27  ;;  %v968_v15 = vrot.slane %v2758_v27, 2  ;;  %v2782_v54 = vmul.f32 %v2772_v49, %v2358_v12  ;;  %v985_v27 = vstv %s2186_s7  ;;  %s2213_s7 = sld [smem:[#allocation4 + $0x25]] }
 0x16d   :  { %953 = vrot.lane.b32.xlu0 %v950_v44, %s2316_s27  ;;  %v139_v44 = vstv %s2146_s6  ;;  %v2801_v50 = vmul.f32 %v985_v27, %v2358_v12  ;;  %v986_v63 = vmul.f32 %v985_v27, %v2351_v8  ;;  %s2212_s6 = sld [smem:[#allocation4 + $0xc]] }
 0x16e   :  { %v2768_v48 = vpop.permute.xlu1 %525  ;;  %v2770_v41 = vpop.permute.xlu2 %636  ;;  %3804 = vst [vmem:[#allocation34_spill] sm:$0xff] %v2782_v54  ;;  %v2787_v29 = vmul.f32 %v139_v44, %v2358_v12  ;;  %v969_v30 = vsel %vm92_vm6, %v967_v19, %v968_v15  ;;  %v127_v19 = vrot.slane %v121_v23, 2  ;;  %v988_v23 = vmul.f32 %v985_v27, %v2366_v17 }
 0x16f   :  { %3801 = vst [vmem:[#allocation31_spill] sm:$0xff] %v2768_v48  ;;  %v2776_v3 = vpop.permute.xlu0 %596  ;;  %v993_v53 = vrot.slane %v2801_v50, 2  ;;  %v3809_v14 = vrot.slane %v2782_v54, 2  ;;  %v140_v2 = vmul.f32 %v139_v44, %v2351_v8  ;;  %v77_v48 = vstv %s2774_s10  ;;  %s3255_s10 = sld [smem:[#allocation4 + $0xf]] }
 0x170   :  { %3802 = vst [vmem:[#allocation32_spill] sm:$0xff] %v2770_v41  ;;  %v2790_v41 = vmul.f32 %v139_v44, %v2366_v17  ;;  %v147_v35 = vrot.slane %v2787_v29, 2  ;;  %v992_v27 = vrot.slane %v986_v63, 2  ;;  %v1031_v54 = vstv %s2792_s12  ;;  %s3281_s12 = sld [smem:[#allocation4 + $0x5]] }
 0x171   :  { %v129_v49 = vsel %vm92_vm6, %v127_v19, %v3809_v14  ;;  %v995_v14 = vrot.slane %v988_v23, 2  ;;  %v971_v44 = vsel %vm92_vm6, %v968_v15, %v970_v18  ;;  %v2856_v19 = vmul.f32 %v1010_v52, %v2358_v12  ;;  %v2875_v15 = vld [vmem:[#allocation2] sm:$0xff] }
 0x172   :  { %v3810_v47 = vrot.slane %v2790_v41, 2  ;;  %v994_v8 = vsel %vm92_vm6, %v992_v27, %v993_v53  ;;  %v146_v7 = vrot.slane %v140_v2, 2  ;;  %v161_v63 = vmul.f32 %v2846_v33, %v2366_v17 }
 0x173   :  { %v2873_v2 = vadd.f32 %v129_v49, %v70_v26  ;;  %v57_v26 = vstv %s2815_s14  ;;  %v1032_v60 = vmul.f32 %v2875_v15, %v1031_v54  ;;  %v1018_v55 = vrot.slane %v2856_v19, 4  ;;  %s3307_s14 = sld [smem:[#allocation4 + $0x1e]] }
 0x174   :  { %972 = vrot.lane.b32.xlu1 %v969_v30, %s2316_s27  ;;  %951 = vrot.lane.b32.xlu2 %v948_v46, %s2316_s27  ;;  %v2819_v30 = vmul.f32 %v2811_v10, %v2358_v12  ;;  %v88_v46 = vmul.f32 %v2811_v10, %v2366_v17  ;;  %v1011_v17 = vmul.f32 %v2875_v15, %v1010_v52  ;;  %v169_v1 = vrot.slane %v161_v63, 4  ;;  %v2911_v63 = vld [vmem:[#allocation2 + $0x20] sm:$0xff] }
 0x175   :  { %976 = vrot.lane.b32.xlu0 %v970_v18, %s2316_s27  ;;  %v148_v27 = vsel %vm92_vm6, %v146_v7, %v147_v35  ;;  %v996_v19 = vsel %vm92_vm6, %v993_v53, %v995_v14 }
 0x176   :  { %v2823_v4 = vpop.permute.xlu1 %615  ;;  %v2825_v29 = vpop.permute.xlu2 %657  ;;  %v96_v40 = vrot.slane %v88_v46, 2  ;;  %v2868_v46 = vld [vmem:[#allocation2 + $0x8] sm:$0xff]  ;;  %v3813_v31 = vrot.slane %v2819_v30, 2 }
 0x177   :  { %3806 = vst [vmem:[#allocation36_spill] sm:$0xff] %v2823_v4  ;;  %v2829_v21 = vpop.permute.xlu0 %632  ;;  %v150_v4 = vsel %vm92_vm6, %v147_v35, %v3810_v47  ;;  %v2860_v47 = vmul.f32 %v2846_v33, %v2358_v12  ;;  %v2871_v18 = vmul.f32 %v2868_v46, %v1031_v54  ;;  %v78_v12 = vmul.f32 %v2875_v15, %v77_v48 }
 0x178   :  { %3807 = vst [vmem:[#allocation37_spill] sm:$0xff] %v2825_v29  ;;  %v79_v23 = vmul.f32 %v2868_v46, %v77_v48  ;;  %v59_v29 = vmul.f32 %v2868_v46, %v57_v26  ;;  %v97_v7 = vsel %vm92_vm6, %v3813_v31, %v96_v40  ;;  %v86_v31 = vmul.f32 %v2875_v15, %v2811_v10 }
 0x179   :  { %3808 = vst [vmem:[#allocation38_spill] sm:$0xff] %v2829_v21  ;;  %v1227_v21 = vstv %s2848_s18  ;;  %v1038_v40 = vrot.slane %v1032_v60, 4  ;;  %v3814_v10 = vrot.slane %v2790_v41, 2  ;;  %s3323_s18 = sld [smem:[#allocation4 + $0x3]] }
 0x17a   :  { %v155_v56 = vadd.f32 %v150_v4, %v79_v23  ;;  %v103_v4 = vstv %s2839_s16  ;;  %v1017_v23 = vrot.slane %v1011_v17, 4  ;;  %v101_v51 = vadd.f32 %v97_v7, %v59_v29  ;;  %s3319_s16 = sld [smem:[#allocation4 + $0xa]] }
 0x17b   :  { %v176_v29 = vstv %s2864_s0  ;;  %v2925_v53 = vmul.f32 %v1227_v21, %v2911_v63  ;;  %v104_v41 = vmul.f32 %v2875_v15, %v103_v4  ;;  %s3341_s0 = sld [smem:[#allocation4 + $0x2d]] }
 0x17c   :  { %997 = vrot.lane.b32.xlu1 %v994_v8, %s2316_s27  ;;  %974 = vrot.lane.b32.xlu2 %v971_v44, %s2316_s27  ;;  %v2882_v8 = vld [vmem:[#allocation2 + $0x10] sm:$0xf] }
 0x17d   :  { %1001 = vrot.lane.b32.xlu0 %v995_v14, %s2316_s27  ;;  %v80_v44 = vmul.f32 %v2882_v8, %v77_v48  ;;  %v2909_v48 = vld [vmem:[#allocation2 + $0x18] sm:$0xff]  ;;  %v1013_v17 = vmul.f32 %v2882_v8, %v1010_v52 }
 0x17e   :  { %v2886_v49 = vpop.permute.xlu1 %634  ;;  %v2888_v50 = vpop.permute.xlu2 %699  ;;  %v2922_v60 = vmul.f32 %v1227_v21, %v2909_v48  ;;  %v64_v21 = vmul.f32 %v2875_v15, %v3778_v39 }
 0x17f   :  { %3811 = vst [vmem:[#allocation39_spill] sm:$0xff] %v2886_v49  ;;  %v2895_v35 = vpop.permute.xlu0 %653  ;;  %v1039_v49 = vrot.slane %v2871_v18, 4 }
 0x180   :  { %3812 = vst [vmem:[#allocation40_spill] sm:$0xff] %v2888_v50  ;;  %v233_v50 = vadd.f32 %v2612_v25, %v155_v56  ;;  %v1019_v25 = vsel %vm165_vm7, %v1017_v23, %v1018_v55  ;;  %v1034_v56 = vmul.f32 %v2882_v8, %v1031_v54  ;;  %v3815_v54 = vrot.slane %v2860_v47, 4 }
 0x181   :  { %v1040_v7 = vsel %vm165_vm7, %v1038_v40, %v1039_v49  ;;  %v105_v23 = vmul.f32 %v2868_v46, %v103_v4  ;;  %v2936_v40 = vmul.f32 %v2868_v46, %v176_v29 }
 0x182   :  { %v326_v18 = vadd.f32 %v2674_v28, %v233_v50  ;;  %v154_v28 = vadd.f32 %v148_v27, %v78_v12  ;;  %v156_v50 = vadd.f32 %v3814_v10, %v80_v44  ;;  %v170_v52 = vsel %vm165_vm7, %v3815_v54, %v169_v1 }
 0x183   :  { %v174_v44 = vadd.f32 %v170_v52, %v101_v51  ;;  %v2945_v1 = vmul.f32 %v2875_v15, %v176_v29  ;;  %v1232_v10 = vrot.slane %v2922_v60, 7  ;;  %v1233_v54 = vrot.slane %v2925_v53, 7 }
 0x184   :  { %1022 = vrot.lane.b32.xlu1 %v1019_v25, %s2316_s27  ;;  %999 = vrot.lane.b32.xlu2 %v996_v19, %s2316_s27  ;;  %v419_v14 = vadd.f32 %v2733_v11, %v326_v18  ;;  %v1041_v19 = vrot.slane %v1034_v56, 4  ;;  %v1020_v18 = vrot.slane %v1013_v17, 4  ;;  %v93_v25 = vrot.slane %v86_v31, 2 }
 0x185   :  { %1043 = vrot.lane.b32.xlu0 %v1040_v7, %s2316_s27  ;;  %v106_v7 = vmul.f32 %v2882_v8, %v103_v4  ;;  %v256_v39 = vadd.f32 %v2626_v42, %v174_v44  ;;  %v1248_v52 = vstv %s2904_s19  ;;  %v110_v56 = vrot.slane %v104_v41, 2  ;;  %s3355_s19 = sld [smem:[#allocation4 + $0x19]] }
 0x186   :  { %v656_v12 = vpop.permute.xlu1 %655  ;;  %v2942_v27 = vpop.permute.xlu2 %722  ;;  %v487_v51 = vadd.f32 %v2539_v20, %v419_v14  ;;  %v58_v31 = vmul.f32 %v2875_v15, %v57_v26  ;;  %v3818_v4 = vrot.slane %v2819_v30, 2  ;;  %v1021_v20 = vsel %vm165_vm7, %v1018_v55, %v1020_v18 }
 0x187   :  { %3816 = vst [vmem:[#allocation41_spill] sm:$0xff] %v2942_v27  ;;  %v2947_v11 = vpop.permute.xlu0 %678  ;;  %v159_v27 = vmul.f32 %v2875_v15, %v2846_v33  ;;  %v349_v60 = vadd.f32 %v2689_v9, %v256_v39  ;;  %v1042_v33 = vsel %vm165_vm7, %v1039_v49, %v1041_v19  ;;  %v113_v53 = vrot.slane %v106_v7, 2 }
 0x188   :  { %3817 = vst [vmem:[#allocation42_spill] sm:$0xff] %v2947_v11  ;;  %v111_v11 = vrot.slane %v105_v23, 2  ;;  %v95_v17 = vsel %vm92_vm6, %v93_v25, %v3818_v4  ;;  %v579_v42 = vadd.f32 %v2753_v37, %v487_v51  ;;  %v1234_v14 = vsel %vm198_vm3, %v1232_v10, %v1233_v54 }
 0x189   :  { %v2971_v30 = vmul.f32 %v1248_v52, %v2909_v48  ;;  %v2974_v15 = vmul.f32 %v1248_v52, %v2911_v63  ;;  %v184_v39 = vrot.slane %v2936_v40, 4  ;;  %v183_v9 = vrot.slane %v2945_v1, 4 }
 0x18a   :  { %v166_v37 = vrot.slane %v159_v27, 4  ;;  %v663_v26 = vadd.f32 %v656_v12, %v579_v42  ;;  %v112_v55 = vsel %vm92_vm6, %v110_v56, %v111_v11  ;;  %v100_v49 = vadd.f32 %v95_v17, %v58_v31  ;;  %v3007_v42 = vld [vmem:[#allocation2 + $0x28] sm:$0xf] }
 0x18b   :  { %v3819_v23 = vstv %s2827_s15  ;;  %v179_v44 = vmul.f32 %v2882_v8, %v176_v29  ;;  %v211_v40 = vadd.f32 %v2556_v32, %v2873_v2  ;;  %v3820_v12 = vrot.slane %v2860_v47, 4  ;;  %s3313_s15 = sld [smem:[#allocation4 + $0x23]] }
 0x18c   :  { %1045 = vrot.lane.b32.xlu1 %v1042_v33, %s2316_s27  ;;  %1024 = vrot.lane.b32.xlu2 %v1021_v20, %s2316_s27  ;;  %v65_v41 = vmul.f32 %v2868_v46, %v3819_v23  ;;  %v434_v1 = vadd.f32 %v2567_v45, %v349_v60  ;;  %v234_v29 = vadd.f32 %v2628_v43, %v156_v50  ;;  %v1253_v52 = vrot.slane %v2971_v30, 7 }
 0x18d   :  { %1237 = vrot.lane.b32.xlu0 %v1234_v14, %s2314_s28  ;;  %v168_v27 = vsel %vm165_vm7, %v166_v37, %v3820_v12  ;;  %v114_v51 = vsel %vm92_vm6, %v111_v11, %v113_v53  ;;  %v1254_v32 = vrot.slane %v2974_v15, 7  ;;  %v232_v47 = vadd.f32 %v2610_v24, %v154_v28  ;;  %v3824_v12 = vld [vmem:[#allocation23_spill] sm:$0xff] }
 0x18e   :  { %v681_v19 = vpop.permute.xlu1 %680  ;;  %v748_v18 = vpop.permute.xlu2 %747  ;;  %v300_v2 = vadd.f32 %v2640_v59, %v211_v40  ;;  %v509_v45 = vadd.f32 %v2699_v22, %v434_v1  ;;  %v1269_v56 = vstv %s2957_s20  ;;  %v117_v31 = vadd.f32 %v112_v55, %v64_v21  ;;  %v3825_v1 = vld [vmem:[#allocation22_spill] sm:$0xff]  ;;  %s3365_s20 = sld [smem:[#allocation4]] }
 0x18f   :  { %v2992_v25 = vpop.permute.xlu0 %701  ;;  %v2994_v7 = vadd.f32 %v748_v18, %v663_v26  ;;  %v327_v4 = vadd.f32 %v2638_v58, %v234_v29  ;;  %v173_v17 = vadd.f32 %v168_v27, %v100_v49  ;;  %v186_v60 = vrot.slane %v179_v44, 4  ;;  %v3821_v44 = vld [vmem:[#allocation25_spill] sm:$0xff]  ;;  %v3822_v18 = vld [vmem:[#allocation38_spill] sm:$0xff] }
 0x190   :  { %v325_v43 = vadd.f32 %v2655_v38, %v232_v47  ;;  %v393_v50 = vadd.f32 %v2701_v57, %v300_v2  ;;  %v118_v11 = vadd.f32 %v114_v51, %v65_v41  ;;  %v601_v33 = vadd.f32 %v2776_v3, %v509_v45  ;;  %v3826_v51 = vld [vmem:[#allocation11_spill] sm:$0xff] }
 0x191   :  { %v1255_v24 = vsel %vm198_vm3, %v1253_v52, %v1254_v32  ;;  %v3016_v59 = vmul.f32 %v1269_v56, %v2911_v63  ;;  %v1272_v58 = vmul.f32 %v1269_v56, %v3007_v42  ;;  %v185_v38 = vsel %vm165_vm7, %v183_v9, %v184_v39 }
 0x192   :  { %v255_v22 = vadd.f32 %v2685_v5, %v173_v17  ;;  %v418_v57 = vadd.f32 %v2712_v34, %v325_v43  ;;  %v685_v3 = vadd.f32 %v681_v19, %v601_v33  ;;  %v190_v28 = vadd.f32 %v185_v38, %v117_v31 }
 0x193   :  { %v420_v21 = vadd.f32 %v2583_v62, %v327_v4  ;;  %v466_v53 = vadd.f32 %v2581_v61, %v393_v50  ;;  %v1311_v5 = vstv %s2984_s21  ;;  %v1290_v34 = vstv %s2996_s22  ;;  %s3377_s21 = sld [smem:[#allocation4 + $0x14]] }
 0x194   :  { %1239 = vrot.lane.b32.xlu1 %v1233_v54, %s2314_s28  ;;  %1235 = vrot.lane.b32.xlu2 %v1232_v10, %s2314_s28  ;;  %v187_v10 = vsel %vm165_vm7, %v184_v39, %v186_v60  ;;  %v1277_v9 = vrot.slane %v3016_v59, 1  ;;  %v1279_v37 = vrot.slane %v1272_v58, 1  ;;  %v276_v62 = vadd.f32 %v2642_v36, %v190_v28  ;;  %v3829_v58 = vld [vmem:[#allocation9_spill] sm:$0xff]  ;;  %s3385_s22 = sld [smem:[#allocation4 + $0x1c]] }
 0x195   :  { %1258 = vrot.lane.b32.xlu0 %v1255_v24, %s2314_s28  ;;  %v191_v15 = vadd.f32 %v187_v10, %v118_v11  ;;  %v348_v39 = vadd.f32 %v2672_v0, %v255_v22  ;;  %v553_v26 = vadd.f32 %v2710_v6, %v466_v53  ;;  %v486_v55 = vadd.f32 %v2595_v13, %v418_v57  ;;  %v3823_v6 = vld [vmem:[#allocation20_spill] sm:$0xff]  ;;  %v3832_v53 = vld [vmem:[#allocation27_spill] sm:$0xff] }
 0x196   :  { %v721_v54 = vpop.permute.xlu1 %720  ;;  %v773_v20 = vpop.permute.xlu2 %772  ;;  %v488_v61 = vadd.f32 %v2600_v16, %v420_v21  ;;  %v1312_v49 = vmul.f32 %v1311_v5, %v2909_v48  ;;  %v1291_v23 = vmul.f32 %v1290_v34, %v2909_v48  ;;  %v3043_v41 = vmul.f32 %v1290_v34, %v2911_v63  ;;  %v3831_v21 = vld [vmem:[#allocation26_spill] sm:$0xff] }
 0x197   :  { %v3028_v14 = vpop.permute.xlu0 %724  ;;  %v3030_v30 = vadd.f32 %v773_v20, %v685_v3  ;;  %v578_v19 = vadd.f32 %v3821_v44, %v486_v55  ;;  %v641_v40 = vadd.f32 %v3822_v18, %v553_v26  ;;  %v1313_v36 = vmul.f32 %v1311_v5, %v2911_v63  ;;  %v3830_v3 = vld [vmem:[#allocation21_spill] sm:$0xff]  ;;  %v3833_v26 = vld [vmem:[#allocation36_spill] sm:$0xff] }
 0x198   :  { %v1270_v0 = vmul.f32 %v1269_v56, %v2909_v48  ;;  %v580_v13 = vadd.f32 %v3823_v6, %v488_v61  ;;  %v369_v16 = vadd.f32 %v3824_v12, %v276_v62  ;;  %v1280_v27 = vsel %vm243_vm4, %v1277_v9, %v1279_v37  ;;  %v3827_v56 = vld [vmem:[#allocation37_spill] sm:$0xff] }
 0x199   :  { %v277_v29 = vadd.f32 %v3825_v1, %v191_v15  ;;  %v433_v47 = vadd.f32 %v3826_v51, %v348_v39  ;;  %v662_v2 = vadd.f32 %v2895_v35, %v578_v19  ;;  %v729_v45 = vadd.f32 %v721_v54, %v641_v40  ;;  %v3836_v19 = vld [vmem:[#allocation40_spill] sm:$0xff] }
 0x19a   :  { %v664_v31 = vadd.f32 %v3827_v56, %v580_v13  ;;  %v1297_v60 = vrot.slane %v1291_v23, 1  ;;  %v1298_v43 = vrot.slane %v3043_v41, 1  ;;  %v1336_v50 = vstv %s3025_s1  ;;  %v3834_v23 = vld [vmem:[#allocation13_spill] sm:$0xff]  ;;  %v3835_v41 = vld [vmem:[#allocation42_spill] sm:$0xff]  ;;  %s3423_s1 = sld [smem:[#allocation4 + $0x8]] }
 0x19b   :  { %v1276_v59 = vrot.slane %v1270_v0, 1  ;;  %v447_v35 = vadd.f32 %v3829_v58, %v369_v16  ;;  %v1318_v22 = vrot.slane %v1312_v49, 1  ;;  %v1319_v57 = vrot.slane %v1313_v36, 1  ;;  %v3837_v36 = vld [vmem:[#allocation31_spill] sm:$0xff] }
 0x19c   :  { %1260 = vrot.lane.b32.xlu1 %v1254_v32, %s2314_s28  ;;  %1256 = vrot.lane.b32.xlu2 %v1253_v52, %s2314_s28  ;;  %v3828_v32 = vld [vmem:[#allocation29_spill] sm:$0xff]  ;;  %v370_v28 = vadd.f32 %v3830_v3, %v277_v29  ;;  %v1337_v54 = vmul.f32 %v1336_v50, %v2909_v48  ;;  %v1314_v20 = vmul.f32 %v1311_v5, %v3007_v42  ;;  %v1361_v51 = vstv %s2204_s24  ;;  %s3437_s24 = sld [smem:[#allocation4 + $0x21]] }
 0x19d   :  { %1283 = vrot.lane.b32.xlu0 %v1280_v27, %s2314_s28  ;;  %v508_v11 = vadd.f32 %v3828_v32, %v433_v47  ;;  %v529_v10 = vadd.f32 %v3831_v21, %v447_v35  ;;  %v1299_v37 = vsel %vm243_vm4, %v1297_v60, %v1298_v43  ;;  %v1278_v62 = vsel %vm243_vm4, %v1276_v59, %v1277_v9  ;;  %v3838_v47 = vld [vmem:[#allocation30_spill] sm:$0xff] }
 0x19e   :  { %v746_v4 = vpop.permute.xlu1 %745  ;;  %v813_v17 = vpop.permute.xlu2 %812  ;;  %v1293_v39 = vmul.f32 %v1290_v34, %v3007_v42  ;;  %v1320_v61 = vsel %vm243_vm4, %v1318_v22, %v1319_v57  ;;  %v1338_v49 = vmul.f32 %v1336_v50, %v2911_v63  ;;  %v448_v5 = vadd.f32 %v3834_v23, %v370_v28 }
 0x19f   :  { %v750_v52 = vpop.permute.xlu0 %749  ;;  %v754_v33 = vadd.f32 %v746_v4, %v662_v2  ;;  %v3062_v24 = vadd.f32 %v813_v17, %v729_v45  ;;  %v600_v15 = vadd.f32 %v3832_v53, %v508_v11  ;;  %v621_v55 = vadd.f32 %v3833_v26, %v529_v10 }
 0x1a0   :  { %v3065_v38 = vadd.f32 %v750_v52, %v664_v31  ;;  %v1321_v40 = vrot.slane %v1314_v20, 1  ;;  %v530_v0 = vadd.f32 %v3837_v36, %v448_v5  ;;  %v1300_v16 = vrot.slane %v1293_v39, 1 }
 0x1a1   :  { %v684_v44 = vadd.f32 %v3835_v41, %v600_v15  ;;  %v705_v9 = vadd.f32 %v3836_v19, %v621_v55  ;;  %v1343_v1 = vrot.slane %v1337_v54, 1  ;;  %v1344_v29 = vrot.slane %v1338_v49, 1 }
 0x1a2   :  { %v622_v2 = vadd.f32 %v3838_v47, %v530_v0  ;;  %v1322_v45 = vsel %vm243_vm4, %v1319_v57, %v1321_v40  ;;  %v1301_v56 = vsel %vm243_vm4, %v1298_v43, %v1300_v16  ;;  %v1339_v31 = vmul.f32 %v1336_v50, %v3007_v42 }
 0x1a3   :  { %v1345_v4 = vsel %vm243_vm4, %v1343_v1, %v1344_v29  ;;  %v1362_v17 = vmul.f32 %v1361_v51, %v2909_v48  ;;  %v1363_v60 = vmul.f32 %v1361_v51, %v2911_v63  ;;  %v1382_v22 = vstv %s2205_s25  ;;  %v3839_v1 = vld [vmem:[#allocation33_spill] sm:$0xff]  ;;  %s3534_s25 = sld [smem:[#allocation4 + $0x26]] }
 0x1a4   :  { %1302 = vrot.lane.b32.xlu1 %v1299_v37, %s2314_s28  ;;  %1281 = vrot.lane.b32.xlu2 %v1278_v62, %s2314_s28  ;;  %v706_v32 = vadd.f32 %v2992_v25, %v622_v2  ;;  %v1346_v59 = vrot.slane %v1339_v31, 1  ;;  %v1364_v3 = vmul.f32 %v1361_v51, %v3007_v42  ;;  %v1384_v28 = vmul.f32 %v1382_v22, %v2911_v63 }
 0x1a5   :  { %1323 = vrot.lane.b32.xlu0 %v1320_v61, %s2314_s28  ;;  %v1368_v58 = vrot.slane %v1362_v17, 3  ;;  %v1369_v35 = vrot.slane %v1363_v60, 3  ;;  %v1385_v21 = vmul.f32 %v1382_v22, %v3007_v42  ;;  %v1403_v39 = vstv %s2206_s26  ;;  %s2224_s26 = sld [smem:[#allocation4 + $0x12]] }
 0x1a6   :  { %v771_v18 = vpop.permute.xlu1 %770  ;;  %v838_v34 = vpop.permute.xlu2 %837  ;;  %v1347_v57 = vsel %vm243_vm4, %v1344_v29, %v1346_v59  ;;  %v1371_v15 = vrot.slane %v1364_v3, 3  ;;  %v1390_v37 = vrot.slane %v1384_v28, 3  ;;  %v1404_v55 = vmul.f32 %v1403_v39, %v2909_v48 }
 0x1a7   :  { %v792_v6 = vpop.permute.xlu0 %791  ;;  %v776_v13 = vadd.f32 %v771_v18, %v684_v44  ;;  %v3085_v12 = vadd.f32 %v838_v34, %v754_v33  ;;  %v1370_v25 = vsel %vm336_vm5, %v1368_v58, %v1369_v35  ;;  %v1392_v62 = vrot.slane %v1385_v21, 3 }
 0x1a8   :  { %v3087_v27 = vadd.f32 %v792_v6, %v705_v9  ;;  %v1372_v26 = vsel %vm336_vm5, %v1369_v35, %v1371_v15  ;;  %v1405_v61 = vmul.f32 %v1403_v39, %v2911_v63  ;;  %v1383_v49 = vmul.f32 %v1382_v22, %v2909_v48  ;;  %v3843_v15 = vld [vmem:[#allocation15_spill] sm:$0xff] }
 0x1a9   :  { %v1393_v23 = vsel %vm336_vm5, %v1390_v37, %v1392_v62  ;;  %v1406_v44 = vmul.f32 %v1403_v39, %v3007_v42  ;;  %v1410_v9 = vrot.slane %v1404_v55, 3  ;;  %v123_v29 = vmul.f32 %v2882_v8, %v3839_v1  ;;  %v3844_v62 = vld [vmem:[#allocation16_spill] sm:$0xff] }
 0x1aa   :  { %v1411_v18 = vrot.slane %v1405_v61, 3  ;;  %v1389_v34 = vrot.slane %v1383_v49, 3  ;;  %v1453_v28 = vstv %s3149_s30  ;;  %v3846_v49 = vld [vmem:[#allocation17_spill] sm:$0xff]  ;;  %s2226_s30 = sld [smem:[#allocation4 + $0x17]] }
 0x1ab   :  { %v1413_v36 = vrot.slane %v1406_v44, 3  ;;  %v3847_v44 = vld [vmem:[#allocation24_spill] sm:$0xff] }
 0x1ac   :  { %1325 = vrot.lane.b32.xlu1 %v1322_v45, %s2314_s28  ;;  %1304 = vrot.lane.b32.xlu2 %v1301_v56, %s2314_s28  ;;  %v1412_v0 = vsel %vm336_vm5, %v1410_v9, %v1411_v18  ;;  %v1391_v6 = vsel %vm336_vm5, %v1389_v34, %v1390_v37 }
 0x1ad   :  { %1348 = vrot.lane.b32.xlu0 %v1345_v4, %s2314_s28  ;;  %v130_v4 = vrot.slane %v123_v29, 2  ;;  %v1455_v29 = vmul.f32 %v1453_v28, %v2911_v63 }
 0x1ae   :  { %v794_v11 = vpop.permute.xlu1 %793  ;;  %v856_v52 = vpop.permute.xlu2 %855 }
 0x1af   :  { %v3100_v33 = vpop.permute.xlu0 %814  ;;  %v798_v43 = vadd.f32 %v794_v11, %v706_v32  ;;  %v3102_v50 = vadd.f32 %v856_v52, %v776_v13  ;;  %v1414_v32 = vsel %vm336_vm5, %v1411_v18, %v1413_v36  ;;  %v3840_v11 = vld [vmem:[#allocation34_spill] sm:$0xff] }
 0x1b0   :  { %v3841_v52 = vrot.slane %v3840_v11, 2  ;;  %v3853_v11 = vld [vmem:[#allocation18_spill] sm:$0xff] }
 0x1b4   :  { %1350 = vrot.lane.b32.xlu1 %v1347_v57, %s2314_s28  ;;  %1327 = vrot.lane.b32.xlu2 %v1321_v40, %s2314_s28  ;;  %v1428_v40 = vstv %s2207_s29  ;;  %s2225_s29 = sld [smem:[#allocation4 + $0x2b]] }
 0x1b5   :  { %1373 = vrot.lane.b32.xlu0 %v1370_v25, %s2314_s28  ;;  %v1429_v13 = vmul.f32 %v1428_v40, %v2909_v48  ;;  %v1430_v16 = vmul.f32 %v1428_v40, %v2911_v63  ;;  %v1431_v45 = vmul.f32 %v1428_v40, %v3007_v42 }
 0x1b6   :  { %v3112_v10 = vpop.permute.xlu1 %816  ;;  %v872_v54 = vpop.permute.xlu2 %871 }
 0x1b7   :  { %v3114_v20 = vpop.permute.xlu0 %839  ;;  %v3116_v53 = vadd.f32 %v872_v54, %v798_v43  ;;  %v1435_v56 = vrot.slane %v1429_v13, 3  ;;  %v1436_v31 = vrot.slane %v1430_v16, 3  ;;  %v1438_v17 = vrot.slane %v1431_v45, 3  ;;  %v3849_v13 = vld [vmem:[#allocation10_spill] sm:$0xff]  ;;  %v3850_v45 = vld [vmem:[#allocation28_spill] sm:$0xff] }
 0x1b8   :  { %v131_v43 = vsel %vm92_vm6, %v3841_v52, %v130_v4  ;;  %v1467_v54 = vstv %s3151_s3  ;;  %s2227_s3 = sld [smem:[#allocation4 + $0x30]] }
 0x1b9   :  { %v1437_v60 = vsel %vm336_vm5, %v1435_v56, %v1436_v31  ;;  %v1439_v61 = vsel %vm336_vm5, %v1436_v31, %v1438_v17  ;;  %v1469_v1 = vmul.f32 %v1467_v54, %v2911_v63 }
 0x1bc   :  { %1375 = vrot.lane.b32.xlu1 %v1372_v26, %s2314_s28  ;;  %1352 = vrot.lane.b32.xlu2 %v1346_v59, %s2314_s28  ;;  %v3842_v59 = vld [vmem:[#allocation35_spill] sm:$0xff] }
 0x1bd   :  { %1396 = vrot.lane.b32.xlu0 %v1393_v23, %s2314_s28  ;;  %v71_v58 = vmul.f32 %v2868_v46, %v3842_v59  ;;  %v72_v35 = vmul.f32 %v2882_v8, %v3842_v59  ;;  %v1454_v46 = vmul.f32 %v1453_v28, %v2909_v48  ;;  %v3845_v26 = vld [vmem:[#allocation19_spill] sm:$0xff]  ;;  %v1468_v8 = vmul.f32 %v1467_v54, %v2909_v48  ;;  %v3855_v28 = vld [vmem:[#allocation32_spill] sm:$0xff] }
 0x1be   :  { %v3126_v5 = vpop.permute.xlu1 %841  ;;  %v3128_v41 = vpop.permute.xlu2 %889  ;;  %v1501_v54 = vstv %s2211_s5  ;;  %s2229_s5 = sld [smem:[#allocation4 + $0x1d]] }
 0x1bf   :  { %v3131_v19 = vpop.permute.xlu0 %857  ;;  %v136_v3 = vadd.f32 %v131_v43, %v71_v58  ;;  %v137_v21 = vadd.f32 %v130_v4, %v72_v35  ;;  %v3851_v4 = vld [vmem:[#allocation14_spill] sm:$0xff]  ;;  %v3854_v58 = vld [vmem:[#allocation41_spill] sm:$0xff] }
 0x1c1   :  { %v212_v37 = vadd.f32 %v3843_v15, %v136_v3  ;;  %v213_v39 = vadd.f32 %v3844_v62, %v137_v21  ;;  %v1521_v15 = vstv %s2212_s6  ;;  %s2230_s6 = sld [smem:[#allocation4 + $0x9]] }
 0x1c3   :  { %v301_v55 = vadd.f32 %v3845_v26, %v212_v37  ;;  %v302_v23 = vadd.f32 %v3846_v49, %v213_v39 }
 0x1c4   :  { %1415 = vrot.lane.b32.xlu1 %v1412_v0, %s2314_s28  ;;  %1394 = vrot.lane.b32.xlu2 %v1391_v6, %s2314_s28  ;;  %v1481_v6 = vstv %s2210_s4  ;;  %s3627_s4 = sld [smem:[#allocation4 + $0x4]] }
 0x1c5   :  { %1419 = vrot.lane.b32.xlu0 %v1413_v36, %s2314_s28  ;;  %v394_v9 = vadd.f32 %v3847_v44, %v301_v55  ;;  %v3848_v36 = vld [vmem:[#allocation12_spill] sm:$0xff]  ;;  %v1483_v31 = vmul.f32 %v1481_v6, %v2911_v63  ;;  %v1484_v39 = vmul.f32 %v1481_v6, %v3007_v42  ;;  %v1503_v55 = vmul.f32 %v1501_v54, %v2911_v63 }
 0x1c6   :  { %v3142_v51 = vpop.permute.xlu1 %869  ;;  %v3144_v47 = vpop.permute.xlu2 %909  ;;  %v395_v0 = vadd.f32 %v3848_v36, %v302_v23  ;;  %v1504_v36 = vmul.f32 %v1501_v54, %v3007_v42 }
 0x1c7   :  { %v3146_v2 = vpop.permute.xlu0 %885  ;;  %v467_v16 = vadd.f32 %v3849_v13, %v394_v9 }
 0x1c9   :  { %v554_v56 = vadd.f32 %v3850_v45, %v467_v16 }
 0x1cc   :  { %1440 = vrot.lane.b32.xlu1 %v1437_v60, %s2314_s28  ;;  %1417 = vrot.lane.b32.xlu2 %v1414_v32, %s2314_s28  ;;  %v3852_v60 = vld [vmem:[#allocation39_spill] sm:$0xff] }
 0x1cd   :  { %1444 = vrot.lane.b32.xlu0 %v1438_v17, %s2314_s28  ;;  %v468_v17 = vadd.f32 %v3851_v4, %v395_v0  ;;  %v642_v32 = vadd.f32 %v3852_v60, %v554_v56  ;;  %v862_v0 = vadd.f32 %v3131_v19, %v3030_v30 }
 0x1ce   :  { %v888_v22 = vpop.permute.xlu1 %887  ;;  %v3165_v57 = vpop.permute.xlu2 %951 }
 0x1cf   :  { %v3167_v25 = vpop.permute.xlu0 %905  ;;  %v555_v52 = vadd.f32 %v3853_v11, %v468_v17  ;;  %v730_v35 = vadd.f32 %v3854_v58, %v642_v32  ;;  %v1522_v17 = vmul.f32 %v1521_v15, %v2909_v48 }
 0x1d0   :  { %v914_v58 = vadd.f32 %v3167_v25, %v3085_v12  ;;  %v1588_v12 = vstv %s3227_s8  ;;  %s2232_s8 = sld [smem:[#allocation4 + $0xe]] }
 0x1d1   :  { %v643_v21 = vadd.f32 %v3855_v28, %v555_v52  ;;  %v822_v37 = vadd.f32 %v3100_v33, %v730_v35  ;;  %v1524_v33 = vmul.f32 %v1521_v15, %v3007_v42  ;;  %v848_v52 = vadd.f32 %v3126_v5, %v3065_v38 }
 0x1d3   :  { %v731_v62 = vadd.f32 %v3028_v14, %v643_v21  ;;  %v895_v26 = vadd.f32 %v888_v22, %v822_v37  ;;  %v894_v14 = vadd.f32 %v3146_v2, %v3062_v24  ;;  %v1542_v24 = vstv %s2213_s7  ;;  %s2234_s7 = sld [smem:[#allocation4 + $0x13]] }
 0x1d4   :  { %1458 = vrot.lane.b32.xlu1 %v1454_v46, %s2313_s23  ;;  %1442 = vrot.lane.b32.xlu2 %v1439_v61, %s2314_s28  ;;  %s2214_s28 = sld [smem:[#allocation4 + $0x11]]  ;;  %v1482_v46 = vmul.f32 %v1481_v6, %v2909_v48  ;;  %v3233_v4 = vmul.f32 %v1542_v24, %v2911_v63  ;;  %v916_v38 = vadd.f32 %v3144_v47, %v848_v52  ;;  %v1528_v37 = vrot.slane %v1522_v17, 2 }
 0x1d5   :  { %1472 = vrot.lane.b32.xlu0 %v1468_v8, %s2313_s23  ;;  %v3208_v8 = vmul.f32 %v1521_v15, %v2911_v63  ;;  %v823_v61 = vadd.f32 %v3112_v10, %v731_v62  ;;  %v1502_v10 = vmul.f32 %v1501_v54, %v2909_v48 }
 0x1d6   :  { %v3182_v18 = vpop.permute.xlu1 %907  ;;  %v975_v34 = vpop.permute.xlu2 %974  ;;  %v1550_v15 = vrot.slane %v3233_v4, 2 }
 0x1d7   :  { %v3184_v40 = vpop.permute.xlu0 %930  ;;  %v982_v49 = vadd.f32 %v975_v34, %v895_v26  ;;  %v896_v23 = vadd.f32 %v3128_v41, %v823_v61  ;;  %v1529_v16 = vrot.slane %v3208_v8, 2  ;;  %v1531_v34 = vrot.slane %v1524_v33, 2 }
 0x1d8   :  { %v1589_v33 = vmul.f32 %v1588_v12, %v2909_v48 }
 0x1d9   :  { %v1055_v45 = vrot.slane %v982_v49, 1  ;;  %v1530_v8 = vsel %vm92_vm6, %v1528_v37, %v1529_v16  ;;  %v1545_v49 = vmul.f32 %v1542_v24, %v3007_v42 }
 0x1da   :  { %v1563_v22 = vstv %s2214_s28  ;;  %s2231_s28 = sld [smem:[#allocation4 + $0x22]] }
 0x1db   :  { %v3225_v41 = vmul.f32 %v1563_v22, %v2911_v63 }
 0x1dc   :  { %1474 = vrot.lane.b32.xlu1 %v1469_v1, %s2313_s23  ;;  %1460 = vrot.lane.b32.xlu2 %v1455_v29, %s2313_s23  ;;  %v1564_v1 = vmul.f32 %v1563_v22, %v2909_v48  ;;  %v847_v29 = vadd.f32 %v3114_v20, %v2994_v7  ;;  %v1532_v20 = vsel %vm92_vm6, %v1529_v16, %v1531_v34 }
 0x1dd   :  { %1490 = vrot.lane.b32.xlu0 %v1483_v31, %s2313_s23  ;;  %v1543_v31 = vmul.f32 %v1542_v24, %v2909_v48  ;;  %v1571_v28 = vrot.slane %v3225_v41, 2  ;;  %v1552_v24 = vrot.slane %v1545_v49, 2 }
 0x1de   :  { %v933_v43 = vpop.permute.xlu1 %932  ;;  %v1000_v59 = vpop.permute.xlu2 %999  ;;  %v915_v60 = vadd.f32 %v3182_v18, %v847_v29 }
 0x1df   :  { %v3199_v3 = vpop.permute.xlu0 %953  ;;  %v937_v56 = vadd.f32 %v933_v43, %v862_v0  ;;  %v1570_v43 = vrot.slane %v1564_v1, 2  ;;  %v1549_v54 = vrot.slane %v1543_v31, 2  ;;  %v1613_v1 = vstv %s3253_s9  ;;  %s2233_s9 = sld [smem:[#allocation4 + $0x27]] }
 0x1e0   :  { %v1007_v18 = vadd.f32 %v1000_v59, %v915_v60  ;;  %v3294_v31 = vmul.f32 %v1613_v1, %v2911_v63  ;;  %v958_v4 = vadd.f32 %v3199_v3, %v3116_v53 }
 0x1e1   :  { %v1572_v47 = vsel %vm92_vm6, %v1570_v43, %v1571_v28 }
 0x1e2   :  { %v1074_v25 = vrot.slane %v1007_v18, 1  ;;  %v1634_v18 = vstv %s2217_s11  ;;  %s2237_s11 = sld [smem:[#allocation4 + $0x31]] }
 0x1e4   :  { %1492 = vrot.lane.b32.xlu1 %v1484_v39, %s2313_s23  ;;  %1488 = vrot.lane.b32.xlu2 %v1482_v46, %s2313_s23 }
 0x1e5   :  { %1510 = vrot.lane.b32.xlu0 %v1503_v55, %s2313_s23  ;;  %v1551_v55 = vsel %vm92_vm6, %v1549_v54, %v1550_v15 }
 0x1e6   :  { %v973_v44 = vpop.permute.xlu1 %972  ;;  %v1025_v9 = vpop.permute.xlu2 %1024 }
 0x1e7   :  { %v977_v6 = vpop.permute.xlu0 %976  ;;  %v981_v13 = vadd.f32 %v973_v44, %v894_v14  ;;  %v1029_v32 = vadd.f32 %v1025_v9, %v937_v56  ;;  %v3263_v14 = vmul.f32 %v1563_v22, %v3007_v42  ;;  %v1590_v44 = vmul.f32 %v1588_v12, %v2911_v63 }
 0x1e8   :  { %v983_v2 = vadd.f32 %v977_v6, %v896_v23  ;;  %v875_v23 = vadd.f32 %v3142_v51, %v3087_v27  ;;  %v3287_v56 = vmul.f32 %v1588_v12, %v3007_v42  ;;  %v1637_v12 = vmul.f32 %v1634_v18, %v3007_v42 }
 0x1e9   :  { %v1054_v30 = vrot.slane %v981_v13, 1  ;;  %v1573_v16 = vrot.slane %v3263_v14, 2 }
 0x1ea   :  { %v1057_v19 = vrot.slane %v983_v2, 1  ;;  %v957_v22 = vadd.f32 %v3165_v57, %v875_v23  ;;  %v1155_v57 = vstv %s3255_s10  ;;  %v1598_v53 = vrot.slane %v3287_v56, 2  ;;  %s2236_s10 = sld [smem:[#allocation4 + $0x18]] }
 0x1eb   :  { %v1056_v11 = vsel %vm243_vm4, %v1054_v30, %v1055_v45  ;;  %v1574_v29 = vsel %vm92_vm6, %v1571_v28, %v1573_v16  ;;  %v1156_v17 = vmul.f32 %v1155_v57, %v2909_v48  ;;  %v3303_v60 = vmul.f32 %v1155_v57, %v2911_v63 }
 0x1ec   :  { %v1058_v7 = vsel %vm243_vm4, %v1055_v45, %v1057_v19  ;;  %1512 = vrot.lane.b32.xlu1 %v1504_v36, %s2313_s23  ;;  %1508 = vrot.lane.b32.xlu2 %v1502_v10, %s2313_s23  ;;  %v936_v10 = vadd.f32 %v3184_v40, %v3102_v50  ;;  %v1595_v50 = vrot.slane %v1589_v33, 2  ;;  %v1596_v40 = vrot.slane %v1590_v44, 2 }
 0x1ed   :  { %v1062_v35 = vadd.f32 %v1058_v7, %v1029_v32  ;;  %1535 = vrot.lane.b32.xlu0 %v1532_v20, %s2313_s23  ;;  %v1553_v45 = vsel %vm92_vm6, %v1550_v15, %v1552_v24  ;;  %v1614_v19 = vmul.f32 %v1613_v1, %v2909_v48  ;;  %v1621_v20 = vrot.slane %v3294_v31, 4 }
 0x1ee   :  { %v998_v5 = vpop.permute.xlu1 %997  ;;  %v3249_v21 = vpop.permute.xlu2 %1235  ;;  %v1597_v30 = vsel %vm92_vm6, %v1595_v50, %v1596_v40  ;;  %v3316_v28 = vstv %s3281_s12  ;;  %v1599_v37 = vsel %vm92_vm6, %v1596_v40, %v1598_v53  ;;  %v1655_v40 = vstv %s3323_s18  ;;  %s2319_s18 = smov 8  }
 0x1ef   :  { %2248 = vtanh.f32 %v1062_v35  ;;  %v1002_v62 = vpop.permute.xlu0 %1001  ;;  %v1006_v39 = vadd.f32 %v998_v5, %v914_v58  ;;  %v1620_v3 = vrot.slane %v1614_v19, 4  ;;  %v1163_v5 = vrot.slane %v3303_v60, 2 }
 0x1f0   :  { %v1008_v46 = vadd.f32 %v1002_v62, %v916_v38  ;;  %v1162_v38 = vrot.slane %v1156_v17, 2  ;;  %v1616_v62 = vmul.f32 %v1613_v1, %v3007_v42  ;;  %v1108_v14 = vmul.f32 %v3316_v28, %v3007_v42 }
 0x1f1   :  { %v1073_v59 = vrot.slane %v1006_v39, 1  ;;  %v1622_v39 = vsel %vm165_vm7, %v1620_v3, %v1621_v20 }
 0x1f2   :  { %v1076_v26 = vrot.slane %v1008_v46, 1  ;;  %v3330_v46 = vmul.f32 %v1634_v18, %v2911_v63  ;;  %v1623_v49 = vrot.slane %v1616_v62, 4  ;;  %v1093_v62 = vstv %s3365_s20 }
 0x1f3   :  { %v1075_v61 = vsel %vm243_vm4, %v1073_v59, %v1074_v25  ;;  %v1174_v59 = vstv %s3298_s13 }
 0x1f4   :  { %1554 = vrot.lane.b32.xlu1 %v1551_v55, %s2313_s23  ;;  %1533 = vrot.lane.b32.xlu2 %v1530_v8, %s2313_s23  ;;  %v1077_v9 = vsel %vm243_vm4, %v1074_v25, %v1076_v26  ;;  %v1106_v25 = vmul.f32 %v3316_v28, %v2909_v48  ;;  %v3338_v26 = vmul.f32 %v1155_v57, %v3007_v42  ;;  %v1642_v44 = vrot.slane %v3330_v46, 4 }
 0x1f5   :  { %v2249_v36 = vpop.eup %2248  ;;  %1575 = vrot.lane.b32.xlu0 %v1572_v47, %s2313_s23  ;;  %v1164_v47 = vsel %vm92_vm6, %v1162_v38, %v1163_v5  ;;  %v1175_v23 = vmul.f32 %v1174_v59, %v2909_v48  ;;  %v3380_v24 = vmul.f32 %v1174_v59, %v3007_v42  ;;  %v1624_v50 = vsel %vm165_vm7, %v1621_v20, %v1623_v49 }
 0x1f6   :  { %v1066_v27 = vmax.f32 %v2249_v36, 0.0  ;;  %v1023_v51 = vpop.permute.xlu1 %1022  ;;  %v3276_v0 = vpop.permute.xlu2 %1256 }
 0x1f7   :  { %v1044_v6 = vpop.permute.xlu0 %1043  ;;  %v1028_v13 = vadd.f32 %v1023_v51, %v936_v10  ;;  %v3359_v10 = vadd.f32 %v1164_v47, %v1106_v25  ;;  %v3368_v51 = vstv %s3313_s15  ;;  %v1184_v31 = vrot.slane %v3380_v24, 2  ;;  %s2126_s15 = sshll.u32 %s3773_s2, 4  ;;  %s2127_s15 = int_to_ptr.hbm [resolvable:$true] %s2126_s15 }
 0x1f8   :  { %1069 = vst.msk [vmem:[#allocation5 + $0x8] sm:$0xff] %vm1067_vm8, %v1066_v27  ;;  %v1049_v2 = vadd.f32 %v1044_v6, %v957_v22  ;;  %v3362_v22 = vmul.f32 %v1174_v59, %v2911_v63  ;;  %v1165_v27 = vrot.slane %v3338_v26, 2  ;;  %v3390_v1 = vmul.f32 %v3368_v51, %v2911_v63  ;;  %v3449_v26 = vld [vmem:[#allocation2 + $0x18] sm:$0xff] }
 0x1f9   :  { %v1061_v34 = vadd.f32 %v1056_v11, %v1028_v13 }
 0x1fa   :  { %v1080_v41 = vadd.f32 %v1075_v61, %v1049_v2  ;;  %v3349_v61 = vstv %s3307_s14  ;;  %v1172_v2 = vadd.f32 %v1165_v27, %v1108_v14 }
 0x1fb   :  { %2250 = vtanh.f32 %v1061_v34  ;;  %v3372_v6 = vmul.f32 %v3349_v61, %v2909_v48  ;;  %v1635_v34 = vmul.f32 %v1634_v18, %v2909_v48  ;;  %v1146_v18 = vrot.slane %v3390_v1, 2 }
 0x1fc   :  { %2252 = vtanh.f32 %v1080_v41  ;;  %1577 = vrot.lane.b32.xlu1 %v1574_v29, %s2313_s23  ;;  %1556 = vrot.lane.b32.xlu2 %v1553_v45, %s2313_s23  ;;  %v1139_v41 = vmul.f32 %v3368_v51, %v2909_v48  ;;  %v1181_v29 = vrot.slane %v1175_v23, 2  ;;  %v1182_v45 = vrot.slane %v3362_v22, 2 }
 0x1fd   :  { %1600 = vrot.lane.b32.xlu0 %v1597_v30, %s2313_s23  ;;  %v3399_v30 = vstv %s3341_s0 }
 0x1fe   :  { %v1046_v32 = vpop.permute.xlu1 %1045  ;;  %v3305_v11 = vpop.permute.xlu2 %1281  ;;  %v1145_v38 = vrot.slane %v1139_v41, 2  ;;  %v1094_v41 = vmul.f32 %v3449_v26, %v1093_v62 }
 0x1ff   :  { %v3309_v52 = vpop.permute.xlu0 %1237  ;;  %v1050_v7 = vadd.f32 %v1046_v32, %v958_v4  ;;  %v1116_v4 = vmul.f32 %v3349_v61, %v3007_v42 }
 0x201   :  { %v2251_v43 = vpop.eup %2250  ;;  %v1081_v58 = vadd.f32 %v1077_v9, %v1050_v7  ;;  %v1644_v9 = vrot.slane %v1637_v12, 4  ;;  %v3408_v7 = vmul.f32 %v1655_v40, %v2909_v48  ;;  %v3443_v12 = vstv %s3377_s21 }
 0x202   :  { %v2253_v35 = vpop.eup %2252  ;;  %v1065_v54 = vmax.f32 %v2251_v43, 0.0  ;;  %v1657_v43 = vmul.f32 %v1655_v40, %v2911_v63  ;;  %v1191_v25 = vadd.f32 %v1184_v31, %v1116_v4  ;;  %v1697_v4 = vstv %s3423_s1 }
 0x203   :  { %v1084_v15 = vmax.f32 %v2253_v35, 0.0  ;;  %2254 = vtanh.f32 %v1081_v58  ;;  %v1645_v57 = vsel %vm165_vm7, %v1642_v44, %v1644_v9  ;;  %v1641_v58 = vrot.slane %v1635_v34, 4 }
 0x204   :  { %1068 = vst.msk [vmem:[#allocation5] sm:$0xff] %vm1067_vm8, %v1065_v54  ;;  %1602 = vrot.lane.b32.xlu1 %v1599_v37, %s2313_s23  ;;  %1579 = vrot.lane.b32.xlu2 %v1573_v16, %s2313_s23  ;;  %v3375_v16 = vstv %s3319_s16  ;;  %v3419_v35 = vmul.f32 %v3399_v30, %v2911_v63  ;;  %v1211_v54 = vmul.f32 %v3399_v30, %v2909_v48  ;;  %s2318_s16 = smov 128  }
 0x205   :  { %1087 = vst.msk [vmem:[#allocation5 + $0x10] sm:$0xff] %vm1067_vm8, %v1084_v15  ;;  %1625 = vrot.lane.b32.xlu0 %v1622_v39, %s2313_s23  ;;  %v1122_v19 = vmul.f32 %v3375_v16, %v2909_v48  ;;  %v1183_v15 = vsel %vm92_vm6, %v1181_v29, %v1182_v45  ;;  %v1107_v37 = vmul.f32 %v3316_v28, %v2911_v63  ;;  %v3431_v39 = vld [vmem:[#allocation2 + $0x20] sm:$0xff]  ;;  %v1660_v63 = vrot.slane %v3408_v7, 7 }
 0x206   :  { %v1240_v55 = vpop.permute.xlu1 %1239  ;;  %v3346_v8 = vpop.permute.xlu2 %1304  ;;  %v3435_v46 = vmul.f32 %v3431_v39, %v3375_v16  ;;  %v1166_v48 = vsel %vm92_vm6, %v1163_v5, %v1165_v27  ;;  %v1661_v28 = vrot.slane %v1657_v43, 7  ;;  %v1643_v59 = vsel %vm165_vm7, %v1641_v58, %v1642_v44 }
 0x207   :  { %v3351_v33 = vpop.permute.xlu0 %1258  ;;  %v1246_v56 = vadd.f32 %v1240_v55, %v1172_v2  ;;  %v1676_v55 = vstv %s3385_s22  ;;  %v1128_v14 = vrot.slane %v1122_v19, 2  ;;  %v1218_v60 = vrot.slane %v3419_v35, 4 }
 0x208   :  { %v1147_v5 = vsel %vm92_vm6, %v1145_v38, %v1146_v18  ;;  %v1217_v49 = vrot.slane %v1211_v54, 4  ;;  %v1129_v23 = vrot.slane %v3435_v46, 2  ;;  %v1194_v44 = vmul.f32 %v3449_v26, %v3443_v12 }
 0x209   :  { %v2255_v36 = vpop.eup %2254  ;;  %v3466_v9 = vmul.f32 %v3431_v39, %v3443_v12  ;;  %v1244_v27 = vadd.f32 %v3249_v21, %v3359_v10  ;;  %v1678_v40 = vmul.f32 %v3431_v39, %v1676_v55  ;;  %v1677_v34 = vmul.f32 %v3449_v26, %v1676_v55 }
 0x20a   :  { %v1085_v13 = vmax.f32 %v2255_v36, 0.0  ;;  %v1115_v21 = vmul.f32 %v3431_v39, %v3349_v61  ;;  %v1718_v43 = vstv %s3437_s24  ;;  %v1141_v61 = vmul.f32 %v3368_v51, %v3007_v42 }
 0x20b   :  { %v1201_v7 = vrot.slane %v3466_v9, 4  ;;  %v1124_v58 = vmul.f32 %v3375_v16, %v3007_v42  ;;  %v1682_v38 = vrot.slane %v1678_v40, 7  ;;  %v1681_v54 = vrot.slane %v1677_v34, 7 }
 0x20c   :  { %1088 = vst.msk [vmem:[#allocation5 + $0x18] sm:$0xff] %vm1067_vm8, %v1085_v13  ;;  %1627 = vrot.lane.b32.xlu1 %v1624_v50, %s2313_s23  ;;  %1604 = vrot.lane.b32.xlu2 %v1598_v53, %s2313_s23  ;;  %v1099_v53 = vstv %s3355_s19  ;;  %v1189_v13 = vadd.f32 %v1183_v15, %v3372_v6  ;;  %v1219_v6 = vsel %vm165_vm7, %v1217_v49, %v1218_v60  ;;  %v1764_v35 = vstv %s3534_s25 }
 0x20d   :  { %1648 = vrot.lane.b32.xlu0 %v1645_v57, %s2313_s23  ;;  %v1100_v47 = vmul.f32 %v3449_v26, %v1099_v53  ;;  %v1171_v57 = vadd.f32 %v1166_v48, %v1107_v37  ;;  %v1662_v37 = vsel %vm198_vm3, %v1660_v63, %v1661_v28  ;;  %v1698_v48 = vmul.f32 %v3449_v26, %v1697_v4 }
 0x20e   :  { %v1261_v17 = vpop.permute.xlu1 %1260  ;;  %v1328_v32 = vpop.permute.xlu2 %1327  ;;  %v1719_v51 = vmul.f32 %v3449_v26, %v1718_v43  ;;  %v1131_v49 = vrot.slane %v1124_v58, 2  ;;  %v1101_v34 = vmul.f32 %v3431_v39, %v1099_v53  ;;  %v3547_v53 = vld [vmem:[#allocation2 + $0x28] sm:$0xf]  ;;  %v1766_v9 = vmul.f32 %v3431_v39, %v1764_v35 }
 0x20f   :  { %v3411_v3 = vpop.permute.xlu0 %1283  ;;  %v3413_v20 = vadd.f32 %v1328_v32, %v1246_v56  ;;  %v1267_v36 = vadd.f32 %v1261_v17, %v1191_v25  ;;  %v1152_v56 = vadd.f32 %v1147_v5, %v1100_v47  ;;  %v1130_v17 = vsel %vm92_vm6, %v1128_v14, %v1129_v23 }
 0x210   :  { %v1200_v32 = vrot.slane %v1194_v44, 4  ;;  %v3501_v25 = vmul.f32 %v3431_v39, %v1697_v4  ;;  %v3507_v47 = vmul.f32 %v3431_v39, %v1718_v43  ;;  %v1245_v16 = vadd.f32 %v3309_v52, %v1171_v57 }
 0x211   :  { %v1224_v15 = vadd.f32 %v1219_v6, %v1152_v56  ;;  %v1265_v14 = vadd.f32 %v3276_v0, %v1189_v13  ;;  %v1148_v5 = vrot.slane %v1141_v61, 2  ;;  %v1213_v52 = vmul.f32 %v3399_v30, %v3007_v42 }
 0x212   :  { %v1196_v0 = vmul.f32 %v3443_v12, %v3007_v42  ;;  %v1726_v30 = vrot.slane %v3507_v47, 1  ;;  %v1095_v42 = vmul.f32 %v3431_v39, %v1093_v62  ;;  %v1132_v12 = vsel %vm92_vm6, %v1129_v23, %v1131_v49 }
 0x213   :  { %v1721_v6 = vmul.f32 %v3547_v53, %v1718_v43  ;;  %v1700_v1 = vmul.f32 %v3547_v53, %v1697_v4 }
 0x214   :  { %1663 = vrot.lane.b32.xlu1 %v1660_v63, %s2315_s17  ;;  %1646 = vrot.lane.b32.xlu2 %v1643_v59, %s2313_s23  ;;  %s3492_s23 = sld [smem:[#allocation4 + $0xd]]  ;;  %v1135_v59 = vadd.f32 %v1130_v17, %v1094_v41  ;;  %v1202_v63 = vsel %vm165_vm7, %v1200_v32, %v1201_v7  ;;  %v1149_v41 = vsel %vm92_vm6, %v1146_v18, %v1148_v5  ;;  %v1203_v17 = vrot.slane %v1196_v0, 4 }
 0x215   :  { %1667 = vrot.lane.b32.xlu0 %v1661_v28, %s2315_s17  ;;  %v1185_v28 = vsel %vm92_vm6, %v1182_v45, %v1184_v31  ;;  %v1704_v45 = vrot.slane %v1698_v48, 1  ;;  %v1705_v31 = vrot.slane %v3501_v25, 1  ;;  %v1153_v43 = vadd.f32 %v1149_v41, %v1101_v34 }
 0x216   :  { %v1303_v2 = vpop.permute.xlu1 %1302  ;;  %v1353_v50 = vpop.permute.xlu2 %1352  ;;  %v1190_v40 = vadd.f32 %v1185_v28, %v1115_v21  ;;  %v1683_v21 = vsel %vm198_vm3, %v1681_v54, %v1682_v38  ;;  %v1136_v61 = vadd.f32 %v1132_v12, %v1095_v42  ;;  %v1728_v48 = vrot.slane %v1721_v6, 1 }
 0x217   :  { %v1324_v29 = vpop.permute.xlu0 %1323  ;;  %v3477_v19 = vadd.f32 %v1353_v50, %v1267_v36  ;;  %v1308_v55 = vadd.f32 %v1303_v2, %v1224_v15  ;;  %v1725_v2 = vrot.slane %v1719_v51, 1  ;;  %v1207_v50 = vadd.f32 %v1202_v63, %v1135_v59 }
 0x218   :  { %v3481_v10 = vadd.f32 %v1324_v29, %v1244_v27  ;;  %v1220_v29 = vrot.slane %v1213_v52, 4  ;;  %v1706_v56 = vsel %vm243_vm4, %v1704_v45, %v1705_v31  ;;  %v1266_v23 = vadd.f32 %v3351_v33, %v1190_v40 }
 0x219   :  { %v1727_v18 = vsel %vm243_vm4, %v1725_v2, %v1726_v30  ;;  %v1287_v32 = vadd.f32 %v3305_v11, %v1207_v50  ;;  %v1707_v25 = vrot.slane %v1700_v1, 1  ;;  %v1204_v33 = vsel %vm165_vm7, %v1201_v7, %v1203_v17 }
 0x21a   :  { %v1739_v57 = vstv %s3492_s23  ;;  %v1221_v4 = vsel %vm165_vm7, %v1218_v60, %v1220_v29  ;;  %v1208_v47 = vadd.f32 %v1204_v33, %v1136_v61  ;;  %v1767_v7 = vmul.f32 %v3547_v53, %v1764_v35 }
 0x21b   :  { %v1741_v62 = vmul.f32 %v3431_v39, %v1739_v57  ;;  %v1742_v46 = vmul.f32 %v3547_v53, %v1739_v57  ;;  %v1225_v60 = vadd.f32 %v1221_v4, %v1153_v43  ;;  %v1708_v63 = vsel %vm243_vm4, %v1705_v31, %v1707_v25 }
 0x21c   :  { %1684 = vrot.lane.b32.xlu1 %v1681_v54, %s2315_s17  ;;  %1665 = vrot.lane.b32.xlu2 %v1662_v37, %s2315_s17  ;;  %v1740_v28 = vmul.f32 %v3449_v26, %v1739_v57  ;;  %v1772_v31 = vrot.slane %v1766_v9, 1  ;;  %v1774_v0 = vrot.slane %v1767_v7, 1  ;;  %v1789_v2 = vstv %s2224_s26 }
 0x21d   :  { %1688 = vrot.lane.b32.xlu0 %v1682_v38, %s2315_s17  ;;  %v1747_v11 = vrot.slane %v1741_v62, 1  ;;  %v1749_v51 = vrot.slane %v1742_v46, 1  ;;  %v1309_v5 = vadd.f32 %v3346_v8, %v1225_v60  ;;  %v1791_v50 = vmul.f32 %v3431_v39, %v1789_v2 }
 0x21e   :  { %v1326_v44 = vpop.permute.xlu1 %1325  ;;  %v1395_v36 = vpop.permute.xlu2 %1394  ;;  %v1775_v8 = vsel %vm243_vm4, %v1772_v31, %v1774_v0  ;;  %v1792_v40 = vmul.f32 %v3547_v53, %v1789_v2  ;;  %v1810_v1 = vstv %s2225_s29  ;;  %v1831_v17 = vstv %s2226_s30 }
 0x21f   :  { %v1349_v27 = vpop.permute.xlu0 %1348  ;;  %v1333_v24 = vadd.f32 %v1326_v44, %v1245_v16  ;;  %v3522_v22 = vadd.f32 %v1395_v36, %v1308_v55  ;;  %v1729_v16 = vsel %vm243_vm4, %v1726_v30, %v1728_v48  ;;  %v1750_v55 = vsel %vm243_vm4, %v1747_v11, %v1749_v51 }
 0x220   :  { %v3527_v13 = vadd.f32 %v1349_v27, %v1265_v14  ;;  %v1288_v14 = vadd.f32 %v3411_v3, %v1208_v47  ;;  %v1765_v30 = vmul.f32 %v3449_v26, %v1764_v35  ;;  %v1799_v6 = vrot.slane %v1792_v40, 3 }
 0x221   :  { %v1811_v46 = vmul.f32 %v3449_v26, %v1810_v1  ;;  %v1834_v47 = vmul.f32 %v3547_v53, %v1831_v17 }
 0x222   :  { %v1771_v12 = vrot.slane %v1765_v30, 1 }
 0x224   :  { %1709 = vrot.lane.b32.xlu1 %v1706_v56, %s2315_s17  ;;  %1686 = vrot.lane.b32.xlu2 %v1683_v21, %s2315_s17  ;;  %v1797_v21 = vrot.slane %v1791_v50, 3  ;;  %v1773_v62 = vsel %vm243_vm4, %v1771_v12, %v1772_v31 }
 0x225   :  { %1730 = vrot.lane.b32.xlu0 %v1727_v18, %s2315_s17  ;;  %v1790_v18 = vmul.f32 %v3449_v26, %v1789_v2 }
 0x226   :  { %v1351_v58 = vpop.permute.xlu1 %1350  ;;  %v1418_v38 = vpop.permute.xlu2 %1417 }
 0x227   :  { %v1374_v54 = vpop.permute.xlu0 %1373  ;;  %v1358_v15 = vadd.f32 %v1351_v58, %v1266_v23  ;;  %v3562_v37 = vadd.f32 %v1418_v38, %v1333_v24  ;;  %v1746_v24 = vrot.slane %v1740_v28, 1  ;;  %v1812_v23 = vmul.f32 %v3431_v39, %v1810_v1 }
 0x228   :  { %v3567_v59 = vadd.f32 %v1374_v54, %v1287_v32  ;;  %v1833_v32 = vmul.f32 %v3431_v39, %v1831_v17  ;;  %v1796_v61 = vrot.slane %v1790_v18, 3 }
 0x229   :  { %v1748_v3 = vsel %vm243_vm4, %v1746_v24, %v1747_v11  ;;  %v1818_v48 = vrot.slane %v1812_v23, 3 }
 0x22a   :  { %v1839_v11 = vrot.slane %v1833_v32, 3  ;;  %v1798_v60 = vsel %vm336_vm5, %v1796_v61, %v1797_v21 }
 0x22c   :  { %1732 = vrot.lane.b32.xlu1 %v1729_v16, %s2315_s17  ;;  %1711 = vrot.lane.b32.xlu2 %v1708_v63, %s2315_s17  ;;  %v1813_v16 = vmul.f32 %v3547_v53, %v1810_v1  ;;  %v1895_v1 = vstv %s2229_s5 }
 0x22d   :  { %1753 = vrot.lane.b32.xlu0 %v1750_v55, %s2315_s17  ;;  %v1897_v18 = vmul.f32 %v3431_v39, %v1895_v1 }
 0x22e   :  { %v1376_v52 = vpop.permute.xlu1 %1375  ;;  %v1443_v49 = vpop.permute.xlu2 %1442 }
 0x22f   :  { %v1397_v44 = vpop.permute.xlu0 %1396  ;;  %v1380_v36 = vadd.f32 %v1376_v52, %v1288_v14  ;;  %v3581_v27 = vadd.f32 %v1443_v49, %v1358_v15  ;;  %v1817_v15 = vrot.slane %v1811_v46, 3  ;;  %v1820_v52 = vrot.slane %v1813_v16, 3 }
 0x230   :  { %v3583_v45 = vadd.f32 %v1397_v44, %v1309_v5  ;;  %v1841_v5 = vrot.slane %v1834_v47, 3 }
 0x231   :  { %v1819_v35 = vsel %vm336_vm5, %v1817_v15, %v1818_v48  ;;  %v1821_v31 = vsel %vm336_vm5, %v1818_v48, %v1820_v52 }
 0x232   :  { %v1842_v24 = vsel %vm336_vm5, %v1839_v11, %v1841_v5 }
 0x234   :  { %1755 = vrot.lane.b32.xlu1 %v1749_v51, %s2315_s17  ;;  %1751 = vrot.lane.b32.xlu2 %v1748_v3, %s2315_s17  ;;  %v1856_v51 = vstv %s2227_s3 }
 0x235   :  { %1778 = vrot.lane.b32.xlu0 %v1775_v8, %s2315_s17 }
 0x236   :  { %v1416_v34 = vpop.permute.xlu1 %1415  ;;  %v1461_v57 = vpop.permute.xlu2 %1460 }
 0x237   :  { %v1420_v41 = vpop.permute.xlu0 %1419  ;;  %v1424_v29 = vadd.f32 %v1416_v34, %v3481_v10  ;;  %v3594_v42 = vadd.f32 %v1461_v57, %v1380_v36  ;;  %v1800_v10 = vsel %vm336_vm5, %v1797_v21, %v1799_v6  ;;  %v1881_v34 = vstv %s3627_s4 }
 0x238   :  { %v3597_v56 = vadd.f32 %v1420_v41, %v3413_v20  ;;  %v1832_v20 = vmul.f32 %v3449_v26, %v1831_v17  ;;  %v1882_v57 = vmul.f32 %v3449_v26, %v1881_v34  ;;  %v1883_v17 = vmul.f32 %v3431_v39, %v1881_v34 }
 0x239   :  { %v1970_v34 = vstv %s2233_s9 }
 0x23a   :  { %v1838_v33 = vrot.slane %v1832_v20, 3  ;;  %v1909_v20 = vstv %s2230_s6 }
 0x23b   :  { %v1910_v32 = vmul.f32 %v3449_v26, %v1909_v20 }
 0x23c   :  { %1780 = vrot.lane.b32.xlu1 %v1774_v0, %s2315_s17  ;;  %1776 = vrot.lane.b32.xlu2 %v1773_v62, %s2315_s17  ;;  %v1840_v63 = vsel %vm336_vm5, %v1838_v33, %v1839_v11  ;;  %v1859_v0 = vmul.f32 %v3547_v53, %v1856_v51  ;;  %v1991_v33 = vstv %s2234_s7 }
 0x23d   :  { %1803 = vrot.lane.b32.xlu0 %v1800_v10, %s2315_s17  ;;  %v1993_v47 = vmul.f32 %v3431_v39, %v1991_v33 }
 0x23e   :  { %v1441_v43 = vpop.permute.xlu1 %1440  ;;  %v1489_v4 = vpop.permute.xlu2 %1488  ;;  %v1866_v50 = vrot.slane %v1859_v0, 3 }
 0x23f   :  { %v1445_v58 = vpop.permute.xlu0 %1444  ;;  %v1449_v38 = vadd.f32 %v1441_v43, %v3527_v13  ;;  %v3610_v54 = vadd.f32 %v1489_v4, %v1424_v29  ;;  %v1857_v13 = vmul.f32 %v3449_v26, %v1856_v51  ;;  %v1896_v43 = vmul.f32 %v3449_v26, %v1895_v1 }
 0x240   :  { %v1451_v25 = vadd.f32 %v1445_v58, %v3477_v19  ;;  %v1858_v19 = vmul.f32 %v3431_v39, %v1856_v51  ;;  %v1912_v4 = vmul.f32 %v3547_v53, %v1909_v20  ;;  %v1911_v51 = vmul.f32 %v3431_v39, %v1909_v20 }
 0x241   :  { %v1863_v44 = vrot.slane %v1857_v13, 3 }
 0x242   :  { %v1864_v36 = vrot.slane %v1858_v19, 3 }
 0x244   :  { %1822 = vrot.lane.b32.xlu1 %v1819_v35, %s2315_s17  ;;  %1801 = vrot.lane.b32.xlu2 %v1798_v60, %s2315_s17  ;;  %v1865_v2 = vsel %vm336_vm5, %v1863_v44, %v1864_v36  ;;  %v1867_v41 = vsel %vm336_vm5, %v1864_v36, %v1866_v50  ;;  %v1992_v60 = vmul.f32 %v3449_v26, %v1991_v33 }
 0x245   :  { %1843 = vrot.lane.b32.xlu0 %v1840_v63, %s2315_s17  ;;  %v1994_v63 = vmul.f32 %v3547_v53, %v1991_v33 }
 0x246   :  { %v1459_v28 = vpop.permute.xlu1 %1458  ;;  %v1509_v55 = vpop.permute.xlu2 %1508 }
 0x247   :  { %v1473_v9 = vpop.permute.xlu0 %1472  ;;  %v1464_v7 = vadd.f32 %v1459_v28, %v3567_v59  ;;  %v3624_v14 = vadd.f32 %v1509_v55, %v1449_v38  ;;  %v1998_v55 = vrot.slane %v1992_v60, 2 }
 0x248   :  { %v1478_v49 = vadd.f32 %v1473_v9, %v3522_v22  ;;  %v1999_v9 = vrot.slane %v1993_v47, 2 }
 0x24a   :  { %v2000_v44 = vsel %vm92_vm6, %v1998_v55, %v1999_v9 }
 0x24c   :  { %1845 = vrot.lane.b32.xlu1 %v1842_v24, %s2315_s17  ;;  %1824 = vrot.lane.b32.xlu2 %v1821_v31, %s2315_s17 }
 0x24d   :  { %1868 = vrot.lane.b32.xlu0 %v1865_v2, %s2315_s17 }
 0x24e   :  { %v1475_v22 = vpop.permute.xlu1 %1474  ;;  %v1534_v59 = vpop.permute.xlu2 %1533 }
 0x24f   :  { %v1491_v3 = vpop.permute.xlu0 %1490  ;;  %v1479_v30 = vadd.f32 %v1475_v22, %v3583_v45  ;;  %v3637_v8 = vadd.f32 %v1534_v59, %v1464_v7 }
 0x250   :  { %v1498_v40 = vadd.f32 %v1491_v3, %v3562_v37 }
 0x254   :  { %1870 = vrot.lane.b32.xlu1 %v1867_v41, %s2315_s17  ;;  %1847 = vrot.lane.b32.xlu2 %v1841_v5, %s2315_s17 }
 0x255   :  { %1886 = vrot.lane.b32.xlu0 %v1882_v57, %s2316_s27 }
 0x256   :  { %v1493_v29 = vpop.permute.xlu1 %1492  ;;  %v1557_v12 = vpop.permute.xlu2 %1556 }
 0x257   :  { %v1511_v45 = vpop.permute.xlu0 %1510  ;;  %v1499_v21 = vadd.f32 %v1493_v29, %v3597_v56  ;;  %v3647_v6 = vadd.f32 %v1557_v12, %v1479_v30 }
 0x258   :  { %v3650_v37 = vadd.f32 %v1511_v45, %v3581_v27 }
 0x25c   :  { %1888 = vrot.lane.b32.xlu1 %v1883_v17, %s2316_s27  ;;  %1872 = vrot.lane.b32.xlu2 %v1866_v50, %s2315_s17  ;;  %s2235_s17 = sld [smem:[#allocation4 + $0x2c]] }
 0x25d   :  { %1902 = vrot.lane.b32.xlu0 %v1897_v18, %s2316_s27 }
 0x25e   :  { %v1513_v62 = vpop.permute.xlu1 %1512  ;;  %v1580_v46 = vpop.permute.xlu2 %1579 }
 0x25f   :  { %v1536_v56 = vpop.permute.xlu0 %1535  ;;  %v1519_v23 = vadd.f32 %v1513_v62, %v1451_v25  ;;  %v3657_v10 = vadd.f32 %v1580_v46, %v1499_v21  ;;  %v1971_v21 = vmul.f32 %v3449_v26, %v1970_v34 }
 0x260   :  { %v3660_v27 = vadd.f32 %v1536_v56, %v3594_v42  ;;  %v1929_v42 = vstv %s2231_s28 }
 0x261   :  { %v1930_v11 = vmul.f32 %v3449_v26, %v1929_v42  ;;  %v1932_v35 = vmul.f32 %v3547_v53, %v1929_v42  ;;  %v1931_v52 = vmul.f32 %v3431_v39, %v1929_v42  ;;  %v1977_v20 = vrot.slane %v1971_v21, 2 }
 0x262   :  { %v2016_v5 = vstv %s2235_s17 }
 0x263   :  { %v2017_v36 = vmul.f32 %v3449_v26, %v2016_v5  ;;  %v2018_v24 = vmul.f32 %v3431_v39, %v2016_v5  ;;  %v2019_v0 = vmul.f32 %v3547_v53, %v2016_v5 }
 0x264   :  { %1916 = vrot.lane.b32.xlu1 %v1910_v32, %s2316_s27  ;;  %1900 = vrot.lane.b32.xlu2 %v1896_v43, %s2316_s27  ;;  %v2041_v43 = vstv %s2236_s10 }
 0x265   :  { %1920 = vrot.lane.b32.xlu0 %v1912_v4, %s2316_s27  ;;  %v2023_v3 = vrot.slane %v2017_v36, 2  ;;  %v2024_v30 = vrot.slane %v2018_v24, 2  ;;  %v2026_v57 = vrot.slane %v2019_v0, 2 }
 0x266   :  { %v1555_v61 = vpop.permute.xlu1 %1554  ;;  %v1605_v58 = vpop.permute.xlu2 %1604 }
 0x267   :  { %v1576_v38 = vpop.permute.xlu0 %1575  ;;  %v1560_v15 = vadd.f32 %v1555_v61, %v1478_v49  ;;  %v3668_v48 = vadd.f32 %v1605_v58, %v1519_v23  ;;  %v2001_v49 = vrot.slane %v1994_v63, 2  ;;  %v2025_v41 = vsel %vm92_vm6, %v2023_v3, %v2024_v30 }
 0x268   :  { %v3671_v25 = vadd.f32 %v1576_v38, %v3610_v54  ;;  %v2027_v61 = vsel %vm92_vm6, %v2024_v30, %v2026_v57  ;;  %v1973_v58 = vmul.f32 %v3547_v53, %v1970_v34 }
 0x269   :  { %v2002_v29 = vsel %vm92_vm6, %v1999_v9, %v2001_v49 }
 0x26a   :  { %v1980_v60 = vrot.slane %v1973_v58, 2 }
 0x26c   :  { %1936 = vrot.lane.b32.xlu1 %v1930_v11, %s2316_s27  ;;  %1918 = vrot.lane.b32.xlu2 %v1911_v51, %s2316_s27 }
 0x26d   :  { %1940 = vrot.lane.b32.xlu0 %v1932_v35, %s2316_s27 }
 0x26e   :  { %v1578_v54 = vpop.permute.xlu1 %1577  ;;  %v1647_v16 = vpop.permute.xlu2 %1646 }
 0x26f   :  { %v1601_v13 = vpop.permute.xlu0 %1600  ;;  %v1585_v19 = vadd.f32 %v1578_v54, %v1498_v40  ;;  %v3682_v28 = vadd.f32 %v1647_v16, %v1560_v15  ;;  %v1949_v40 = vstv %s2232_s8  ;;  %v2044_v15 = vmul.f32 %v3547_v53, %v2041_v43 }
 0x270   :  { %v3685_v7 = vadd.f32 %v1601_v13, %v3624_v14  ;;  %v1950_v12 = vmul.f32 %v3449_v26, %v1949_v40  ;;  %v1951_v45 = vmul.f32 %v3431_v39, %v1949_v40  ;;  %v1952_v38 = vmul.f32 %v3547_v53, %v1949_v40 }
 0x271   :  { %v2051_v63 = vrot.slane %v2044_v15, 4  ;;  %v2062_v13 = vstv %s2237_s11 }
 0x272   :  { %v1956_v46 = vrot.slane %v1950_v12, 2  ;;  %v1957_v56 = vrot.slane %v1951_v45, 2  ;;  %v1959_v47 = vrot.slane %v1952_v38, 2  ;;  %v2063_v5 = vmul.f32 %v3449_v26, %v2062_v13 }
 0x274   :  { %2003 = vrot.lane.b32.xlu1 %v2000_v44, %s2316_s27  ;;  %1938 = vrot.lane.b32.xlu2 %v1931_v52, %s2316_s27  ;;  %v1958_v4 = vsel %vm92_vm6, %v1956_v46, %v1957_v56  ;;  %v1960_v9 = vsel %vm92_vm6, %v1957_v56, %v1959_v47  ;;  %v2064_v52 = vmul.f32 %v3431_v39, %v2062_v13 }
 0x275   :  { %2007 = vrot.lane.b32.xlu0 %v2001_v49, %s2316_s27 }
 0x276   :  { %v1603_v14 = vpop.permute.xlu1 %1602  ;;  %v1666_v31 = vpop.permute.xlu2 %1665  ;;  %v2070_v0 = vrot.slane %v2064_v52, 4 }
 0x277   :  { %v1626_v2 = vpop.permute.xlu0 %1625  ;;  %v1610_v22 = vadd.f32 %v1603_v14, %v3650_v37  ;;  %v3696_v59 = vadd.f32 %v1666_v31, %v1585_v19  ;;  %v2042_v19 = vmul.f32 %v3449_v26, %v2041_v43  ;;  %v2069_v31 = vrot.slane %v2063_v5, 4 }
 0x278   :  { %v3699_v50 = vadd.f32 %v1626_v2, %v3637_v8  ;;  %v1972_v8 = vmul.f32 %v3431_v39, %v1970_v34 }
 0x279   :  { %v2048_v44 = vrot.slane %v2042_v19, 4 }
 0x27a   :  { %v1978_v32 = vrot.slane %v1972_v8, 2 }
 0x27c   :  { %2028 = vrot.lane.b32.xlu1 %v2025_v41, %s2316_s27  ;;  %2005 = vrot.lane.b32.xlu2 %v2002_v29, %s2316_s27  ;;  %v1981_v55 = vsel %vm92_vm6, %v1978_v32, %v1980_v60 }
 0x27d   :  { %2032 = vrot.lane.b32.xlu0 %v2026_v57, %s2316_s27 }
 0x27e   :  { %v1628_v37 = vpop.permute.xlu1 %1627  ;;  %v1687_v1 = vpop.permute.xlu2 %1686 }
 0x27f   :  { %v1649_v17 = vpop.permute.xlu0 %1648  ;;  %v1632_v18 = vadd.f32 %v1628_v37, %v3660_v27  ;;  %v3711_v62 = vadd.f32 %v1687_v1, %v1610_v22  ;;  %v1979_v27 = vsel %vm92_vm6, %v1977_v20, %v1978_v32  ;;  %v2065_v22 = vmul.f32 %v3547_v53, %v2062_v13 }
 0x280   :  { %v1653_v23 = vadd.f32 %v1649_v17, %v3647_v6  ;;  %v2043_v6 = vmul.f32 %v3431_v39, %v2041_v43  ;;  %v2071_v39 = vsel %vm165_vm7, %v2069_v31, %v2070_v0 }
 0x281   :  { %v2072_v57 = vrot.slane %v2065_v22, 4 }
 0x282   :  { %v2049_v16 = vrot.slane %v2043_v6, 4 }
 0x284   :  { %1961 = vrot.lane.b32.xlu1 %v1958_v4, %s2316_s27  ;;  %2030 = vrot.lane.b32.xlu2 %v2027_v61, %s2316_s27  ;;  %v2050_v2 = vsel %vm165_vm7, %v2048_v44, %v2049_v16 }
 0x285   :  { %1982 = vrot.lane.b32.xlu0 %v1979_v27, %s2316_s27 }
 0x286   :  { %v1664_v42 = vpop.permute.xlu1 %1663  ;;  %v1712_v33 = vpop.permute.xlu2 %1711 }
 0x287   :  { %v1668_v11 = vpop.permute.xlu0 %1667  ;;  %v1672_v51 = vadd.f32 %v1664_v42, %v3671_v25  ;;  %v1716_v35 = vadd.f32 %v1712_v33, %v1632_v18  ;;  %v2052_v25 = vsel %vm165_vm7, %v2049_v16, %v2051_v63 }
 0x288   :  { %v1674_v54 = vadd.f32 %v1668_v11, %v3657_v10 }
 0x28c   :  { %1984 = vrot.lane.b32.xlu1 %v1981_v55, %s2316_s27  ;;  %1963 = vrot.lane.b32.xlu2 %v1960_v9, %s2316_s27 }
 0x28d   :  { %2055 = vrot.lane.b32.xlu0 %v2052_v25, %s2316_s27 }
 0x28e   :  { %v1685_v10 = vpop.permute.xlu1 %1684  ;;  %v1752_v49 = vpop.permute.xlu2 %1751 }
 0x28f   :  { %v1689_v36 = vpop.permute.xlu0 %1688  ;;  %v1693_v24 = vadd.f32 %v1685_v10, %v3685_v7  ;;  %v1760_v14 = vadd.f32 %v1752_v49, %v1672_v51 }
 0x290   :  { %v1695_v26 = vadd.f32 %v1689_v36, %v3668_v48  ;;  %v2073_v48 = vsel %vm165_vm7, %v2070_v0, %v2072_v57 }
 0x294   :  { %2074 = vrot.lane.b32.xlu1 %v2071_v39, %s2316_s27  ;;  %2053 = vrot.lane.b32.xlu2 %v2050_v2, %s2316_s27 }
 0x296   :  { %v1710_v3 = vpop.permute.xlu1 %1709  ;;  %v1777_v30 = vpop.permute.xlu2 %1776 }
 0x297   :  { %v1731_v40 = vpop.permute.xlu0 %1730  ;;  %v1715_v7 = vadd.f32 %v1710_v3, %v3699_v50  ;;  %v1785_v34 = vadd.f32 %v1777_v30, %v1693_v24 }
 0x298   :  { %v1736_v41 = vadd.f32 %v1731_v40, %v3682_v28 }
 0x29c   :  { %2076 = vrot.lane.b32.xlu2 %v2073_v48, %s2316_s27  ;;  %s2317_s27 = smov [#allocation5]  }
 0x29d   :  { %s2124_s12 = sshll.u32 %s2317_s27, 4  ;;  %s2125_s12 = int_to_ptr.vmem [resolvable:$true] %s2124_s12 }
 0x29e   :  { %v1733_v29 = vpop.permute.xlu1 %1732  ;;  %v1802_v12 = vpop.permute.xlu2 %1801 }
 0x29f   :  { %v1754_v53 = vpop.permute.xlu0 %1753  ;;  %v1737_v45 = vadd.f32 %v1733_v29, %v1653_v23  ;;  %v3746_v21 = vadd.f32 %v1802_v12, %v1715_v7 }
 0x2a0   :  { %v1761_v8 = vadd.f32 %v1754_v53, %v3696_v59 }
 0x2a6   :  { %v1756_v37 = vpop.permute.xlu1 %1755  ;;  %v1825_v1 = vpop.permute.xlu2 %1824 }
 0x2a7   :  { %v1779_v17 = vpop.permute.xlu0 %1778  ;;  %v1762_v50 = vadd.f32 %v1756_v37, %v1674_v54  ;;  %v3749_v18 = vadd.f32 %v1825_v1, %v1737_v45 }
 0x2a8   :  { %v1786_v28 = vadd.f32 %v1779_v17, %v3711_v62 }
 0x2ae   :  { %v1781_v46 = vpop.permute.xlu1 %1780  ;;  %v1848_v56 = vpop.permute.xlu2 %1847 }
 0x2af   :  { %v1804_v20 = vpop.permute.xlu0 %1803  ;;  %v1787_v32 = vadd.f32 %v1781_v46, %v1695_v26  ;;  %v1854_v43 = vadd.f32 %v1848_v56, %v1762_v50 }
 0x2b0   :  { %v1808_v4 = vadd.f32 %v1804_v20, %v1716_v35 }
 0x2b6   :  { %v1823_v61 = vpop.permute.xlu1 %1822  ;;  %v1873_v23 = vpop.permute.xlu2 %1872 }
 0x2b7   :  { %v1844_v58 = vpop.permute.xlu0 %1843  ;;  %v3752_v38 = vadd.f32 %v1823_v61, %v1736_v41  ;;  %v1879_v22 = vadd.f32 %v1873_v23, %v1787_v32 }
 0x2b8   :  { %v1852_v55 = vadd.f32 %v1844_v58, %v1760_v14 }
 0x2be   :  { %v1846_v59 = vpop.permute.xlu1 %1845  ;;  %v3754_v27 = vpop.permute.xlu2 %1900 }
 0x2bf   :  { %v1869_v6 = vpop.permute.xlu0 %1868  ;;  %v1853_v13 = vadd.f32 %v1846_v59, %v1761_v8 }
 0x2c0   :  { %v1877_v15 = vadd.f32 %v1869_v6, %v1785_v34 }
 0x2c6   :  { %v1871_v42 = vpop.permute.xlu1 %1870  ;;  %v1919_v33 = vpop.permute.xlu2 %1918 }
 0x2c7   :  { %v1887_v11 = vpop.permute.xlu0 %1886  ;;  %v1926_v9 = vadd.f32 %v1919_v33, %v1853_v13  ;;  %v1878_v24 = vadd.f32 %v1871_v42, %v1786_v28 }
 0x2c8   :  { %v1892_v37 = vadd.f32 %v1887_v11, %v3746_v21  ;;  %v1906_v21 = vadd.f32 %v3754_v27, %v3752_v38 }
 0x2ce   :  { %v1889_v62 = vpop.permute.xlu1 %1888  ;;  %v1939_v51 = vpop.permute.xlu2 %1938 }
 0x2cf   :  { %v1903_v60 = vpop.permute.xlu0 %1902  ;;  %v1946_v39 = vadd.f32 %v1939_v51, %v1878_v24  ;;  %v1893_v20 = vadd.f32 %v1889_v62, %v1808_v4 }
 0x2d0   :  { %v1907_v32 = vadd.f32 %v1903_v60, %v3749_v18 }
 0x2d6   :  { %v1917_v47 = vpop.permute.xlu1 %1916  ;;  %v2006_v16 = vpop.permute.xlu2 %2005 }
 0x2d7   :  { %v1921_v54 = vpop.permute.xlu0 %1920  ;;  %v1925_v5 = vadd.f32 %v1917_v47, %v1852_v55  ;;  %v2013_v52 = vadd.f32 %v2006_v16, %v1926_v9 }
 0x2d8   :  { %v1927_v25 = vadd.f32 %v1921_v54, %v1854_v43 }
 0x2d9   :  { %v2086_v31 = vrot.slane %v2013_v52, 1 }
 0x2de   :  { %v1937_v35 = vpop.permute.xlu1 %1936  ;;  %v2031_v19 = vpop.permute.xlu2 %2030 }
 0x2df   :  { %v1941_v63 = vpop.permute.xlu0 %1940  ;;  %v1945_v14 = vadd.f32 %v1937_v35, %v1877_v15  ;;  %v2038_v40 = vadd.f32 %v2031_v19, %v1946_v39 }
 0x2e0   :  { %v1947_v7 = vadd.f32 %v1941_v63, %v1879_v22 }
 0x2e1   :  { %v2105_v29 = vrot.slane %v2038_v40, 1 }
 0x2e6   :  { %v2004_v10 = vpop.permute.xlu1 %2003  ;;  %v1964_v3 = vpop.permute.xlu2 %1963 }
 0x2e7   :  { %v2008_v49 = vpop.permute.xlu0 %2007  ;;  %v2012_v44 = vadd.f32 %v2004_v10, %v1925_v5  ;;  %v1968_v43 = vadd.f32 %v1964_v3, %v1893_v20 }
 0x2e8   :  { %v2014_v36 = vadd.f32 %v2008_v49, %v1927_v25 }
 0x2e9   :  { %v2085_v0 = vrot.slane %v2012_v44, 1 }
 0x2ea   :  { %v2088_v26 = vrot.slane %v2014_v36, 1 }
 0x2eb   :  { %v2087_v2 = vsel %vm243_vm4, %v2085_v0, %v2086_v31 }
 0x2ec   :  { %v2089_v30 = vsel %vm243_vm4, %v2086_v31, %v2088_v26 }
 0x2ee   :  { %v2029_v34 = vpop.permute.xlu1 %2028  ;;  %v2054_v1 = vpop.permute.xlu2 %2053 }
 0x2ef   :  { %v2033_v57 = vpop.permute.xlu0 %2032  ;;  %v2037_v41 = vadd.f32 %v2029_v34, %v1945_v14 }
 0x2f0   :  { %v2039_v48 = vadd.f32 %v2033_v57, %v1947_v7 }
 0x2f1   :  { %v2104_v12 = vrot.slane %v2037_v41, 1 }
 0x2f2   :  { %v2107_v53 = vrot.slane %v2039_v48, 1 }
 0x2f3   :  { %v2106_v45 = vsel %vm243_vm4, %v2104_v12, %v2105_v29 }
 0x2f4   :  { %v2108_v8 = vsel %vm243_vm4, %v2105_v29, %v2107_v53 }
 0x2f6   :  { %v1962_v17 = vpop.permute.xlu1 %1961  ;;  %v2077_v59 = vpop.permute.xlu2 %2076 }
 0x2f7   :  { %v1983_v50 = vpop.permute.xlu0 %1982  ;;  %v1967_v28 = vadd.f32 %v1962_v17, %v1892_v37 }
 0x2f8   :  { %v1988_v47 = vadd.f32 %v1983_v50, %v1906_v21 }
 0x2f9   :  { %v2059_v46 = vadd.f32 %v2054_v1, %v1967_v28 }
 0x2fb   :  { %v2092_v56 = vadd.f32 %v2087_v2, %v2059_v46 }
 0x2fd   :  { %2256 = vtanh.f32 %v2092_v56 }
 0x2fe   :  { %v1985_v61 = vpop.permute.xlu1 %1984 }
 0x2ff   :  { %v2056_v23 = vpop.permute.xlu0 %2055  ;;  %v1989_v58 = vadd.f32 %v1985_v61, %v1907_v32 }
 0x300   :  { %v2060_v6 = vadd.f32 %v2056_v23, %v1968_v43 }
 0x301   :  { %v2081_v15 = vadd.f32 %v2077_v59, %v1989_v58 }
 0x302   :  { %v2093_v42 = vadd.f32 %v2089_v30, %v2060_v6 }
 0x303   :  { %v2257_v33 = vpop.eup %2256  ;;  %v2112_v11 = vadd.f32 %v2108_v8, %v2081_v15 }
 0x304   :  { %v2096_v51 = vmax.f32 %v2257_v33, 0.0  ;;  %2258 = vtanh.f32 %v2093_v42 }
 0x305   :  { %2260 = vtanh.f32 %v2112_v11 }
 0x306   :  { %2099 = vst.msk [vmem:[#allocation5 + $0x20] sm:$0xff] %vm1067_vm8, %v2096_v51  ;;  %v2075_v18 = vpop.permute.xlu1 %2074 }
 0x307   :  { %v2080_v4 = vadd.f32 %v2075_v18, %v1988_v47 }
 0x309   :  { %v2111_v62 = vadd.f32 %v2106_v45, %v2080_v4 }
 0x30a   :  { %v2259_v60 = vpop.eup %2258 }
 0x30b   :  { %v2261_v54 = vpop.eup %2260  ;;  %v2097_v16 = vmax.f32 %v2259_v60, 0.0  ;;  %2262 = vtanh.f32 %v2111_v62 }
 0x30c   :  { %v2116_v35 = vmax.f32 %v2261_v54, 0.0 }
 0x30d   :  { %2100 = vst.msk [vmem:[#allocation5 + $0x28] sm:$0xff] %vm1067_vm8, %v2097_v16 }
 0x30e   :  { %2119 = vst.msk [vmem:[#allocation5 + $0x38] sm:$0xff] %vm1067_vm8, %v2116_v35 }
 0x311   :  { %v2263_v38 = vpop.eup %2262 }
 0x312   :  { %v2115_v27 = vmax.f32 %v2263_v38, 0.0 }
 0x314   :  { %2118 = vst.msk [vmem:[#allocation5 + $0x30] sm:$0xff] %vm1067_vm8, %v2115_v27 }
 0x315   :  { %2132 = dma.vmem_to_hbm [thread:$0]  %s2125_s12, 1024, %s2127_s15, [#allocation6], %s2318_s16, %s2318_s16, %s2319_s18  }
 0x316   :  { %2308 = dma.done.wait [#allocation6], 1024  }
 0x317   :  { %2309 = vsyncadd [#allocation6], 4294966272 }
 0x318   :  { %2137 = vsyncpa [#allocation6], 1 }

</bundles_post_ra>
